<compile_context>
chip_gen: v5e
topology: v5e:2x2
jax: 0.10.0
libtpu: 0.0.40
codegen_flags: <defaults>
</compile_context>

<pallas_src>
import functools

import jax
import jax.numpy as jnp
from jax.experimental import pallas as pl
from jax.experimental.pallas import tpu as pltpu


# ----------------------------------------------------------------------------
# Fused Pallas kernel: full DnCNN forward for one image
# ----------------------------------------------------------------------------
def _dncnn_fused_kernel(x_ref, w_hid_ref, w_out_ref, o_ref, buf_a, buf_b,
                        *, H, W, Cin, nf, n_relu):
    """Fused DnCNN forward for one NHWC image.

    x_ref:     (1, H, W, Cin)          input image
    w_hid_ref: (n_relu, 3, 3*nf, nf)   in_conv + hidden convs (ReLU after each);
                                       layer-0 input channels zero-padded to nf
    w_out_ref: (3, 3*nf, nf)           out_conv, output channels zero-padded to nf
    o_ref:     (1, H, W, nf)           conv(x1) + x, channel-padded to nf
    buf_a/b:   (H+2, W+2, nf) f32      zero-bordered ping-pong activation scratch
    """
    f32 = jnp.float32

    def pad_channels(v):                       # (H, W, c) -> (H, W, nf), zero fill
        c = v.shape[-1]
        if c == nf:
            return v
        return jnp.concatenate([v, jnp.zeros((H, W, nf - c), f32)], axis=-1)

    # Zero both padded buffers once per image.  Only interiors are written
    # below, so the 1-pixel zero border (SAME padding) survives all layers.
    buf_a[...] = jnp.zeros_like(buf_a)
    buf_b[...] = jnp.zeros_like(buf_b)

    x0 = x_ref[0].astype(f32)                                  # (H, W, Cin)
    buf_a[pl.ds(1, H), pl.ds(1, W), :] = pad_channels(x0)

    def conv3x3(src_ref, w):
        """3x3 SAME conv of the zero-bordered activation in `src_ref`.

        src_ref: (H+2, W+2, nf) scratch ref.
        w:       (3, 3*nf, cout) value, K ordered as (kw, cin).
        Returns (H, W, cout) f32.
        """
        xp = src_ref[...]                                      # (H+2, W+2, nf)
        # im2col over kw: concat the three kw-shifted views on the lane axis.
        patches = jnp.concatenate(
            [xp[:, 0:W, :], xp[:, 1:W + 1, :], xp[:, 2:W + 2, :]],
            axis=-1)                                           # (H+2, W, 3*nf)
        acc = jnp.zeros((H, W, w.shape[-1]), f32)
        for kh in range(3):                                    # 3 MXU matmuls
            acc = acc + jnp.einsum(
                "hwk,ko->hwo", patches[kh:kh + H], w[kh],
                preferred_element_type=f32)
        return acc

    bufs = (buf_a, buf_b)
    # in_conv + hidden convs, each followed by ReLU; activations stay in VMEM.
    for layer in range(n_relu):
        src = bufs[layer % 2]
        dst = bufs[(layer + 1) % 2]
        w = w_hid_ref[layer].astype(f32)                       # (3, 3*nf, nf)
        y = jnp.maximum(conv3x3(src, w), 0.0)
        dst[pl.ds(1, H), pl.ds(1, W), :] = y

    # out_conv fused with the residual add (channel-padded -> lane-dense store).
    src = bufs[n_relu % 2]
    y = conv3x3(src, w_out_ref[...].astype(f32))               # (H, W, nf)
    o_ref[0] = (y + pad_channels(x0)).astype(o_ref.dtype)


# ----------------------------------------------------------------------------
# Wrapper: weight packing + pallas_call
# ----------------------------------------------------------------------------
def dncnn_forward(x_nchw, params):
    """DnCNN forward, PyTorch-style NCHW in / NCHW out.

    Matches DnCNN(bias=False, residual=True, last_act=None, log=False).
    """
    N, Cin, H, W = x_nchw.shape
    nf = params["w_in"].shape[-1]
    Cout = params["w_out"].shape[-1]
    depth = 2 + len(params["w_hidden"])
    assert Cin <= nf and Cout <= nf
    assert Cin == Cout, "residual add requires in_channels == out_channels"

    x = jnp.transpose(x_nchw, (0, 2, 3, 1))                    # NCHW -> NHWC
    dtype = x.dtype

    # ---- host-side weight packing (tiny; done once) -------------------------
    # Layer 0: pad input channels to nf so every ReLU layer is (3, 3, nf, nf).
    w_in = params["w_in"]                                      # (3, 3, Cin, nf)
    if Cin < nf:
        w_in = jnp.pad(w_in, ((0, 0), (0, 0), (0, nf - Cin), (0, 0)))
    w_hid = jnp.stack(
        [w.reshape(3, 3 * nf, nf) for w in [w_in] + list(params["w_hidden"])],
        axis=0).astype(dtype)                                  # (depth-1, 3, 3nf, nf)
    # Out conv: pad output channels to nf (lane-dense store; sliced afterwards).
    w_out = params["w_out"]                                    # (3, 3, nf, Cout)
    if Cout < nf:
        w_out = jnp.pad(w_out, ((0, 0), (0, 0), (0, 0), (0, nf - Cout)))
    w_out = w_out.reshape(3, 3 * nf, nf).astype(dtype)

    kernel = functools.partial(
        _dncnn_fused_kernel, H=H, W=W, Cin=Cin, nf=nf, n_relu=depth - 1)

    itemsize = x.dtype.itemsize
    flops = 2 * N * H * W * 9 * (Cin * nf + (depth - 2) * nf * nf + nf * nf)
    bytes_accessed = (x.size + N * H * W * nf + w_hid.size + w_out.size) * itemsize

    out_padded = pl.pallas_call(
        kernel,
        out_shape=jax.ShapeDtypeStruct((N, H, W, nf), dtype),
        grid=(N,),
        in_specs=[
            pl.BlockSpec((1, H, W, Cin), lambda n: (n, 0, 0, 0)),
            pl.BlockSpec((depth - 1, 3, 3 * nf, nf), lambda n: (0, 0, 0, 0)),
            pl.BlockSpec((3, 3 * nf, nf), lambda n: (0, 0, 0)),
        ],
        out_specs=pl.BlockSpec((1, H, W, nf), lambda n: (n, 0, 0, 0)),
        scratch_shapes=[
            pltpu.VMEM((H + 2, W + 2, nf), jnp.float32),
            pltpu.VMEM((H + 2, W + 2, nf), jnp.float32),
        ],
        compiler_params=pltpu.CompilerParams(
            dimension_semantics=("parallel",),
            vmem_limit_bytes=64 * 1024 * 1024,
        ),
        cost_estimate=pl.CostEstimate(
            flops=flops, transcendentals=0, bytes_accessed=bytes_accessed),
    )(x, w_hid, w_out)

    out = out_padded[..., :Cout]                               # drop channel padding
    return jnp.transpose(out, (0, 3, 1, 2))                    # NHWC -> NCHW


# ----------------------------------------------------------------------------
# Params init (Kaiming-normal-like, HWIO), pure-JAX reference, main
# ----------------------------------------------------------------------------
def init_params(key, in_channels, out_channels, depth, nf, dtype=jnp.float32):
    def kaiming(k, cin, cout):
        std = (2.0 / (cin * 3 * 3)) ** 0.5
        return (std * jax.random.normal(k, (3, 3, cin, cout))).astype(dtype)

    keys = jax.random.split(key, depth)
    return {
        "w_in": kaiming(keys[0], in_channels, nf),
        "w_hidden": [kaiming(keys[i + 1], nf, nf) for i in range(depth - 2)],
        "w_out": kaiming(keys[depth - 1], nf, out_channels),
    }


def _ref_forward(x_nchw, params):
    dn = jax.lax.conv_dimension_numbers(x_nchw.shape, (1, 1, 3, 3),
                                        ("NCHW", "OIHW", "NCHW"))

    def conv(x, w_hwio):
        w_oihw = jnp.transpose(w_hwio, (3, 2, 0, 1))
        return jax.lax.conv_general_dilated(x, w_oihw, (1, 1), "SAME",
                                            dimension_numbers=dn)

    x1 = jax.nn.relu(conv(x_nchw, params["w_in"]))
    for w in params["w_hidden"]:
        x1 = jax.nn.relu(conv(x1, w))
    return conv(x1, params["w_out"]) + x_nchw


if __name__ == "__main__":
    key = jax.random.PRNGKey(0)
    k_x, k_p = jax.random.split(key)

    # Small, module-consistent shapes: batch=2, in=out=3 channels, 16x16
    # images, depth=4 conv layers, nf=16 feature channels.
    N, C, H, W = 2, 3, 16, 16
    depth, nf = 4, 16

    x = jax.random.normal(k_x, (N, C, H, W), dtype=jnp.float32)
    params = init_params(k_p, in_channels=C, out_channels=C, depth=depth, nf=nf)

    out = jax.block_until_ready(dncnn_forward(x, params))
    ref = jax.block_until_ready(_ref_forward(x, params))

    assert out.shape == (N, C, H, W)
    err = float(jnp.max(jnp.abs(out - ref)))
    assert jnp.allclose(out, ref, atol=1e-4, rtol=1e-4), f"max abs err = {err}"

    print("KERNEL_OK")
</pallas_src>

<mosaic_0001>
module attributes {stable_mosaic.version = 11 : i64} {
  func.func @_dncnn_fused_kernel(%arg0: i32, %arg1: memref<1x16x16x3xf32, #tpu.memory_space<vmem>>, %arg2: memref<3x3x48x16xf32, #tpu.memory_space<vmem>>, %arg3: memref<3x48x16xf32, #tpu.memory_space<vmem>>, %arg4: memref<1x16x16x16xf32, #tpu.memory_space<vmem>>, %arg5: memref<18x18x16xf32, #tpu.memory_space<vmem>>, %arg6: memref<18x18x16xf32, #tpu.memory_space<vmem>>) attributes {dimension_semantics = [#tpu.dimension_semantics<parallel>], iteration_bounds = array<i64: 2>, scalar_prefetch = 0 : i64, scratch_operands = 2 : i64, tpu.core_type = #tpu.core_type<tc>, window_params = [{transform_indices = @transform_0, window_bounds = array<i64: 1, 16, 16, 3>}, {pipeline_mode = #tpu.pipeline_mode<synchronous>, transform_indices = @transform_1, window_bounds = array<i64: 3, 3, 48, 16>}, {pipeline_mode = #tpu.pipeline_mode<synchronous>, transform_indices = @transform_2, window_bounds = array<i64: 3, 48, 16>}, {transform_indices = @transform_3, window_bounds = array<i64: 1, 16, 16, 16>}]} {
    %cst = arith.constant 0.000000e+00 : f32
    %0 = vector.broadcast %cst : f32 to vector<18x18x16xf32>
    %c0 = arith.constant 0 : index
    %c0_0 = arith.constant 0 : index
    %c0_1 = arith.constant 0 : index
    %1 = vector.load %arg5[%c0, %c0_0, %c0_1] : memref<18x18x16xf32, #tpu.memory_space<vmem>>, vector<18x18x16xf32>
    tpu.vector_store %arg5[%c0, %c0_0, %c0_1], %0 {strides = array<i32>} : memref<18x18x16xf32, #tpu.memory_space<vmem>>, vector<18x18x16xf32>,
    %cst_2 = arith.constant 0.000000e+00 : f32
    %2 = vector.broadcast %cst_2 : f32 to vector<18x18x16xf32>
    %c0_3 = arith.constant 0 : index
    %c0_4 = arith.constant 0 : index
    %c0_5 = arith.constant 0 : index
    %3 = vector.load %arg6[%c0_3, %c0_4, %c0_5] : memref<18x18x16xf32, #tpu.memory_space<vmem>>, vector<18x18x16xf32>
    tpu.vector_store %arg6[%c0_3, %c0_4, %c0_5], %2 {strides = array<i32>} : memref<18x18x16xf32, #tpu.memory_space<vmem>>, vector<18x18x16xf32>,
    %c0_6 = arith.constant 0 : index
    %c0_7 = arith.constant 0 : index
    %c0_8 = arith.constant 0 : index
    %c0_9 = arith.constant 0 : index
    %4 = vector.load %arg1[%c0_6, %c0_7, %c0_8, %c0_9] : memref<1x16x16x3xf32, #tpu.memory_space<vmem>>, vector<1x16x16x3xf32>
    %5 = vector.shape_cast %4 : vector<1x16x16x3xf32> to vector<16x16x3xf32>
    %cst_10 = arith.constant 0.000000e+00 : f32
    %6 = vector.broadcast %cst_10 : f32 to vector<16x16x13xf32>
    %7 = tpu.concatenate %5, %6 in 2 : vector<16x16x3xf32>, vector<16x16x13xf32> -> vector<16x16x16xf32>
    %c1 = arith.constant 1 : index
    %c1_11 = arith.constant 1 : index
    %c0_12 = arith.constant 0 : index
    %8 = vector.load %arg5[%c1, %c1_11, %c0_12] : memref<18x18x16xf32, #tpu.memory_space<vmem>>, vector<16x16x16xf32>
    tpu.vector_store %arg5[%c1, %c1_11, %c0_12], %7 {strides = array<i32>} : memref<18x18x16xf32, #tpu.memory_space<vmem>>, vector<16x16x16xf32>,
    %c0_13 = arith.constant 0 : index
    %c0_14 = arith.constant 0 : index
    %c0_15 = arith.constant 0 : index
    %c0_16 = arith.constant 0 : index
    %9 = vector.load %arg2[%c0_13, %c0_14, %c0_15, %c0_16] : memref<3x3x48x16xf32, #tpu.memory_space<vmem>>, vector<1x3x48x16xf32>
    %10 = vector.shape_cast %9 : vector<1x3x48x16xf32> to vector<3x48x16xf32>
    %c0_17 = arith.constant 0 : index
    %c0_18 = arith.constant 0 : index
    %c0_19 = arith.constant 0 : index
    %11 = vector.load %arg5[%c0_17, %c0_18, %c0_19] : memref<18x18x16xf32, #tpu.memory_space<vmem>>, vector<18x18x16xf32>
    %12 = vector.extract_strided_slice %11 {offsets = [0, 0, 0], sizes = [18, 16, 16], strides = [1, 1, 1]} : vector<18x18x16xf32> to vector<18x16x16xf32>
    %13 = vector.extract_strided_slice %11 {offsets = [0, 1, 0], sizes = [18, 16, 16], strides = [1, 1, 1]} : vector<18x18x16xf32> to vector<18x16x16xf32>
    %14 = vector.extract_strided_slice %11 {offsets = [0, 2, 0], sizes = [18, 16, 16], strides = [1, 1, 1]} : vector<18x18x16xf32> to vector<18x16x16xf32>
    %15 = tpu.concatenate %12, %13, %14 in 2 : vector<18x16x16xf32>, vector<18x16x16xf32>, vector<18x16x16xf32> -> vector<18x16x48xf32>
    %cst_20 = arith.constant 0.000000e+00 : f32
    %16 = vector.broadcast %cst_20 : f32 to vector<16x16x16xf32>
    %17 = vector.extract_strided_slice %15 {offsets = [0, 0, 0], sizes = [16, 16, 48], strides = [1, 1, 1]} : vector<18x16x48xf32> to vector<16x16x48xf32>
    %18 = vector.extract_strided_slice %10 {offsets = [0, 0, 0], sizes = [1, 48, 16], strides = [1, 1, 1]} : vector<3x48x16xf32> to vector<1x48x16xf32>
    %19 = vector.shape_cast %18 : vector<1x48x16xf32> to vector<48x16xf32>
    "tpu.trace_start"() <{level = 10 : i32, message = "hwk,ko->hwo"}> : () -> ()
    %cst_21 = arith.constant dense<0.000000e+00> : vector<16x16x16xf32>
    %20 = tpu.matmul %17, %19, %cst_21 {dimension_numbers = #tpu.dot_dimension_numbers<[2], [0], [0, 1], [1], [0, 0, 0, 1, 1, 1], [], []>} : vector<16x16x48xf32>, vector<48x16xf32>, vector<16x16x16xf32> -> vector<16x16x16xf32>
    "tpu.trace_stop"() : () -> ()
    %21 = arith.addf %16, %20 : vector<16x16x16xf32>
    %22 = vector.extract_strided_slice %15 {offsets = [1, 0, 0], sizes = [16, 16, 48], strides = [1, 1, 1]} : vector<18x16x48xf32> to vector<16x16x48xf32>
    %23 = vector.extract_strided_slice %10 {offsets = [1, 0, 0], sizes = [1, 48, 16], strides = [1, 1, 1]} : vector<3x48x16xf32> to vector<1x48x16xf32>
    %24 = vector.shape_cast %23 : vector<1x48x16xf32> to vector<48x16xf32>
    "tpu.trace_start"() <{level = 10 : i32, message = "hwk,ko->hwo"}> : () -> ()
    %cst_22 = arith.constant dense<0.000000e+00> : vector<16x16x16xf32>
    %25 = tpu.matmul %22, %24, %cst_22 {dimension_numbers = #tpu.dot_dimension_numbers<[2], [0], [0, 1], [1], [0, 0, 0, 1, 1, 1], [], []>} : vector<16x16x48xf32>, vector<48x16xf32>, vector<16x16x16xf32> -> vector<16x16x16xf32>
    "tpu.trace_stop"() : () -> ()
    %26 = arith.addf %21, %25 : vector<16x16x16xf32>
    %27 = vector.extract_strided_slice %15 {offsets = [2, 0, 0], sizes = [16, 16, 48], strides = [1, 1, 1]} : vector<18x16x48xf32> to vector<16x16x48xf32>
    %28 = vector.extract_strided_slice %10 {offsets = [2, 0, 0], sizes = [1, 48, 16], strides = [1, 1, 1]} : vector<3x48x16xf32> to vector<1x48x16xf32>
    %29 = vector.shape_cast %28 : vector<1x48x16xf32> to vector<48x16xf32>
    "tpu.trace_start"() <{level = 10 : i32, message = "hwk,ko->hwo"}> : () -> ()
    %cst_23 = arith.constant dense<0.000000e+00> : vector<16x16x16xf32>
    %30 = tpu.matmul %27, %29, %cst_23 {dimension_numbers = #tpu.dot_dimension_numbers<[2], [0], [0, 1], [1], [0, 0, 0, 1, 1, 1], [], []>} : vector<16x16x48xf32>, vector<48x16xf32>, vector<16x16x16xf32> -> vector<16x16x16xf32>
    "tpu.trace_stop"() : () -> ()
    %31 = arith.addf %26, %30 : vector<16x16x16xf32>
    %cst_24 = arith.constant 0.000000e+00 : f32
    %32 = vector.broadcast %cst_24 : f32 to vector<16x16x16xf32>
    %33 = arith.maximumf %31, %32 : vector<16x16x16xf32>
    %c1_25 = arith.constant 1 : index
    %c1_26 = arith.constant 1 : index
    %c0_27 = arith.constant 0 : index
    %34 = vector.load %arg6[%c1_25, %c1_26, %c0_27] : memref<18x18x16xf32, #tpu.memory_space<vmem>>, vector<16x16x16xf32>
    tpu.vector_store %arg6[%c1_25, %c1_26, %c0_27], %33 {strides = array<i32>} : memref<18x18x16xf32, #tpu.memory_space<vmem>>, vector<16x16x16xf32>,
    %c1_28 = arith.constant 1 : index
    %c0_29 = arith.constant 0 : index
    %c0_30 = arith.constant 0 : index
    %c0_31 = arith.constant 0 : index
    %35 = vector.load %arg2[%c1_28, %c0_29, %c0_30, %c0_31] : memref<3x3x48x16xf32, #tpu.memory_space<vmem>>, vector<1x3x48x16xf32>
    %36 = vector.shape_cast %35 : vector<1x3x48x16xf32> to vector<3x48x16xf32>
    %c0_32 = arith.constant 0 : index
    %c0_33 = arith.constant 0 : index
    %c0_34 = arith.constant 0 : index
    %37 = vector.load %arg6[%c0_32, %c0_33, %c0_34] : memref<18x18x16xf32, #tpu.memory_space<vmem>>, vector<18x18x16xf32>
    %38 = vector.extract_strided_slice %37 {offsets = [0, 0, 0], sizes = [18, 16, 16], strides = [1, 1, 1]} : vector<18x18x16xf32> to vector<18x16x16xf32>
    %39 = vector.extract_strided_slice %37 {offsets = [0, 1, 0], sizes = [18, 16, 16], strides = [1, 1, 1]} : vector<18x18x16xf32> to vector<18x16x16xf32>
    %40 = vector.extract_strided_slice %37 {offsets = [0, 2, 0], sizes = [18, 16, 16], strides = [1, 1, 1]} : vector<18x18x16xf32> to vector<18x16x16xf32>
    %41 = tpu.concatenate %38, %39, %40 in 2 : vector<18x16x16xf32>, vector<18x16x16xf32>, vector<18x16x16xf32> -> vector<18x16x48xf32>
    %cst_35 = arith.constant 0.000000e+00 : f32
    %42 = vector.broadcast %cst_35 : f32 to vector<16x16x16xf32>
    %43 = vector.extract_strided_slice %41 {offsets = [0, 0, 0], sizes = [16, 16, 48], strides = [1, 1, 1]} : vector<18x16x48xf32> to vector<16x16x48xf32>
    %44 = vector.extract_strided_slice %36 {offsets = [0, 0, 0], sizes = [1, 48, 16], strides = [1, 1, 1]} : vector<3x48x16xf32> to vector<1x48x16xf32>
    %45 = vector.shape_cast %44 : vector<1x48x16xf32> to vector<48x16xf32>
    "tpu.trace_start"() <{level = 10 : i32, message = "hwk,ko->hwo"}> : () -> ()
    %cst_36 = arith.constant dense<0.000000e+00> : vector<16x16x16xf32>
    %46 = tpu.matmul %43, %45, %cst_36 {dimension_numbers = #tpu.dot_dimension_numbers<[2], [0], [0, 1], [1], [0, 0, 0, 1, 1, 1], [], []>} : vector<16x16x48xf32>, vector<48x16xf32>, vector<16x16x16xf32> -> vector<16x16x16xf32>
    "tpu.trace_stop"() : () -> ()
    %47 = arith.addf %42, %46 : vector<16x16x16xf32>
    %48 = vector.extract_strided_slice %41 {offsets = [1, 0, 0], sizes = [16, 16, 48], strides = [1, 1, 1]} : vector<18x16x48xf32> to vector<16x16x48xf32>
    %49 = vector.extract_strided_slice %36 {offsets = [1, 0, 0], sizes = [1, 48, 16], strides = [1, 1, 1]} : vector<3x48x16xf32> to vector<1x48x16xf32>
    %50 = vector.shape_cast %49 : vector<1x48x16xf32> to vector<48x16xf32>
    "tpu.trace_start"() <{level = 10 : i32, message = "hwk,ko->hwo"}> : () -> ()
    %cst_37 = arith.constant dense<0.000000e+00> : vector<16x16x16xf32>
    %51 = tpu.matmul %48, %50, %cst_37 {dimension_numbers = #tpu.dot_dimension_numbers<[2], [0], [0, 1], [1], [0, 0, 0, 1, 1, 1], [], []>} : vector<16x16x48xf32>, vector<48x16xf32>, vector<16x16x16xf32> -> vector<16x16x16xf32>
    "tpu.trace_stop"() : () -> ()
    %52 = arith.addf %47, %51 : vector<16x16x16xf32>
    %53 = vector.extract_strided_slice %41 {offsets = [2, 0, 0], sizes = [16, 16, 48], strides = [1, 1, 1]} : vector<18x16x48xf32> to vector<16x16x48xf32>
    %54 = vector.extract_strided_slice %36 {offsets = [2, 0, 0], sizes = [1, 48, 16], strides = [1, 1, 1]} : vector<3x48x16xf32> to vector<1x48x16xf32>
    %55 = vector.shape_cast %54 : vector<1x48x16xf32> to vector<48x16xf32>
    "tpu.trace_start"() <{level = 10 : i32, message = "hwk,ko->hwo"}> : () -> ()
    %cst_38 = arith.constant dense<0.000000e+00> : vector<16x16x16xf32>
    %56 = tpu.matmul %53, %55, %cst_38 {dimension_numbers = #tpu.dot_dimension_numbers<[2], [0], [0, 1], [1], [0, 0, 0, 1, 1, 1], [], []>} : vector<16x16x48xf32>, vector<48x16xf32>, vector<16x16x16xf32> -> vector<16x16x16xf32>
    "tpu.trace_stop"() : () -> ()
    %57 = arith.addf %52, %56 : vector<16x16x16xf32>
    %cst_39 = arith.constant 0.000000e+00 : f32
    %58 = vector.broadcast %cst_39 : f32 to vector<16x16x16xf32>
    %59 = arith.maximumf %57, %58 : vector<16x16x16xf32>
    %c1_40 = arith.constant 1 : index
    %c1_41 = arith.constant 1 : index
    %c0_42 = arith.constant 0 : index
    %60 = vector.load %arg5[%c1_40, %c1_41, %c0_42] : memref<18x18x16xf32, #tpu.memory_space<vmem>>, vector<16x16x16xf32>
    tpu.vector_store %arg5[%c1_40, %c1_41, %c0_42], %59 {strides = array<i32>} : memref<18x18x16xf32, #tpu.memory_space<vmem>>, vector<16x16x16xf32>,
    %c2 = arith.constant 2 : index
    %c0_43 = arith.constant 0 : index
    %c0_44 = arith.constant 0 : index
    %c0_45 = arith.constant 0 : index
    %61 = vector.load %arg2[%c2, %c0_43, %c0_44, %c0_45] : memref<3x3x48x16xf32, #tpu.memory_space<vmem>>, vector<1x3x48x16xf32>
    %62 = vector.shape_cast %61 : vector<1x3x48x16xf32> to vector<3x48x16xf32>
    %c0_46 = arith.constant 0 : index
    %c0_47 = arith.constant 0 : index
    %c0_48 = arith.constant 0 : index
    %63 = vector.load %arg5[%c0_46, %c0_47, %c0_48] : memref<18x18x16xf32, #tpu.memory_space<vmem>>, vector<18x18x16xf32>
    %64 = vector.extract_strided_slice %63 {offsets = [0, 0, 0], sizes = [18, 16, 16], strides = [1, 1, 1]} : vector<18x18x16xf32> to vector<18x16x16xf32>
    %65 = vector.extract_strided_slice %63 {offsets = [0, 1, 0], sizes = [18, 16, 16], strides = [1, 1, 1]} : vector<18x18x16xf32> to vector<18x16x16xf32>
    %66 = vector.extract_strided_slice %63 {offsets = [0, 2, 0], sizes = [18, 16, 16], strides = [1, 1, 1]} : vector<18x18x16xf32> to vector<18x16x16xf32>
    %67 = tpu.concatenate %64, %65, %66 in 2 : vector<18x16x16xf32>, vector<18x16x16xf32>, vector<18x16x16xf32> -> vector<18x16x48xf32>
    %cst_49 = arith.constant 0.000000e+00 : f32
    %68 = vector.broadcast %cst_49 : f32 to vector<16x16x16xf32>
    %69 = vector.extract_strided_slice %67 {offsets = [0, 0, 0], sizes = [16, 16, 48], strides = [1, 1, 1]} : vector<18x16x48xf32> to vector<16x16x48xf32>
    %70 = vector.extract_strided_slice %62 {offsets = [0, 0, 0], sizes = [1, 48, 16], strides = [1, 1, 1]} : vector<3x48x16xf32> to vector<1x48x16xf32>
    %71 = vector.shape_cast %70 : vector<1x48x16xf32> to vector<48x16xf32>
    "tpu.trace_start"() <{level = 10 : i32, message = "hwk,ko->hwo"}> : () -> ()
    %cst_50 = arith.constant dense<0.000000e+00> : vector<16x16x16xf32>
    %72 = tpu.matmul %69, %71, %cst_50 {dimension_numbers = #tpu.dot_dimension_numbers<[2], [0], [0, 1], [1], [0, 0, 0, 1, 1, 1], [], []>} : vector<16x16x48xf32>, vector<48x16xf32>, vector<16x16x16xf32> -> vector<16x16x16xf32>
    "tpu.trace_stop"() : () -> ()
    %73 = arith.addf %68, %72 : vector<16x16x16xf32>
    %74 = vector.extract_strided_slice %67 {offsets = [1, 0, 0], sizes = [16, 16, 48], strides = [1, 1, 1]} : vector<18x16x48xf32> to vector<16x16x48xf32>
    %75 = vector.extract_strided_slice %62 {offsets = [1, 0, 0], sizes = [1, 48, 16], strides = [1, 1, 1]} : vector<3x48x16xf32> to vector<1x48x16xf32>
    %76 = vector.shape_cast %75 : vector<1x48x16xf32> to vector<48x16xf32>
    "tpu.trace_start"() <{level = 10 : i32, message = "hwk,ko->hwo"}> : () -> ()
    %cst_51 = arith.constant dense<0.000000e+00> : vector<16x16x16xf32>
    %77 = tpu.matmul %74, %76, %cst_51 {dimension_numbers = #tpu.dot_dimension_numbers<[2], [0], [0, 1], [1], [0, 0, 0, 1, 1, 1], [], []>} : vector<16x16x48xf32>, vector<48x16xf32>, vector<16x16x16xf32> -> vector<16x16x16xf32>
    "tpu.trace_stop"() : () -> ()
    %78 = arith.addf %73, %77 : vector<16x16x16xf32>
    %79 = vector.extract_strided_slice %67 {offsets = [2, 0, 0], sizes = [16, 16, 48], strides = [1, 1, 1]} : vector<18x16x48xf32> to vector<16x16x48xf32>
    %80 = vector.extract_strided_slice %62 {offsets = [2, 0, 0], sizes = [1, 48, 16], strides = [1, 1, 1]} : vector<3x48x16xf32> to vector<1x48x16xf32>
    %81 = vector.shape_cast %80 : vector<1x48x16xf32> to vector<48x16xf32>
    "tpu.trace_start"() <{level = 10 : i32, message = "hwk,ko->hwo"}> : () -> ()
    %cst_52 = arith.constant dense<0.000000e+00> : vector<16x16x16xf32>
    %82 = tpu.matmul %79, %81, %cst_52 {dimension_numbers = #tpu.dot_dimension_numbers<[2], [0], [0, 1], [1], [0, 0, 0, 1, 1, 1], [], []>} : vector<16x16x48xf32>, vector<48x16xf32>, vector<16x16x16xf32> -> vector<16x16x16xf32>
    "tpu.trace_stop"() : () -> ()
    %83 = arith.addf %78, %82 : vector<16x16x16xf32>
    %cst_53 = arith.constant 0.000000e+00 : f32
    %84 = vector.broadcast %cst_53 : f32 to vector<16x16x16xf32>
    %85 = arith.maximumf %83, %84 : vector<16x16x16xf32>
    %c1_54 = arith.constant 1 : index
    %c1_55 = arith.constant 1 : index
    %c0_56 = arith.constant 0 : index
    %86 = vector.load %arg6[%c1_54, %c1_55, %c0_56] : memref<18x18x16xf32, #tpu.memory_space<vmem>>, vector<16x16x16xf32>
    tpu.vector_store %arg6[%c1_54, %c1_55, %c0_56], %85 {strides = array<i32>} : memref<18x18x16xf32, #tpu.memory_space<vmem>>, vector<16x16x16xf32>,
    %c0_57 = arith.constant 0 : index
    %c0_58 = arith.constant 0 : index
    %c0_59 = arith.constant 0 : index
    %87 = vector.load %arg3[%c0_57, %c0_58, %c0_59] : memref<3x48x16xf32, #tpu.memory_space<vmem>>, vector<3x48x16xf32>
    %c0_60 = arith.constant 0 : index
    %c0_61 = arith.constant 0 : index
    %c0_62 = arith.constant 0 : index
    %88 = vector.load %arg6[%c0_60, %c0_61, %c0_62] : memref<18x18x16xf32, #tpu.memory_space<vmem>>, vector<18x18x16xf32>
    %89 = vector.extract_strided_slice %88 {offsets = [0, 0, 0], sizes = [18, 16, 16], strides = [1, 1, 1]} : vector<18x18x16xf32> to vector<18x16x16xf32>
    %90 = vector.extract_strided_slice %88 {offsets = [0, 1, 0], sizes = [18, 16, 16], strides = [1, 1, 1]} : vector<18x18x16xf32> to vector<18x16x16xf32>
    %91 = vector.extract_strided_slice %88 {offsets = [0, 2, 0], sizes = [18, 16, 16], strides = [1, 1, 1]} : vector<18x18x16xf32> to vector<18x16x16xf32>
    %92 = tpu.concatenate %89, %90, %91 in 2 : vector<18x16x16xf32>, vector<18x16x16xf32>, vector<18x16x16xf32> -> vector<18x16x48xf32>
    %cst_63 = arith.constant 0.000000e+00 : f32
    %93 = vector.broadcast %cst_63 : f32 to vector<16x16x16xf32>
    %94 = vector.extract_strided_slice %92 {offsets = [0, 0, 0], sizes = [16, 16, 48], strides = [1, 1, 1]} : vector<18x16x48xf32> to vector<16x16x48xf32>
    %95 = vector.extract_strided_slice %87 {offsets = [0, 0, 0], sizes = [1, 48, 16], strides = [1, 1, 1]} : vector<3x48x16xf32> to vector<1x48x16xf32>
    %96 = vector.shape_cast %95 : vector<1x48x16xf32> to vector<48x16xf32>
    "tpu.trace_start"() <{level = 10 : i32, message = "hwk,ko->hwo"}> : () -> ()
    %cst_64 = arith.constant dense<0.000000e+00> : vector<16x16x16xf32>
    %97 = tpu.matmul %94, %96, %cst_64 {dimension_numbers = #tpu.dot_dimension_numbers<[2], [0], [0, 1], [1], [0, 0, 0, 1, 1, 1], [], []>} : vector<16x16x48xf32>, vector<48x16xf32>, vector<16x16x16xf32> -> vector<16x16x16xf32>
    "tpu.trace_stop"() : () -> ()
    %98 = arith.addf %93, %97 : vector<16x16x16xf32>
    %99 = vector.extract_strided_slice %92 {offsets = [1, 0, 0], sizes = [16, 16, 48], strides = [1, 1, 1]} : vector<18x16x48xf32> to vector<16x16x48xf32>
    %100 = vector.extract_strided_slice %87 {offsets = [1, 0, 0], sizes = [1, 48, 16], strides = [1, 1, 1]} : vector<3x48x16xf32> to vector<1x48x16xf32>
    %101 = vector.shape_cast %100 : vector<1x48x16xf32> to vector<48x16xf32>
    "tpu.trace_start"() <{level = 10 : i32, message = "hwk,ko->hwo"}> : () -> ()
    %cst_65 = arith.constant dense<0.000000e+00> : vector<16x16x16xf32>
    %102 = tpu.matmul %99, %101, %cst_65 {dimension_numbers = #tpu.dot_dimension_numbers<[2], [0], [0, 1], [1], [0, 0, 0, 1, 1, 1], [], []>} : vector<16x16x48xf32>, vector<48x16xf32>, vector<16x16x16xf32> -> vector<16x16x16xf32>
    "tpu.trace_stop"() : () -> ()
    %103 = arith.addf %98, %102 : vector<16x16x16xf32>
    %104 = vector.extract_strided_slice %92 {offsets = [2, 0, 0], sizes = [16, 16, 48], strides = [1, 1, 1]} : vector<18x16x48xf32> to vector<16x16x48xf32>
    %105 = vector.extract_strided_slice %87 {offsets = [2, 0, 0], sizes = [1, 48, 16], strides = [1, 1, 1]} : vector<3x48x16xf32> to vector<1x48x16xf32>
    %106 = vector.shape_cast %105 : vector<1x48x16xf32> to vector<48x16xf32>
    "tpu.trace_start"() <{level = 10 : i32, message = "hwk,ko->hwo"}> : () -> ()
    %cst_66 = arith.constant dense<0.000000e+00> : vector<16x16x16xf32>
    %107 = tpu.matmul %104, %106, %cst_66 {dimension_numbers = #tpu.dot_dimension_numbers<[2], [0], [0, 1], [1], [0, 0, 0, 1, 1, 1], [], []>} : vector<16x16x48xf32>, vector<48x16xf32>, vector<16x16x16xf32> -> vector<16x16x16xf32>
    "tpu.trace_stop"() : () -> ()
    %108 = arith.addf %103, %107 : vector<16x16x16xf32>
    %cst_67 = arith.constant 0.000000e+00 : f32
    %109 = vector.broadcast %cst_67 : f32 to vector<16x16x13xf32>
    %110 = tpu.concatenate %5, %109 in 2 : vector<16x16x3xf32>, vector<16x16x13xf32> -> vector<16x16x16xf32>
    %111 = arith.addf %108, %110 : vector<16x16x16xf32>
    %c0_68 = arith.constant 0 : index
    %c0_69 = arith.constant 0 : index
    %c0_70 = arith.constant 0 : index
    %c0_71 = arith.constant 0 : index
    %112 = vector.load %arg4[%c0_68, %c0_69, %c0_70, %c0_71] : memref<1x16x16x16xf32, #tpu.memory_space<vmem>>, vector<1x16x16x16xf32>
    %113 = vector.shape_cast %112 : vector<1x16x16x16xf32> to vector<16x16x16xf32>
    %114 = vector.shape_cast %111 : vector<16x16x16xf32> to vector<1x16x16x16xf32>
    tpu.vector_store %arg4[%c0_68, %c0_69, %c0_70, %c0_71], %114 {strides = array<i32>} : memref<1x16x16x16xf32, #tpu.memory_space<vmem>>, vector<1x16x16x16xf32>,
    return
  }
  func.func @transform_0(%arg0: i32) -> (i32, i32, i32, i32) {
    %c0_i32 = arith.constant 0 : i32
    %c0_i32_0 = arith.constant 0 : i32
    %c0_i32_1 = arith.constant 0 : i32
    %c0_i32_2 = arith.constant 0 : i32
    return %arg0, %c0_i32, %c0_i32_0, %c0_i32_1 : i32, i32, i32, i32
  }
  func.func @transform_1(%arg0: i32) -> (i32, i32, i32, i32) {
    %c0_i32 = arith.constant 0 : i32
    %c0_i32_0 = arith.constant 0 : i32
    %c0_i32_1 = arith.constant 0 : i32
    %c0_i32_2 = arith.constant 0 : i32
    %c0_i32_3 = arith.constant 0 : i32
    return %c0_i32, %c0_i32_0, %c0_i32_1, %c0_i32_2 : i32, i32, i32, i32
  }
  func.func @transform_2(%arg0: i32) -> (i32, i32, i32) {
    %c0_i32 = arith.constant 0 : i32
    %c0_i32_0 = arith.constant 0 : i32
    %c0_i32_1 = arith.constant 0 : i32
    %c0_i32_2 = arith.constant 0 : i32
    return %c0_i32, %c0_i32_0, %c0_i32_1 : i32, i32, i32
  }
  func.func @transform_3(%arg0: i32) -> (i32, i32, i32, i32) {
    %c0_i32 = arith.constant 0 : i32
    %c0_i32_0 = arith.constant 0 : i32
    %c0_i32_1 = arith.constant 0 : i32
    %c0_i32_2 = arith.constant 0 : i32
    return %arg0, %c0_i32, %c0_i32_0, %c0_i32_1 : i32, i32, i32, i32
  }
}

</mosaic_0001>

<bundles_post_ra>
// kernel: tpu_custom_call.1
= control target key start
LH: loop header
LB: loop body
LE: loop exit
PB: predicated region body
PF: predicated region fallthrough
CT: control target
= control target key end

     0   :  { %8 = vsyncpa [#allocation5], 0  ;;  %s9022_s0 = inlined_call_operand.vmem [shape: f32[2,16,16,3], index: 0, kind: input, shape index: {}]   ;;  %s9023_s1 = inlined_call_operand.vmem [shape: f32[3,3,48,16], index: 1, kind: input, shape index: {}]   ;;  %s9024_s2 = inlined_call_operand.vmem [shape: f32[3,48,16], index: 2, kind: input, shape index: {}]   ;;  %s9025_s3 = inlined_call_operand.hbm [shape: f32[2,16,16,16], index: 3, kind: output, shape index: {}]  }
   0x1   :  { %10 = vsyncpa [#allocation5 + $0x1], 0  ;;  %s5578_s12 = smov 0   ;;  %s5580_s13 = smov 0  }
   0x2   :  { %s5582_s14 = smov 0   ;;  %s5584_s15 = smov 0  }
   0x3 LB: > { %s5599_s16 = sadd.s32 4294967295, %s5551_s15   ;;  %s5010_s17 = sadd.s32 4294967294, %s5551_s15   ;;  %s5551_s15 = sphi %s5584_s15, %s9094_s15   ;;  %s5547_s14 = sphi %s5582_s14, %s9093_s14   ;;  %s5543_s13 = sphi %s5580_s13, %s9092_s13   ;;  %s5539_s12 = sphi %s5578_s12, %s9091_s12  }
   0x4   : > { %s5603_s18 = sadd.s32 1, %s5551_s15   ;;  %s91_s19 = sadd.s32 1, %s5547_s14 }
   0x5   : > { %s88_s20 = ssub.s32 %s5551_s15, %s5603_s18  ;;  %p101_p0 = scmp.ne.s32.totalorder %s5547_s14, %s5543_s13 }
   0x6   : > { %p89_p1 = scmp.eq.s32.totalorder %s88_s20, 0  ;;  %p102_p2 = scmp.eq.s32.totalorder %s5599_s16, 1 }
   0x7   : > { %p107_p3 = scmp.ne.s32.totalorder %s5543_s13, %s5539_s12  ;;  %p108_p4 = scmp.eq.s32.totalorder %s5010_s17, 1 }
   0x8   : > { %s5614_s21 = scalar_select %p89_p1, %s5547_s14, %s91_s19  }
   0x9   : > { %p5616_p5 = por %p102_p2, %p101_p0  ;;  %p5620_p6 = por %p108_p4, %p107_p3 }
   0xa   : > { %p5013_p7 = scmp.ge.s32.totalorder %s5551_s15, 1  ;;  %p140_p8 = scmp.lt.s32.totalorder %s5551_s15, 3 }
   0xc   : > { %p141_p9 = pnand %p5013_p7, %p140_p8 }
   0xe   : > { %144 = sbr.rel (%p141_p9) target bundleno = 1668 (0x684), region = 32 }
  0x13   : > { %p164_p10 = scmp.lt.s32.totalorder %s5599_s16, 1  ;;  %vm169_vm0 = vcmask 130048   ;;  %vm172_vm1 = vcmask 123904   ;;  %v5553_v0 = vmov 0.0   ;;  %vm311_vm2 = vcmask 23552   ;;  %s5554_s29 = smov 16  }
  0x14   : > { %174 = vst.msk [vmem:[#allocation2 + $0x18] sm:$0xff] %vm169_vm0, %v5553_v0  ;;  %vm503_vm3 = vcmask 1046528   ;;  %vm702_vm4 = vcmask 1045504   ;;  %s5555_s30 = smov 32   ;;  %vm937_vm5 = vcmask 261120   ;;  %vm974_vm6 = vcmask 392192  }
  0x15   : > { %s165_s24 = scalar_select %p164_p10, %s5599_s16, 1  ;;  %175 = vst.msk [vmem:[#allocation2 + $0x20] sm:$0xff] %vm169_vm0, %v5553_v0 }
  0x16   : > { %176 = vst.msk [vmem:[#allocation2 + $0x28] sm:$0x3] %vm172_vm1, %v5553_v0  ;;  %s161_s6 = sand.u32 1, %s5543_s13   ;;  %s5509_s26 = scalar_lea.hbm %s9025_s3, 512 }
  0x17   : > { %s5442_s25 = sshll.u32 %s165_s24, 8  ;;  %170 = vst.msk [vmem:[#allocation2] sm:$0xff] %vm169_vm0, %v5553_v0  ;;  %s5014_s7 = sshll.u32 %s161_s6, 8 }
  0x18   : > { %s5639_s28 = scalar_lea.vmem %s9022_s0, %s5442_s25  ;;  %171 = vst.msk [vmem:[#allocation2 + $0x8] sm:$0xff] %vm169_vm0, %v5553_v0  ;;  %s8750_s8 = scalar_lea.vmem [#allocation4], %s5014_s7 }
  0x19   : > { %v279_v1 = vld [vmem:[%s5639_s28] sm:$0xff]  ;;  %v280_v2 = vld [vmem:[%s5639_s28 + $0x8] sm:$0xff]  ;;  %173 = vst.msk [vmem:[#allocation2 + $0x10] sm:$0x3] %vm172_vm1, %v5553_v0  ;;  %v281_v29 = vld [vmem:[%s5639_s28 + $0x10] sm:$0xff]  ;;  %s4945_s11 = sshll.u32 %s8750_s8, 4  ;;  %s4946_s11 = int_to_ptr.vmem [resolvable:$true] %s4945_s11 }
  0x1a   : > { %v5648_v3 = vsel %vm311_vm2, %v279_v1, 0.0  ;;  %v5651_v4 = vsel %vm311_vm2, %v280_v2, 0.0  ;;  %177 = vst.msk [vmem:[#allocation2 + $0x30] sm:$0xff] %vm169_vm0, %v5553_v0  ;;  %v282_v30 = vld [vmem:[%s5639_s28 + $0x18] sm:$0xff]  ;;  %v283_v31 = vld [vmem:[%s5639_s28 + $0x20] sm:$0xff]  ;;  %v5900_v32 = vsel %vm311_vm2, %v281_v29, 0.0 }
  0x1b   : > { %345 = vst.msk [vmem:[#allocation2 + $0x19] sm:$0xff] %vm169_vm0, %v5648_v3  ;;  %v284_v33 = vld [vmem:[%s5639_s28 + $0x28] sm:$0xff]  ;;  %v5906_v34 = vsel %vm311_vm2, %v282_v30, 0.0  ;;  %v285_v35 = vld [vmem:[%s5639_s28 + $0x30] sm:$0xff]  ;;  %v5912_v36 = vsel %vm311_vm2, %v283_v31, 0.0  ;;  %v286_v37 = vld [vmem:[%s5639_s28 + $0x38] sm:$0xff] }
  0x1c   : > { %346 = vst.msk [vmem:[#allocation2 + $0x21] sm:$0xff] %vm169_vm0, %v5651_v4  ;;  %v5918_v38 = vsel %vm311_vm2, %v284_v33, 0.0  ;;  %v5923_v39 = vsel %vm311_vm2, %v285_v35, 0.0  ;;  %v5928_v40 = vsel %vm311_vm2, %v286_v37, 0.0  ;;  %v287_v54 = vld [vmem:[%s5639_s28 + $0x40] sm:$0xff]  ;;  %v288_v55 = vld [vmem:[%s5639_s28 + $0x48] sm:$0xff] }
  0x1d   : > { %178 = vst.msk [vmem:[#allocation2 + $0x38] sm:$0xff] %vm169_vm0, %v5553_v0  ;;  %v5965_v62 = vsel %vm311_vm2, %v287_v54, 0.0  ;;  %v5968_v63 = vsel %vm311_vm2, %v288_v55, 0.0 }
  0x1e   : > { %179 = vst.msk [vmem:[#allocation2 + $0x40] sm:$0x3] %vm172_vm1, %v5553_v0  ;;  %v5707_v18 = vld [vmem:[#allocation2] sm:$0xff] }
  0x1f   : > { %180 = vst.msk [vmem:[#allocation2 + $0x48] sm:$0xff] %vm169_vm0, %v5553_v0  ;;  %v5709_v19 = vld [vmem:[#allocation2 + $0x8] sm:$0xff]  ;;  %v703_v20 = vrot.slane %v5707_v18, 2  ;;  %v504_v22 = vrot.slane %v5707_v18, 1 }
  0x20   : > { %181 = vst.msk [vmem:[#allocation2 + $0x50] sm:$0xff] %vm169_vm0, %v5553_v0  ;;  %v704_v21 = vrot.slane %v5709_v19, 2  ;;  %v505_v23 = vrot.slane %v5709_v19, 1  ;;  %v5851_v26 = vld [vmem:[#allocation2 + $0x10] sm:$0x3] }
  0x21   : > { %182 = vst.msk [vmem:[#allocation2 + $0x58] sm:$0x3] %vm172_vm1, %v5553_v0  ;;  %v507_v27 = vrot.slane %v5851_v26, 1 }
  0x22   : > { %183 = vst.msk [vmem:[#allocation2 + $0x60] sm:$0xff] %vm169_vm0, %v5553_v0  ;;  %v5671_v5 = vld [vmem:[#allocation2 + $0x18] sm:$0xff]  ;;  %v705_v24 = vsel %vm702_vm4, %v703_v20, %v704_v21  ;;  %v506_v25 = vsel %vm503_vm3, %v504_v22, %v505_v23 }
  0x23   : > { %v5673_v6 = vld [vmem:[#allocation2 + $0x20] sm:$0xff]  ;;  %v400_v7 = vld [vmem:[#allocation2 + $0x28] sm:$0x3]  ;;  %184 = vst.msk [vmem:[#allocation2 + $0x68] sm:$0xff] %vm169_vm0, %v5553_v0  ;;  %v509_v8 = vrot.slane %v5671_v5, 1  ;;  %v708_v15 = vrot.slane %v5671_v5, 2  ;;  %v508_v28 = vsel %vm503_vm3, %v505_v23, %v507_v27 }
  0x24   : > { %v510_v9 = vrot.slane %v5673_v6, 1  ;;  %v512_v10 = vrot.slane %v400_v7, 1  ;;  %185 = vst.msk [vmem:[#allocation2 + $0x70] sm:$0x3] %vm172_vm1, %v5553_v0  ;;  %v709_v13 = vrot.slane %v5673_v6, 2  ;;  %v711_v14 = vrot.slane %v400_v7, 2 }
  0x25   : > { %186 = vst.msk [vmem:[#allocation2 + $0x78] sm:$0xff] %vm169_vm0, %v5553_v0  ;;  %v292_v27 = vld [vmem:[%s5639_s28 + $0x68] sm:$0xff] }
  0x26   : > { %v513_v11 = vsel %vm503_vm3, %v510_v9, %v512_v10  ;;  %187 = vst.msk [vmem:[#allocation2 + $0x80] sm:$0xff] %vm169_vm0, %v5553_v0  ;;  %v511_v12 = vsel %vm503_vm3, %v509_v8, %v510_v9  ;;  %v712_v16 = vsel %vm702_vm4, %v709_v13, %v711_v14  ;;  %v710_v17 = vsel %vm702_vm4, %v708_v15, %v709_v13  ;;  %v289_v10 = vld [vmem:[%s5639_s28 + $0x50] sm:$0xff] }
  0x27   : > { %600 = vrot.lane.b32.xlu1 %v513_v11, %s5554_s29  ;;  %188 = vst.msk [vmem:[#allocation2 + $0x88] sm:$0x3] %vm172_vm1, %v5553_v0  ;;  %598 = vrot.lane.b32.xlu0 %v511_v12, %s5554_s29  ;;  %v290_v11 = vld [vmem:[%s5639_s28 + $0x58] sm:$0xff]  ;;  %v5986_v15 = vsel %vm311_vm2, %v289_v10, 0.0  ;;  %v6011_v33 = vsel %vm311_vm2, %v292_v27, 0.0  ;;  %v293_v27 = vld [vmem:[%s5639_s28 + $0x70] sm:$0xff] }
  0x28   : > { %189 = vst.msk [vmem:[#allocation2 + $0x90] sm:$0xff] %vm169_vm0, %v5553_v0 }
  0x29   : > { %190 = vst.msk [vmem:[#allocation2 + $0x98] sm:$0xff] %vm169_vm0, %v5553_v0 }
  0x2a   : > { %191 = vst.msk [vmem:[#allocation2 + $0xa0] sm:$0x3] %vm172_vm1, %v5553_v0 }
  0x2b   : > { %192 = vst.msk [vmem:[#allocation2 + $0xa8] sm:$0xff] %vm169_vm0, %v5553_v0 }
  0x2c   : > { %193 = vst.msk [vmem:[#allocation2 + $0xb0] sm:$0xff] %vm169_vm0, %v5553_v0 }
  0x2d   : > { %194 = vst.msk [vmem:[#allocation2 + $0xb8] sm:$0x3] %vm172_vm1, %v5553_v0 }
  0x2e   : > { %195 = vst.msk [vmem:[#allocation2 + $0xc0] sm:$0xff] %vm169_vm0, %v5553_v0 }
  0x2f   : > { %196 = vst.msk [vmem:[#allocation2 + $0xc8] sm:$0xff] %vm169_vm0, %v5553_v0  ;;  %799 = vrot.lane.b32.xlu1 %v712_v16, %s5555_s30  ;;  %797 = vrot.lane.b32.xlu0 %v710_v17, %s5555_s30  ;;  %v5989_v16 = vsel %vm311_vm2, %v290_v11, 0.0 }
  0x30   : > { %197 = vst.msk [vmem:[#allocation2 + $0xd0] sm:$0x3] %vm172_vm1, %v5553_v0 }
  0x31   : > { %198 = vst.msk [vmem:[#allocation2 + $0xd8] sm:$0xff] %vm169_vm0, %v5553_v0 }
  0x32   : > { %199 = vst.msk [vmem:[#allocation2 + $0xe0] sm:$0xff] %vm169_vm0, %v5553_v0 }
  0x33   : > { %200 = vst.msk [vmem:[#allocation2 + $0xe8] sm:$0x3] %vm172_vm1, %v5553_v0 }
  0x34   : > { %201 = vst.msk [vmem:[#allocation2 + $0xf0] sm:$0xff] %vm169_vm0, %v5553_v0 }
  0x35   : > { %202 = vst.msk [vmem:[#allocation2 + $0xf8] sm:$0xff] %vm169_vm0, %v5553_v0 }
  0x36   : > { %203 = vst.msk [vmem:[#allocation2 + $0x100] sm:$0x3] %vm172_vm1, %v5553_v0 }
  0x37   : > { %204 = vst.msk [vmem:[#allocation2 + $0x108] sm:$0xff] %vm169_vm0, %v5553_v0  ;;  %793 = vrot.lane.b32.xlu1 %v705_v24, %s5555_s30  ;;  %594 = vrot.lane.b32.xlu0 %v506_v25, %s5554_s29  ;;  %v291_v25 = vld [vmem:[%s5639_s28 + $0x60] sm:$0xff] }
  0x38   : > { %205 = vst.msk [vmem:[#allocation2 + $0x110] sm:$0xff] %vm169_vm0, %v5553_v0  ;;  %v6008_v31 = vsel %vm311_vm2, %v291_v25, 0.0 }
  0x39   : > { %206 = vst.msk [vmem:[#allocation2 + $0x118] sm:$0x3] %vm172_vm1, %v5553_v0 }
  0x3a   : > { %207 = vst.msk [vmem:[#allocation2 + $0x120] sm:$0xff] %vm169_vm0, %v5553_v0 }
  0x3b   : > { %208 = vst.msk [vmem:[#allocation2 + $0x128] sm:$0xff] %vm169_vm0, %v5553_v0 }
  0x3c   : > { %209 = vst.msk [vmem:[#allocation2 + $0x130] sm:$0x3] %vm172_vm1, %v5553_v0 }
  0x3d   : > { %210 = vst.msk [vmem:[#allocation2 + $0x138] sm:$0xff] %vm169_vm0, %v5553_v0 }
  0x3e   : > { %211 = vst.msk [vmem:[#allocation2 + $0x140] sm:$0xff] %vm169_vm0, %v5553_v0 }
  0x3f   : > { %212 = vst.msk [vmem:[#allocation2 + $0x148] sm:$0x3] %vm172_vm1, %v5553_v0  ;;  %596 = vrot.lane.b32.xlu1 %v508_v28, %s5554_s29  ;;  %v706_v28 = vrot.slane %v5851_v26, 2 }
  0x40   : > { %213 = vst.msk [vmem:[#allocation2 + $0x150] sm:$0xff] %vm169_vm0, %v5553_v0 }
  0x41   : > { %214 = vst.msk [vmem:[#allocation2 + $0x158] sm:$0xff] %vm169_vm0, %v5553_v0 }
  0x42   : > { %215 = vst.msk [vmem:[#allocation2 + $0x160] sm:$0x3] %vm172_vm1, %v5553_v0 }
  0x43   : > { %216 = vst.msk [vmem:[#allocation2 + $0x168] sm:$0xff] %vm169_vm0, %v5553_v0 }
  0x44   : > { %217 = vst.msk [vmem:[#allocation2 + $0x170] sm:$0xff] %vm169_vm0, %v5553_v0 }
  0x45   : > { %218 = vst.msk [vmem:[#allocation2 + $0x178] sm:$0x3] %vm172_vm1, %v5553_v0 }
  0x46   : > { %219 = vst.msk [vmem:[#allocation2 + $0x180] sm:$0xff] %vm169_vm0, %v5553_v0 }
  0x47   : > { %220 = vst.msk [vmem:[#allocation2 + $0x188] sm:$0xff] %vm169_vm0, %v5553_v0 }
  0x48   : > { %221 = vst.msk [vmem:[#allocation2 + $0x190] sm:$0x3] %vm172_vm1, %v5553_v0 }
  0x49   : > { %222 = vst.msk [vmem:[#allocation2 + $0x198] sm:$0xff] %vm169_vm0, %v5553_v0 }
  0x4a   : > { %223 = vst.msk [vmem:[#allocation2 + $0x1a0] sm:$0xff] %vm169_vm0, %v5553_v0 }
  0x4b   : > { %224 = vst.msk [vmem:[#allocation2 + $0x1a8] sm:$0x3] %vm172_vm1, %v5553_v0 }
  0x4c   : > { %225 = vst.msk [vmem:[#allocation3] sm:$0xff] %vm169_vm0, %v5553_v0 }
  0x4d   : > { %226 = vst.msk [vmem:[#allocation3 + $0x8] sm:$0xff] %vm169_vm0, %v5553_v0 }
  0x4e   : > { %227 = vst.msk [vmem:[#allocation3 + $0x10] sm:$0x3] %vm172_vm1, %v5553_v0 }
  0x4f   : > { %228 = vst.msk [vmem:[#allocation3 + $0x18] sm:$0xff] %vm169_vm0, %v5553_v0 }
  0x50   : > { %229 = vst.msk [vmem:[#allocation3 + $0x20] sm:$0xff] %vm169_vm0, %v5553_v0 }
  0x51   : > { %230 = vst.msk [vmem:[#allocation3 + $0x28] sm:$0x3] %vm172_vm1, %v5553_v0 }
  0x52   : > { %231 = vst.msk [vmem:[#allocation3 + $0x30] sm:$0xff] %vm169_vm0, %v5553_v0 }
  0x53   : > { %232 = vst.msk [vmem:[#allocation3 + $0x38] sm:$0xff] %vm169_vm0, %v5553_v0 }
  0x54   : > { %233 = vst.msk [vmem:[#allocation3 + $0x40] sm:$0x3] %vm172_vm1, %v5553_v0 }
  0x55   : > { %234 = vst.msk [vmem:[#allocation3 + $0x48] sm:$0xff] %vm169_vm0, %v5553_v0 }
  0x56   : > { %235 = vst.msk [vmem:[#allocation3 + $0x50] sm:$0xff] %vm169_vm0, %v5553_v0 }
  0x57   : > { %236 = vst.msk [vmem:[#allocation3 + $0x58] sm:$0x3] %vm172_vm1, %v5553_v0 }
  0x58   : > { %237 = vst.msk [vmem:[#allocation3 + $0x60] sm:$0xff] %vm169_vm0, %v5553_v0 }
  0x59   : > { %238 = vst.msk [vmem:[#allocation3 + $0x68] sm:$0xff] %vm169_vm0, %v5553_v0 }
  0x5a   : > { %239 = vst.msk [vmem:[#allocation3 + $0x70] sm:$0x3] %vm172_vm1, %v5553_v0 }
  0x5b   : > { %240 = vst.msk [vmem:[#allocation3 + $0x78] sm:$0xff] %vm169_vm0, %v5553_v0 }
  0x5c   : > { %241 = vst.msk [vmem:[#allocation3 + $0x80] sm:$0xff] %vm169_vm0, %v5553_v0 }
  0x5d   : > { %242 = vst.msk [vmem:[#allocation3 + $0x88] sm:$0x3] %vm172_vm1, %v5553_v0 }
  0x5e   : > { %243 = vst.msk [vmem:[#allocation3 + $0x90] sm:$0xff] %vm169_vm0, %v5553_v0 }
  0x5f   : > { %244 = vst.msk [vmem:[#allocation3 + $0x98] sm:$0xff] %vm169_vm0, %v5553_v0 }
  0x60   : > { %245 = vst.msk [vmem:[#allocation3 + $0xa0] sm:$0x3] %vm172_vm1, %v5553_v0 }
  0x61   : > { %246 = vst.msk [vmem:[#allocation3 + $0xa8] sm:$0xff] %vm169_vm0, %v5553_v0 }
  0x62   : > { %247 = vst.msk [vmem:[#allocation3 + $0xb0] sm:$0xff] %vm169_vm0, %v5553_v0 }
  0x63   : > { %248 = vst.msk [vmem:[#allocation3 + $0xb8] sm:$0x3] %vm172_vm1, %v5553_v0 }
  0x64   : > { %249 = vst.msk [vmem:[#allocation3 + $0xc0] sm:$0xff] %vm169_vm0, %v5553_v0 }
  0x65   : > { %250 = vst.msk [vmem:[#allocation3 + $0xc8] sm:$0xff] %vm169_vm0, %v5553_v0 }
  0x66   : > { %251 = vst.msk [vmem:[#allocation3 + $0xd0] sm:$0x3] %vm172_vm1, %v5553_v0 }
  0x67   : > { %252 = vst.msk [vmem:[#allocation3 + $0xd8] sm:$0xff] %vm169_vm0, %v5553_v0 }
  0x68   : > { %253 = vst.msk [vmem:[#allocation3 + $0xe0] sm:$0xff] %vm169_vm0, %v5553_v0 }
  0x69   : > { %254 = vst.msk [vmem:[#allocation3 + $0xe8] sm:$0x3] %vm172_vm1, %v5553_v0 }
  0x6a   : > { %255 = vst.msk [vmem:[#allocation3 + $0xf0] sm:$0xff] %vm169_vm0, %v5553_v0 }
  0x6b   : > { %256 = vst.msk [vmem:[#allocation3 + $0xf8] sm:$0xff] %vm169_vm0, %v5553_v0 }
  0x6c   : > { %257 = vst.msk [vmem:[#allocation3 + $0x100] sm:$0x3] %vm172_vm1, %v5553_v0 }
  0x6d   : > { %258 = vst.msk [vmem:[#allocation3 + $0x108] sm:$0xff] %vm169_vm0, %v5553_v0 }
  0x6e   : > { %259 = vst.msk [vmem:[#allocation3 + $0x110] sm:$0xff] %vm169_vm0, %v5553_v0 }
  0x6f   : > { %260 = vst.msk [vmem:[#allocation3 + $0x118] sm:$0x3] %vm172_vm1, %v5553_v0 }
  0x70   : > { %261 = vst.msk [vmem:[#allocation3 + $0x120] sm:$0xff] %vm169_vm0, %v5553_v0 }
  0x71   : > { %262 = vst.msk [vmem:[#allocation3 + $0x128] sm:$0xff] %vm169_vm0, %v5553_v0 }
  0x72   : > { %263 = vst.msk [vmem:[#allocation3 + $0x130] sm:$0x3] %vm172_vm1, %v5553_v0 }
  0x73   : > { %264 = vst.msk [vmem:[#allocation3 + $0x138] sm:$0xff] %vm169_vm0, %v5553_v0 }
  0x74   : > { %265 = vst.msk [vmem:[#allocation3 + $0x140] sm:$0xff] %vm169_vm0, %v5553_v0 }
  0x75   : > { %266 = vst.msk [vmem:[#allocation3 + $0x148] sm:$0x3] %vm172_vm1, %v5553_v0 }
  0x76   : > { %267 = vst.msk [vmem:[#allocation3 + $0x150] sm:$0xff] %vm169_vm0, %v5553_v0 }
  0x77   : > { %268 = vst.msk [vmem:[#allocation3 + $0x158] sm:$0xff] %vm169_vm0, %v5553_v0 }
  0x78   : > { %269 = vst.msk [vmem:[#allocation3 + $0x160] sm:$0x3] %vm172_vm1, %v5553_v0 }
  0x79   : > { %270 = vst.msk [vmem:[#allocation3 + $0x168] sm:$0xff] %vm169_vm0, %v5553_v0 }
  0x7a   : > { %271 = vst.msk [vmem:[#allocation3 + $0x170] sm:$0xff] %vm169_vm0, %v5553_v0 }
  0x7b   : > { %272 = vst.msk [vmem:[#allocation3 + $0x178] sm:$0x3] %vm172_vm1, %v5553_v0 }
  0x7c   : > { %273 = vst.msk [vmem:[#allocation3 + $0x180] sm:$0xff] %vm169_vm0, %v5553_v0 }
  0x7d   : > { %274 = vst.msk [vmem:[#allocation3 + $0x188] sm:$0xff] %vm169_vm0, %v5553_v0 }
  0x7e   : > { %275 = vst.msk [vmem:[#allocation3 + $0x190] sm:$0x3] %vm172_vm1, %v5553_v0 }
  0x7f   : > { %276 = vst.msk [vmem:[#allocation3 + $0x198] sm:$0xff] %vm169_vm0, %v5553_v0 }
  0x80   : > { %277 = vst.msk [vmem:[#allocation3 + $0x1a0] sm:$0xff] %vm169_vm0, %v5553_v0 }
  0x81   : > { %278 = vst.msk [vmem:[#allocation3 + $0x1a8] sm:$0x3] %vm172_vm1, %v5553_v0 }
  0x82   : > { %347 = vst.msk [vmem:[#allocation2 + $0x31] sm:$0xff] %vm169_vm0, %v5900_v32 }
  0x83   : > { %348 = vst.msk [vmem:[#allocation2 + $0x39] sm:$0xff] %vm169_vm0, %v5906_v34 }
  0x84   : > { %349 = vst.msk [vmem:[#allocation2 + $0x49] sm:$0xff] %vm169_vm0, %v5912_v36 }
  0x85   : > { %350 = vst.msk [vmem:[#allocation2 + $0x51] sm:$0xff] %vm169_vm0, %v5918_v38 }
  0x86   : > { %351 = vst.msk [vmem:[#allocation2 + $0x61] sm:$0xff] %vm169_vm0, %v5923_v39 }
  0x87   : > { %352 = vst.msk [vmem:[#allocation2 + $0x69] sm:$0xff] %vm169_vm0, %v5928_v40 }
  0x88   : > { %353 = vst.msk [vmem:[#allocation2 + $0x79] sm:$0xff] %vm169_vm0, %v5965_v62 }
  0x89   : > { %v5936_v41 = vld [vmem:[#allocation2 + $0x30] sm:$0xff]  ;;  %354 = vst.msk [vmem:[#allocation2 + $0x81] sm:$0xff] %vm169_vm0, %v5968_v63 }
  0x8a   : > { %v5938_v42 = vld [vmem:[#allocation2 + $0x38] sm:$0xff]  ;;  %v514_v43 = vrot.slane %v5936_v41, 1  ;;  %v403_v44 = vld [vmem:[#allocation2 + $0x40] sm:$0x3]  ;;  %v713_v56 = vrot.slane %v5936_v41, 2  ;;  %355 = vst.msk [vmem:[#allocation2 + $0x91] sm:$0xff] %vm169_vm0, %v5986_v15 }
  0x8b   : > { %v515_v45 = vrot.slane %v5938_v42, 1  ;;  %v714_v46 = vrot.slane %v5938_v42, 2  ;;  %v716_v47 = vrot.slane %v403_v44, 2  ;;  %v5943_v48 = vld [vmem:[#allocation2 + $0x48] sm:$0xff]  ;;  %v517_v12 = vrot.slane %v403_v44, 1  ;;  %356 = vst.msk [vmem:[#allocation2 + $0x99] sm:$0xff] %vm169_vm0, %v5989_v16 }
  0x8c   : > { %v5945_v49 = vld [vmem:[#allocation2 + $0x50] sm:$0xff]  ;;  %v718_v50 = vrot.slane %v5943_v48, 2  ;;  %v519_v57 = vrot.slane %v5943_v48, 1  ;;  %v406_v8 = vld [vmem:[#allocation2 + $0x58] sm:$0x3]  ;;  %357 = vst.msk [vmem:[#allocation2 + $0xa9] sm:$0xff] %vm169_vm0, %v6008_v31 }
  0x8d   : > { %v516_v51 = vsel %vm503_vm3, %v514_v43, %v515_v45  ;;  %v717_v52 = vsel %vm702_vm4, %v714_v46, %v716_v47  ;;  %v719_v53 = vrot.slane %v5945_v49, 2  ;;  %v520_v58 = vrot.slane %v5945_v49, 1  ;;  %v5958_v59 = vld [vmem:[#allocation2 + $0x60] sm:$0xff]  ;;  %358 = vst.msk [vmem:[#allocation2 + $0xb1] sm:$0xff] %vm169_vm0, %v6011_v33  ;;  %v394_v47 = vld [vmem:[%s9023_s1 + $0x88] sm:$0xff] }
  0x8e   : > { %602 = vrot.lane.b32.xlu2 %v516_v51, %s5554_s29  ;;  %803 = vrot.lane.b32.xlu0 %v717_v52, %s5555_s30  ;;  %v5960_v60 = vld [vmem:[#allocation2 + $0x68] sm:$0xff]  ;;  %v524_v0 = vrot.slane %v5958_v59, 1  ;;  %v715_v2 = vsel %vm702_vm4, %v713_v56, %v714_v46  ;;  %v721_v13 = vrot.slane %v406_v8, 2  ;;  %v409_v14 = vld [vmem:[#allocation2 + $0x70] sm:$0x3]  ;;  %v518_v22 = vsel %vm503_vm3, %v515_v45, %v517_v12 }
  0x8f   : > { %v720_v61 = vsel %vm702_vm4, %v718_v50, %v719_v53  ;;  %v525_v1 = vrot.slane %v5960_v60, 1  ;;  %v521_v7 = vsel %vm503_vm3, %v519_v57, %v520_v58  ;;  %v724_v17 = vrot.slane %v5960_v60, 2  ;;  %v6026_v45 = vld [vmem:[#allocation2 + $0x78] sm:$0xff]  ;;  %1319 = vmatpush.msra.mxu2 %v394_v47 }
  0x90   : > { %805 = vrot.lane.b32.xlu1 %v720_v61, %s5555_s30  ;;  %v726_v20 = vrot.slane %v409_v14, 2  ;;  %v722_v23 = vsel %vm702_vm4, %v719_v53, %v721_v13  ;;  %v527_v29 = vrot.slane %v409_v14, 1  ;;  %v6005_v30 = vld [vmem:[#allocation2 + $0x88] sm:$0x3]  ;;  %v6016_v35 = vld [vmem:[#allocation2 + $0x80] sm:$0xff]  ;;  %v707_v43 = vsel %vm702_vm4, %v704_v21, %v706_v28  ;;  %v294_v28 = vld [vmem:[%s5639_s28 + $0x78] sm:$0xff] }
  0x91   : > { %v526_v9 = vsel %vm503_vm3, %v524_v0, %v525_v1  ;;  %v530_v26 = vrot.slane %v6016_v35, 1  ;;  %v532_v37 = vrot.slane %v6005_v30, 1  ;;  %v522_v50 = vrot.slane %v406_v8, 1  ;;  %v6036_v21 = vld [vmem:[#allocation2 + $0x90] sm:$0xff] }
  0x92   : > { %v727_v24 = vsel %vm702_vm4, %v724_v17, %v726_v20  ;;  %v528_v44 = vsel %vm503_vm3, %v525_v1, %v527_v29  ;;  %v728_v51 = vrot.slane %v6026_v45, 2  ;;  %v729_v52 = vrot.slane %v6016_v35, 2  ;;  %v6038_v53 = vld [vmem:[#allocation2 + $0x98] sm:$0xff]  ;;  %v415_v12 = vld [vmem:[#allocation2 + $0xa0] sm:$0x3] }
  0x93   : > { %v533_v46 = vsel %vm503_vm3, %v530_v26, %v532_v37  ;;  %v733_v54 = vrot.slane %v6036_v21, 2  ;;  %v734_v55 = vrot.slane %v6038_v53, 2  ;;  %v523_v56 = vsel %vm503_vm3, %v520_v58, %v522_v50 }
  0x94   : > { %v730_v57 = vsel %vm702_vm4, %v728_v51, %v729_v52  ;;  %v723_v0 = vrot.slane %v5958_v59, 2  ;;  %v534_v1 = vrot.slane %v6036_v21, 1  ;;  %v6055_v8 = vld [vmem:[#allocation2 + $0xb0] sm:$0xff]  ;;  %v529_v14 = vrot.slane %v6026_v45, 1 }
  0x95   : > { %v735_v61 = vsel %vm702_vm4, %v733_v54, %v734_v55  ;;  %v736_v20 = vrot.slane %v415_v12, 2  ;;  %v6073_v29 = vsel %vm311_vm2, %v293_v27, 0.0  ;;  %v6076_v37 = vsel %vm311_vm2, %v294_v28, 0.0 }
  0x96   : > { %801 = vrot.lane.b32.xlu2 %v715_v2, %s5555_s30  ;;  %606 = vrot.lane.b32.xlu0 %v521_v7, %s5554_s29  ;;  %v535_v2 = vrot.slane %v6038_v53, 1  ;;  %v6053_v7 = vld [vmem:[#allocation2 + $0xa8] sm:$0xff]  ;;  %v725_v10 = vsel %vm702_vm4, %v723_v0, %v724_v17  ;;  %v531_v17 = vsel %vm503_vm3, %v529_v14, %v530_v26  ;;  %9051 = vst [vmem:[#allocation7_spill] sm:$0xff] %v6076_v37  ;;  %v731_v26 = vrot.slane %v6005_v30, 2  ;;  %v387_v0 = vld [vmem:[%s9023_s1 + $0x50] sm:$0xff]  ;;  %v385_v14 = vld [vmem:[%s9023_s1 + $0x40] sm:$0xff] }
  0x97   : > { %v539_v58 = vrot.slane %v6053_v7, 1  ;;  %v737_v25 = vsel %vm702_vm4, %v734_v55, %v736_v20  ;;  %359 = vst.msk [vmem:[#allocation2 + $0xc1] sm:$0xff] %vm169_vm0, %v6073_v29  ;;  %v537_v54 = vrot.slane %v415_v12, 1  ;;  %v295_v12 = vld [vmem:[%s5639_s28 + $0x80] sm:$0xff]  ;;  %v390_v20 = vld [vmem:[%s9023_s1 + $0x68] sm:$0xff]  ;;  %v738_v28 = vrot.slane %v6053_v7, 2 }
  0x98   : > { %610 = vrot.lane.b32.xlu1 %v526_v9, %s5554_s29  ;;  %v540_v9 = vrot.slane %v6055_v8, 1  ;;  %v536_v11 = vsel %vm503_vm3, %v534_v1, %v535_v2  ;;  %360 = vst.msk [vmem:[#allocation2 + $0xc9] sm:$0xff] %vm169_vm0, %v6076_v37  ;;  %v392_v1 = vld [vmem:[%s9023_s1 + $0x78] sm:$0xff] }
  0x9a   : > { %v541_v13 = vsel %vm503_vm3, %v539_v58, %v540_v9  ;;  %v386_v58 = vld [vmem:[%s9023_s1 + $0x48] sm:$0xff] }
  0x9e   : > { %604 = vrot.lane.b32.xlu2 %v518_v22, %s5554_s29  ;;  %807 = vrot.lane.b32.xlu0 %v722_v23, %s5555_s30  ;;  %v418_v22 = vld [vmem:[#allocation2 + $0xb8] sm:$0x3]  ;;  %v739_v23 = vrot.slane %v6055_v8, 2  ;;  %v6091_v50 = vld [vmem:[#allocation2 + $0xc0] sm:$0xff] }
  0x9f   : > { %v6095_v51 = vld [vmem:[#allocation2 + $0xc8] sm:$0xff]  ;;  %v743_v30 = vrot.slane %v6091_v50, 2 }
  0xa0   : > { %811 = vrot.lane.b32.xlu1 %v727_v24, %s5555_s30  ;;  %v741_v24 = vrot.slane %v418_v22, 2  ;;  %v744_v55 = vrot.slane %v6095_v51, 2 }
  0xa6   : > { %795 = vrot.lane.b32.xlu2 %v707_v43, %s5555_s30  ;;  %612 = vrot.lane.b32.xlu0 %v528_v44, %s5554_s29  ;;  %v742_v43 = vsel %vm702_vm4, %v739_v23, %v741_v24  ;;  %v542_v44 = vrot.slane %v418_v22, 1  ;;  %v6131_v22 = vld [vmem:[#allocation2 + $0xd0] sm:$0x3] }
  0xa8   : > { %616 = vrot.lane.b32.xlu1 %v533_v46, %s5554_s29  ;;  %v732_v46 = vsel %vm702_vm4, %v729_v52, %v731_v26  ;;  %v543_v47 = vsel %vm503_vm3, %v540_v9, %v542_v44  ;;  %v388_v52 = vld [vmem:[%s9023_s1 + $0x58] sm:$0xff]  ;;  %v391_v9 = vld [vmem:[%s9023_s1 + $0x70] sm:$0xff]  ;;  %v389_v26 = vld [vmem:[%s9023_s1 + $0x60] sm:$0xff] }
  0xa9   : > { %1081 = vmatpush.msra.mxu0 %v388_v52  ;;  %v382_v44 = vld [vmem:[%s9023_s1 + $0x28] sm:$0xff]  ;;  %v381_v52 = vld [vmem:[%s9023_s1 + $0x20] sm:$0xff] }
  0xaa   : > { %1200 = vmatpush.msra.mxu1 %v382_v44 }
  0xab   : > { %1082 = vmatpush.msra.mxu0 %v387_v0 }
  0xac   : > { %1201 = vmatpush.msra.mxu1 %v381_v52  ;;  %v297_v52 = vld [vmem:[%s5639_s28 + $0x90] sm:$0xff] }
  0xad   : > { %1083 = vmatpush.msra.mxu0 %v386_v58 }
  0xae   : > { %608 = vrot.lane.b32.xlu2 %v523_v56, %s5554_s29  ;;  %813 = vrot.lane.b32.xlu0 %v730_v57, %s5555_s30  ;;  %v393_v56 = vld [vmem:[%s9023_s1 + $0x80] sm:$0xff]  ;;  %v6105_v57 = vpop.permute.xlu1 %600 }
  0xaf   : > { %1320 = vmatpush.msra.mxu2 %v393_v56  ;;  %1084 = vmatpush.msra.mxu0 %v385_v14  ;;  %v740_v56 = vsel %vm702_vm4, %v738_v28, %v739_v23  ;;  %v904_v28 = vsel %vm169_vm0, %v5673_v6, %v6105_v57  ;;  %v6218_v57 = vsel %vm311_vm2, %v297_v52, 0.0 }
  0xb0   : > { %817 = vrot.lane.b32.xlu1 %v735_v61, %s5555_s30  ;;  %v599_v61 = vpop.permute.xlu0 %598  ;;  %9054 = vst [vmem:[#allocation10_spill] sm:$0xff] %v6218_v57 }
  0xb1   : > { %1321 = vmatpush.msra.mxu2 %v392_v1  ;;  %v379_v1 = vld [vmem:[%s9023_s1 + $0x10] sm:$0xff]  ;;  %363 = vst.msk [vmem:[#allocation2 + $0xf1] sm:$0xff] %vm169_vm0, %v6218_v57 }
  0xb3   : > { %1322 = vmatpush.msra.mxu2 %v391_v9 }
  0xb5   : > { %1323 = vmatpush.msra.mxu2 %v390_v20  ;;  %v377_v20 = vld [vmem:[%s9023_s1] sm:$0xff] }
  0xb6   : > { %809 = vrot.lane.b32.xlu2 %v725_v10, %s5555_s30  ;;  %618 = vrot.lane.b32.xlu0 %v536_v11, %s5554_s29  ;;  %v538_v10 = vsel %vm503_vm3, %v535_v2, %v537_v54  ;;  %v745_v11 = vsel %vm702_vm4, %v743_v30, %v744_v55  ;;  %v6134_v2 = vsel %vm311_vm2, %v295_v12, 0.0  ;;  %v383_v30 = vld [vmem:[%s9023_s1 + $0x30] sm:$0xff]  ;;  %v378_v12 = vld [vmem:[%s9023_s1 + $0x8] sm:$0xff] }
  0xb7   : > { %9052 = vst [vmem:[#allocation8_spill] sm:$0xff] %v6134_v2  ;;  %1324 = vmatpush.msra.mxu2 %v389_v26 }
  0xb8   : > { %622 = vrot.lane.b32.xlu1 %v541_v13, %s5554_s29  ;;  %v296_v13 = vld [vmem:[%s5639_s28 + $0x88] sm:$0xff]  ;;  %361 = vst.msk [vmem:[#allocation2 + $0xd9] sm:$0xff] %vm169_vm0, %v6134_v2  ;;  %v798_v54 = vpop.permute.xlu0 %797 }
  0xb9   : > { %v6137_v24 = vsel %vm311_vm2, %v296_v13, 0.0 }
  0xba   : > { %9053 = vst [vmem:[#allocation9_spill] sm:$0xff] %v6137_v24 }
  0xbb   : > { %362 = vst.msk [vmem:[#allocation2 + $0xe1] sm:$0xff] %vm169_vm0, %v6137_v24 }
  0xbe   : > { %614 = vrot.lane.b32.xlu2 %v531_v17, %s5554_s29  ;;  %819 = vrot.lane.b32.xlu0 %v737_v25, %s5555_s30  ;;  %v545_v17 = vrot.slane %v6095_v51, 1  ;;  %v547_v25 = vrot.slane %v6131_v22, 1 }
  0xbf   : > { %v6178_v0 = vld [vmem:[#allocation2 + $0xd8] sm:$0xff] }
  0xc0   : > { %823 = vrot.lane.b32.xlu1 %v742_v43, %s5555_s30  ;;  %v548_v27 = vsel %vm503_vm3, %v545_v17, %v547_v25  ;;  %v384_v43 = vld [vmem:[%s9023_s1 + $0x38] sm:$0xff]  ;;  %v549_v58 = vrot.slane %v6178_v0, 1  ;;  %v748_v9 = vrot.slane %v6178_v0, 2  ;;  %v544_v25 = vrot.slane %v6091_v50, 1  ;;  %v595_v26 = vpop.permute.xlu0 %594 }
  0xc1   : > { %1085 = vmatpush.msra.mxu0 %v384_v43 }
  0xc2   : > { %v6183_v23 = vld [vmem:[#allocation2 + $0xe0] sm:$0xff] }
  0xc3   : > { %1086 = vmatpush.msra.mxu0 %v383_v30  ;;  %v546_v30 = vsel %vm503_vm3, %v544_v25, %v545_v17  ;;  %v746_v17 = vrot.slane %v6131_v22, 2 }
  0xc6   : > { %815 = vrot.lane.b32.xlu2 %v732_v46, %s5555_s30  ;;  %624 = vrot.lane.b32.xlu0 %v543_v47, %s5554_s29  ;;  %v903_v46 = vsel %vm169_vm0, %v5671_v5, %v599_v61  ;;  %v800_v47 = vpop.permute.xlu1 %799  ;;  %v380_v61 = vld [vmem:[%s9023_s1 + $0x18] sm:$0xff] }
  0xc7   : > { %v6171_v5 = vsel %vm937_vm5, %v903_v46, %v798_v54  ;;  %1202 = vmatpush.msra.mxu1 %v380_v61  ;;  %v901_v46 = vsel %vm169_vm0, %v5707_v18, %v595_v26  ;;  %v6209_v54 = vsel %vm937_vm5, %v904_v28, %v800_v47  ;;  %v6232_v47 = vld [vmem:[#allocation2 + $0xf0] sm:$0xff]  ;;  %v299_v28 = vld [vmem:[%s5639_s28 + $0xa0] sm:$0xff] }
  0xc8   : > { %628 = vrot.lane.b32.xlu1 %v548_v27, %s5554_s29  ;;  %5017 = vmatmul.msk.f32.vlgmr.msra.gmra.mxu0 %vm974_vm6, %v6171_v5  ;;  %v424_v27 = vld [vmem:[#allocation2 + $0xe8] sm:$0x3] }
  0xc9   : > { %1203 = vmatpush.msra.mxu1 %v379_v1  ;;  %v751_v44 = vrot.slane %v424_v27, 2  ;;  %v747_v1 = vsel %vm702_vm4, %v744_v55, %v746_v17  ;;  %v300_v55 = vld [vmem:[%s5639_s28 + $0xa8] sm:$0xff] }
  0xca   : > { %v6251_v26 = vsel %vm311_vm2, %v300_v55, 0.0 }
  0xcb   : > { %1204 = vmatpush.msra.mxu1 %v378_v12  ;;  %9057 = vst [vmem:[#allocation13_spill] sm:$0xff] %v6251_v26 }
  0xcc   : > { %366 = vst.msk [vmem:[#allocation2 + $0x111] sm:$0xff] %vm169_vm0, %v6251_v26 }
  0xcd   : > { %1205 = vmatpush.msra.mxu1 %v377_v20 }
  0xce   : > { %620 = vrot.lane.b32.xlu2 %v538_v10, %s5554_s29  ;;  %825 = vrot.lane.b32.xlu0 %v745_v11, %s5555_s30  ;;  %v550_v10 = vrot.slane %v6183_v23, 1  ;;  %v749_v11 = vrot.slane %v6183_v23, 2  ;;  %v794_v43 = vpop.permute.xlu1 %793 }
  0xcf   : > { %v938_v6 = vsel %vm937_vm5, %v901_v46, %v794_v43  ;;  %v6248_v43 = vsel %vm311_vm2, %v299_v28, 0.0 }
  0xd0   : > { %v551_v13 = vsel %vm503_vm3, %v549_v58, %v550_v10  ;;  %v750_v14 = vsel %vm702_vm4, %v748_v9, %v749_v11  ;;  %5018 = vmatmul.msk.f32.gmra.mxu0 %vm974_vm6, %v6209_v54  ;;  %5049 = vmatmul.msk.f32.vlgmr.msra.gmra.mxu1 %vm974_vm6, %v938_v6  ;;  %v752_v18 = vsel %vm702_vm4, %v749_v11, %v751_v44  ;;  %v554_v9 = vrot.slane %v6232_v47, 1 }
  0xd1   : > { %829 = vrot.lane.b32.xlu1 %v750_v14, %s5555_s30  ;;  %9056 = vst [vmem:[#allocation12_spill] sm:$0xff] %v6248_v43 }
  0xd2   : > { %365 = vst.msk [vmem:[#allocation2 + $0x109] sm:$0xff] %vm169_vm0, %v6248_v43 }
  0xd6   : > { %821 = vrot.lane.b32.xlu2 %v740_v56, %s5555_s30  ;;  %630 = vrot.lane.b32.xlu0 %v551_v13, %s5554_s29  ;;  %v298_v56 = vld [vmem:[%s5639_s28 + $0x98] sm:$0xff] }
  0xd7   : > { %v6221_v61 = vsel %vm311_vm2, %v298_v56, 0.0 }
  0xd8   : > { %9055 = vst [vmem:[#allocation11_spill] sm:$0xff] %v6221_v61 }
  0xd9   : > { %364 = vst.msk [vmem:[#allocation2 + $0xf9] sm:$0xff] %vm169_vm0, %v6221_v61  ;;  %v6276_v17 = vld [vmem:[#allocation2 + $0x110] sm:$0xff] }
  0xde   : > { %626 = vrot.lane.b32.xlu2 %v546_v30, %s5554_s29  ;;  %831 = vrot.lane.b32.xlu0 %v752_v18, %s5555_s30  ;;  %v6273_v18 = vld [vmem:[#allocation2 + $0x108] sm:$0xff] }
  0xe0   : > { %v6237_v58 = vld [vmem:[#allocation2 + $0xf8] sm:$0xff]  ;;  %v427_v22 = vld [vmem:[#allocation2 + $0x100] sm:$0x3] }
  0xe1   : > { %v555_v11 = vrot.slane %v6237_v58, 1  ;;  %v754_v14 = vrot.slane %v6237_v58, 2  ;;  %v557_v20 = vrot.slane %v427_v22, 1  ;;  %v756_v25 = vrot.slane %v427_v22, 2 }
  0xe2   : > { %v753_v22 = vrot.slane %v6232_v47, 2 }
  0xe3   : > { %v556_v13 = vsel %vm503_vm3, %v554_v9, %v555_v11  ;;  %v558_v46 = vsel %vm503_vm3, %v555_v11, %v557_v20  ;;  %v757_v30 = vsel %vm702_vm4, %v754_v14, %v756_v25  ;;  %v759_v9 = vrot.slane %v6276_v17, 2  ;;  %v301_v20 = vld [vmem:[%s5639_s28 + $0xb0] sm:$0xff]  ;;  %v302_v25 = vld [vmem:[%s5639_s28 + $0xb8] sm:$0xff] }
  0xe4   : > { %634 = vrot.lane.b32.xlu1 %v556_v13, %s5554_s29  ;;  %v6284_v13 = vld [vmem:[#allocation2 + $0x118] sm:$0x3]  ;;  %v6292_v55 = vsel %vm311_vm2, %v301_v20, 0.0 }
  0xe5   : > { %v562_v28 = vrot.slane %v6284_v13, 1  ;;  %9058 = vst [vmem:[#allocation14_spill] sm:$0xff] %v6292_v55 }
  0xe6   : > { %827 = vrot.lane.b32.xlu2 %v747_v1, %s5555_s30  ;;  %636 = vrot.lane.b32.xlu0 %v558_v46, %s5554_s29  ;;  %v758_v1 = vrot.slane %v6273_v18, 2  ;;  %v755_v46 = vsel %vm702_vm4, %v753_v22, %v754_v14  ;;  %367 = vst.msk [vmem:[#allocation2 + $0x121] sm:$0xff] %vm169_vm0, %v6292_v55 }
  0xe8   : > { %v603_v12 = vpop.permute.xlu2 %602 }
  0xe9   : > { %v905_v44 = vsel %vm169_vm0, %v5936_v41, %v603_v12  ;;  %v552_v41 = vrot.slane %v424_v27, 1  ;;  %v760_v12 = vsel %vm702_vm4, %v758_v1, %v759_v9  ;;  %v597_v27 = vpop.permute.xlu1 %596 }
  0xeb   : > { %v553_v6 = vsel %vm503_vm3, %v550_v10, %v552_v41  ;;  %v560_v10 = vrot.slane %v6276_v17, 1 }
  0xec   : > { %835 = vrot.lane.b32.xlu1 %v757_v30, %s5555_s30  ;;  %v902_v30 = vsel %vm169_vm0, %v5709_v19, %v597_v27 }
  0xed   : > { %v6318_v19 = vld [vmem:[#allocation2 + $0x120] sm:$0xff] }
  0xee   : > { %632 = vrot.lane.b32.xlu2 %v553_v6, %s5554_s29  ;;  %837 = vrot.lane.b32.xlu0 %v760_v12, %s5555_s30 }
  0xf0   : > { %v802_v52 = vpop.permute.xlu2 %801 }
  0xf1   : > { %v6263_v56 = vsel %vm937_vm5, %v905_v44, %v802_v52  ;;  %v6295_v44 = vsel %vm311_vm2, %v302_v25, 0.0  ;;  %v563_v52 = vsel %vm503_vm3, %v560_v10, %v562_v28 }
  0xf2   : > { %5081 = vmatmul.msk.f32.vlgmr.msra.gmra.mxu2 %vm974_vm6, %v6263_v56  ;;  %5019 = vmatmul.msk.f32.gmra.mxu0 %vm974_vm6, %v6263_v56  ;;  %9059 = vst [vmem:[#allocation15_spill] sm:$0xff] %v6295_v44 }
  0xf3   : > { %368 = vst.msk [vmem:[#allocation2 + $0x129] sm:$0xff] %vm169_vm0, %v6295_v44 }
  0xf4   : > { %640 = vrot.lane.b32.xlu1 %v563_v52, %s5554_s29 }
  0xf6   : > { %833 = vrot.lane.b32.xlu2 %v755_v46, %s5555_s30 }
  0xf8   : > { %v605_v11 = vpop.permute.xlu2 %604 }
  0xf9   : > { %v906_v41 = vsel %vm169_vm0, %v5938_v42, %v605_v11  ;;  %v564_v42 = vrot.slane %v6318_v19, 1  ;;  %v763_v11 = vrot.slane %v6318_v19, 2 }
  0xfa   : > { %v6320_v27 = vld [vmem:[#allocation2 + $0x128] sm:$0xff] }
  0xfb   : > { %v9026_v22 = vrot.slane %v6320_v27, 1  ;;  %v764_v20 = vrot.slane %v6320_v27, 2 }
  0xfd   : > { %v566_v46 = vsel %vm503_vm3, %v564_v42, %v9026_v22  ;;  %v304_v42 = vld [vmem:[%s5639_s28 + $0xc8] sm:$0xff] }
  0xfe   : > { %642 = vrot.lane.b32.xlu0 %v566_v46, %s5554_s29 }
 0x100   : > { %v804_v6 = vpop.permute.xlu0 %803  ;;  %v796_v14 = vpop.permute.xlu2 %795 }
 0x101   : > { %v6310_v1 = vsel %vm937_vm5, %v906_v41, %v804_v6  ;;  %v939_v12 = vsel %vm937_vm5, %v902_v30, %v796_v14  ;;  %v765_v30 = vsel %vm702_vm4, %v763_v11, %v764_v20  ;;  %v559_v14 = vrot.slane %v6273_v18, 1 }
 0x102   : > { %5082 = vmatmul.msk.f32.gmra.mxu2 %vm974_vm6, %v6310_v1  ;;  %5050 = vmatmul.msk.f32.gmra.mxu1 %vm974_vm6, %v939_v12  ;;  %v806_v25 = vpop.permute.xlu1 %805  ;;  %v303_v12 = vld [vmem:[%s5639_s28 + $0xc0] sm:$0xff] }
 0x103   : > { %5020 = vmatmul.msk.f32.gmra.mxu0 %vm974_vm6, %v6310_v1  ;;  %841 = vrot.lane.b32.xlu1 %v765_v30, %s5555_s30 }
 0x108   : > { %v607_v28 = vpop.permute.xlu0 %606  ;;  %v609_v6 = vpop.permute.xlu2 %608 }
 0x109   : > { %v907_v52 = vsel %vm169_vm0, %v5943_v48, %v607_v28  ;;  %v6344_v48 = vld [vmem:[#allocation2 + $0x130] sm:$0x3]  ;;  %v561_v28 = vsel %vm503_vm3, %v559_v14, %v560_v10  ;;  %v908_v46 = vsel %vm169_vm0, %v5945_v49, %v609_v6  ;;  %v761_v49 = vrot.slane %v6284_v13, 2 }
 0x10a   : > { %5051 = vmatmul.msk.f32.gmra.mxu1 %vm974_vm6, %v6171_v5  ;;  %v6337_v41 = vsel %vm937_vm5, %v907_v52, %v806_v25  ;;  %v766_v11 = vrot.slane %v6344_v48, 2  ;;  %v6350_v5 = vsel %vm311_vm2, %v303_v12, 0.0  ;;  %v6353_v25 = vsel %vm311_vm2, %v304_v42, 0.0  ;;  %638 = vrot.lane.b32.xlu2 %v561_v28, %s5554_s29  ;;  %v611_v10 = vpop.permute.xlu1 %610 }
 0x10b   : > { %5083 = vmatmul.msk.f32.gmra.mxu2 %vm974_vm6, %v6337_v41  ;;  %5021 = vmatmul.msk.f32.gmra.mxu0 %vm974_vm6, %v6337_v41  ;;  %9060 = vst [vmem:[#allocation16_spill] sm:$0xff] %v6350_v5  ;;  %v909_v6 = vsel %vm169_vm0, %v5958_v59, %v611_v10  ;;  %v306_v10 = vld [vmem:[%s5639_s28 + $0xd8] sm:$0xff] }
 0x10c   : > { %9061 = vst [vmem:[#allocation17_spill] sm:$0xff] %v6353_v25  ;;  %v767_v30 = vsel %vm702_vm4, %v764_v20, %v766_v11  ;;  %v762_v11 = vsel %vm702_vm4, %v759_v9, %v761_v49 }
 0x10d   : > { %369 = vst.msk [vmem:[#allocation2 + $0x139] sm:$0xff] %vm169_vm0, %v6350_v5  ;;  %843 = vrot.lane.b32.xlu0 %v767_v30, %s5555_s30 }
 0x10e   : > { %370 = vst.msk [vmem:[#allocation2 + $0x141] sm:$0xff] %vm169_vm0, %v6353_v25 }
 0x110   : > { %v808_v52 = vpop.permute.xlu0 %807  ;;  %v810_v14 = vpop.permute.xlu2 %809 }
 0x111   : > { %v6365_v12 = vsel %vm937_vm5, %v908_v46, %v808_v52  ;;  %v6388_v13 = vsel %vm937_vm5, %v909_v6, %v810_v14  ;;  %v305_v52 = vld [vmem:[%s5639_s28 + $0xd0] sm:$0xff] }
 0x112   : > { %5052 = vmatmul.msk.f32.gmra.mxu1 %vm974_vm6, %v6209_v54  ;;  %839 = vrot.lane.b32.xlu2 %v762_v11, %s5555_s30  ;;  %v6402_v14 = vsel %vm311_vm2, %v305_v52, 0.0  ;;  %v6407_v11 = vsel %vm311_vm2, %v306_v10, 0.0 }
 0x113   : > { %5084 = vmatmul.msk.f32.gmra.mxu2 %vm974_vm6, %v6365_v12  ;;  %5022 = vmatmul.msk.f32.gmra.mxu0 %vm974_vm6, %v6365_v12  ;;  %9062 = vst [vmem:[#allocation18_spill] sm:$0xff] %v6402_v14 }
 0x114   : > { %v6375_v20 = vld [vmem:[#allocation2 + $0x138] sm:$0xff]  ;;  %9063 = vst [vmem:[#allocation19_spill] sm:$0xff] %v6407_v11 }
 0x115   : > { %v6379_v42 = vld [vmem:[#allocation2 + $0x140] sm:$0xff]  ;;  %v569_v54 = vrot.slane %v6375_v20, 1  ;;  %v436_v9 = vld [vmem:[#allocation2 + $0x148] sm:$0x3]  ;;  %371 = vst.msk [vmem:[#allocation2 + $0x151] sm:$0xff] %vm169_vm0, %v6402_v14 }
 0x116   : > { %v570_v28 = vrot.slane %v6379_v42, 1  ;;  %v769_v30 = vrot.slane %v6379_v42, 2  ;;  %v572_v49 = vrot.slane %v436_v9, 1  ;;  %v771_v6 = vrot.slane %v436_v9, 2  ;;  %372 = vst.msk [vmem:[#allocation2 + $0x159] sm:$0xff] %vm169_vm0, %v6407_v11 }
 0x118   : > { %v571_v59 = vsel %vm503_vm3, %v569_v54, %v570_v28  ;;  %v613_v46 = vpop.permute.xlu0 %612  ;;  %v812_v54 = vpop.permute.xlu1 %811  ;;  %v772_v22 = vsel %vm702_vm4, %v769_v30, %v771_v6 }
 0x119   : > { %646 = vrot.lane.b32.xlu1 %v571_v59, %s5554_s29  ;;  %v573_v59 = vsel %vm503_vm3, %v570_v28, %v572_v49  ;;  %v5118_v28 = vld [vmem:[%s9023_s1 + $0xb8] sm:$0xff]  ;;  %v9064_v49 = vrot.slane %v6320_v27, 1 }
 0x11a   : > { %5053 = vmatmul.msk.f32.gmra.mxu1 %vm974_vm6, %v6263_v56  ;;  %v910_v56 = vsel %vm169_vm0, %v5960_v60, %v613_v46  ;;  %648 = vrot.lane.b32.xlu0 %v573_v59, %s5554_s29  ;;  %v615_v60 = vpop.permute.xlu2 %614  ;;  %v567_v46 = vrot.slane %v6344_v48, 1 }
 0x11b   : > { %5085 = vmatmul.msk.f32.gmra.mxu2 %vm974_vm6, %v6388_v13  ;;  %5023 = vmatmul.msk.f32.gmra.mxu0 %vm974_vm6, %v6388_v13  ;;  %v6417_v9 = vsel %vm937_vm5, %v910_v56, %v812_v54 }
 0x11c   : > { %2339 = vmatpush.msrb.mxu0 %v5118_v28  ;;  %v6433_v52 = vld [vmem:[#allocation2 + $0x150] sm:$0xff]  ;;  %v568_v6 = vsel %vm503_vm3, %v9064_v49, %v567_v46 }
 0x11d   : > { %v6440_v56 = vld [vmem:[#allocation2 + $0x158] sm:$0xff]  ;;  %v773_v48 = vrot.slane %v6433_v52, 2  ;;  %644 = vrot.lane.b32.xlu2 %v568_v6, %s5554_s29  ;;  %v439_v28 = vld [vmem:[#allocation2 + $0x160] sm:$0x3] }
 0x11e   : > { %v774_v54 = vrot.slane %v6440_v56, 2  ;;  %v575_v46 = vrot.slane %v6440_v56, 1  ;;  %v776_v49 = vrot.slane %v439_v28, 2  ;;  %v577_v6 = vrot.slane %v439_v28, 1 }
 0x120   : > { %v814_v10 = vpop.permute.xlu0 %813  ;;  %v777_v25 = vsel %vm702_vm4, %v774_v54, %v776_v49  ;;  %v578_v5 = vsel %vm503_vm3, %v575_v46, %v577_v6 }
 0x121   : > { %847 = vrot.lane.b32.xlu1 %v772_v22, %s5555_s30  ;;  %v5130_v22 = vld [vmem:[%s9023_s1 + $0x118] sm:$0xff] }
 0x122   : > { %5054 = vmatmul.msk.f32.gmra.mxu1 %vm974_vm6, %v6310_v1  ;;  %v911_v1 = vsel %vm169_vm0, %v6026_v45, %v615_v60  ;;  %v775_v45 = vsel %vm702_vm4, %v773_v48, %v774_v54  ;;  %v617_v60 = vpop.permute.xlu1 %616 }
 0x123   : > { %5086 = vmatmul.msk.f32.gmra.mxu2 %vm974_vm6, %v6417_v9  ;;  %5024 = vmatmul.msk.f32.gmra.mxu0 %vm974_vm6, %v6417_v9  ;;  %v6446_v59 = vsel %vm937_vm5, %v911_v1, %v814_v10  ;;  %v307_v1 = vld [vmem:[%s5639_s28 + $0xe0] sm:$0xff]  ;;  %v308_v10 = vld [vmem:[%s5639_s28 + $0xe8] sm:$0xff] }
 0x124   : > { %2458 = vmatpush.msrb.mxu1 %v5130_v22  ;;  %849 = vrot.lane.b32.xlu0 %v775_v45, %s5555_s30  ;;  %v768_v22 = vrot.slane %v6375_v20, 2  ;;  %v6461_v48 = vsel %vm311_vm2, %v307_v1, 0.0  ;;  %v816_v45 = vpop.permute.xlu2 %815  ;;  %v6467_v14 = vsel %vm311_vm2, %v308_v10, 0.0 }
 0x125   : > { %9065 = vst [vmem:[#allocation20_spill] sm:$0xff] %v6461_v48 }
 0x126   : > { %v770_v11 = vsel %vm702_vm4, %v768_v22, %v769_v30  ;;  %9066 = vst [vmem:[#allocation21_spill] sm:$0xff] %v6467_v14 }
 0x127   : > { %373 = vst.msk [vmem:[#allocation2 + $0x169] sm:$0xff] %vm169_vm0, %v6461_v48  ;;  %845 = vrot.lane.b32.xlu2 %v770_v11, %s5555_s30 }
 0x128   : > { %374 = vst.msk [vmem:[#allocation2 + $0x171] sm:$0xff] %vm169_vm0, %v6467_v14  ;;  %v619_v30 = vpop.permute.xlu0 %618 }
 0x129   : > { %851 = vrot.lane.b32.xlu1 %v777_v25, %s5555_s30  ;;  %v913_v11 = vsel %vm169_vm0, %v6036_v21, %v619_v30  ;;  %v574_v21 = vrot.slane %v6433_v52, 1 }
 0x12a   : > { %5055 = vmatmul.msk.f32.gmra.mxu1 %vm974_vm6, %v6337_v41  ;;  %v912_v41 = vsel %vm169_vm0, %v6016_v35, %v617_v60  ;;  %v818_v60 = vpop.permute.xlu1 %817 }
 0x12b   : > { %5087 = vmatmul.msk.f32.gmra.mxu2 %vm974_vm6, %v6446_v59  ;;  %5025 = vmatmul.msk.f32.gmra.mxu0 %vm974_vm6, %v6446_v59  ;;  %v949_v35 = vsel %vm937_vm5, %v912_v41, %v816_v45  ;;  %v950_v22 = vsel %vm937_vm5, %v913_v11, %v818_v60  ;;  %v576_v30 = vsel %vm503_vm3, %v574_v21, %v575_v46 }
 0x12c   : > { %652 = vrot.lane.b32.xlu0 %v578_v5, %s5554_s29  ;;  %v621_v1 = vpop.permute.xlu2 %620 }
 0x12d   : > { %v914_v41 = vsel %vm169_vm0, %v6038_v53, %v621_v1  ;;  %v5117_v1 = vld [vmem:[%s9023_s1 + $0xb0] sm:$0xff] }
 0x12e   : > { %v6483_v54 = vld [vmem:[#allocation2 + $0x168] sm:$0xff]  ;;  %2340 = vmatpush.msrb.mxu0 %v5117_v1 }
 0x12f   : > { %v6487_v28 = vld [vmem:[#allocation2 + $0x170] sm:$0xff]  ;;  %v579_v25 = vrot.slane %v6483_v54, 1  ;;  %v442_v10 = vld [vmem:[#allocation2 + $0x178] sm:$0x3]  ;;  %650 = vrot.lane.b32.xlu2 %v576_v30, %s5554_s29 }
 0x130   : > { %v580_v5 = vrot.slane %v6487_v28, 1  ;;  %v779_v49 = vrot.slane %v6487_v28, 2  ;;  %v781_v6 = vrot.slane %v442_v10, 2  ;;  %v820_v45 = vpop.permute.xlu0 %819 }
 0x131   : > { %v951_v11 = vsel %vm937_vm5, %v914_v41, %v820_v45  ;;  %v309_v41 = vld [vmem:[%s5639_s28 + $0xf0] sm:$0xff]  ;;  %v310_v45 = vld [vmem:[%s5639_s28 + $0xf8] sm:$0xff] }
 0x132   : > { %5056 = vmatmul.msk.f32.gmra.mxu1 %vm974_vm6, %v6365_v12  ;;  %v581_v12 = vsel %vm503_vm3, %v579_v25, %v580_v5  ;;  %v623_v60 = vpop.permute.xlu1 %622  ;;  %v6532_v30 = vsel %vm311_vm2, %v309_v41, 0.0 }
 0x133   : > { %5088 = vmatmul.msk.f32.gmra.mxu2 %vm974_vm6, %v949_v35  ;;  %5026 = vmatmul.msk.f32.gmra.mxu0 %vm974_vm6, %v949_v35  ;;  %v915_v53 = vsel %vm169_vm0, %v6053_v7, %v623_v60  ;;  %v5129_v7 = vld [vmem:[%s9023_s1 + $0x110] sm:$0xff]  ;;  %9067 = vst [vmem:[#allocation22_spill] sm:$0xff] %v6532_v30 }
 0x134   : > { %654 = vrot.lane.b32.xlu1 %v581_v12, %s5554_s29  ;;  %v822_v46 = vpop.permute.xlu2 %821  ;;  %2459 = vmatpush.msrb.mxu1 %v5129_v7  ;;  %375 = vst.msk [vmem:[#allocation2 + $0x181] sm:$0xff] %vm169_vm0, %v6532_v30 }
 0x135   : > { %v952_v25 = vsel %vm937_vm5, %v915_v53, %v822_v46  ;;  %v582_v46 = vrot.slane %v442_v10, 1 }
 0x138   : > { %v625_v12 = vpop.permute.xlu0 %624 }
 0x13a   : > { %5057 = vmatmul.msk.f32.gmra.mxu1 %vm974_vm6, %v6388_v13  ;;  %v782_v13 = vsel %vm702_vm4, %v779_v49, %v781_v6  ;;  %v824_v21 = vpop.permute.xlu1 %823 }
 0x13b   : > { %5089 = vmatmul.msk.f32.gmra.mxu2 %vm974_vm6, %v950_v22  ;;  %5027 = vmatmul.msk.f32.gmra.mxu0 %vm974_vm6, %v950_v22 }
 0x13c   : > { %855 = vrot.lane.b32.xlu0 %v782_v13, %s5555_s30  ;;  %v6535_v13 = vsel %vm311_vm2, %v310_v45, 0.0 }
 0x13d   : > { %9068 = vst [vmem:[#allocation23_spill] sm:$0xff] %v6535_v13 }
 0x13e   : > { %376 = vst.msk [vmem:[#allocation2 + $0x189] sm:$0xff] %vm169_vm0, %v6535_v13 }
 0x140   : > { %v826_v53 = vpop.permute.xlu0 %825 }
 0x142   : > { %5058 = vmatmul.msk.f32.gmra.mxu1 %vm974_vm6, %v6417_v9  ;;  %v778_v9 = vrot.slane %v6483_v54, 2  ;;  %v629_v10 = vpop.permute.xlu1 %628 }
 0x143   : > { %5090 = vmatmul.msk.f32.gmra.mxu2 %vm974_vm6, %v951_v11  ;;  %5028 = vmatmul.msk.f32.gmra.mxu0 %vm974_vm6, %v951_v11  ;;  %v918_v41 = vsel %vm169_vm0, %v6095_v51, %v629_v10 }
 0x144   : > { %v780_v6 = vsel %vm702_vm4, %v778_v9, %v779_v49  ;;  %v6548_v9 = vld [vmem:[#allocation2 + $0x180] sm:$0xff] }
 0x145   : > { %853 = vrot.lane.b32.xlu2 %v780_v6, %s5555_s30  ;;  %v6552_v7 = vld [vmem:[#allocation2 + $0x188] sm:$0xff] }
 0x14a   : > { %5059 = vmatmul.msk.f32.gmra.mxu1 %vm974_vm6, %v6446_v59  ;;  %v916_v59 = vsel %vm169_vm0, %v6055_v8, %v625_v12  ;;  %v627_v8 = vpop.permute.xlu2 %626  ;;  %v583_v12 = vsel %vm503_vm3, %v580_v5, %v582_v46  ;;  %v830_v46 = vpop.permute.xlu1 %829 }
 0x14b   : > { %5091 = vmatmul.msk.f32.gmra.mxu2 %vm974_vm6, %v952_v25  ;;  %5029 = vmatmul.msk.f32.gmra.mxu0 %vm974_vm6, %v952_v25  ;;  %v953_v60 = vsel %vm937_vm5, %v916_v59, %v824_v21  ;;  %v917_v49 = vsel %vm169_vm0, %v6091_v50, %v627_v8  ;;  %v9031_v59 = vrot.slane %v6552_v7, 1  ;;  %v783_v21 = vrot.slane %v6548_v9, 2  ;;  %v631_v8 = vpop.permute.xlu0 %630 }
 0x14c   : > { %v954_v1 = vsel %vm937_vm5, %v917_v49, %v826_v53  ;;  %v784_v50 = vrot.slane %v6552_v7, 2  ;;  %v1088_v49 = vpop.f32.mrf.mxu0  ;;  %v919_v53 = vsel %vm169_vm0, %v6178_v0, %v631_v8 }
 0x14d   : > { %656 = vrot.lane.b32.xlu2 %v583_v12, %s5554_s29  ;;  %v956_v12 = vsel %vm937_vm5, %v919_v53, %v830_v46 }
 0x14e   : > { %v785_v6 = vsel %vm702_vm4, %v783_v21, %v784_v50 }
 0x14f   : > { %857 = vrot.lane.b32.xlu1 %v785_v6, %s5555_s30  ;;  %v1207_v6 = vpop.f32.mrf.mxu1 }
 0x152   : > { %5060 = vmatmul.msk.f32.gmra.mxu1 %vm974_vm6, %v949_v35  ;;  %v584_v35 = vrot.slane %v6548_v9, 1  ;;  %v828_v45 = vpop.permute.xlu2 %827 }
 0x153   : > { %5092 = vmatmul.msk.f32.gmra.mxu2 %vm974_vm6, %v953_v60  ;;  %5030 = vmatmul.msk.f32.gmra.mxu0 %vm974_vm6, %v953_v60 }
 0x154   : > { %v586_v5 = vsel %vm503_vm3, %v584_v35, %v9031_v59  ;;  %v1091_v35 = vpop.f32.mrf.mxu0 }
 0x155   : > { %658 = vrot.lane.b32.xlu0 %v586_v5, %s5554_s29  ;;  %v832_v5 = vpop.permute.xlu0 %831 }
 0x15a   : > { %5061 = vmatmul.msk.f32.gmra.mxu1 %vm974_vm6, %v950_v22  ;;  %v955_v22 = vsel %vm937_vm5, %v918_v41, %v828_v45  ;;  %v633_v51 = vpop.permute.xlu2 %632  ;;  %v635_v41 = vpop.permute.xlu1 %634  ;;  %v1208_v45 = vadd.f32 %v1207_v6, %v1088_v49  ;;  %v5128_v49 = vld [vmem:[%s9023_s1 + $0x108] sm:$0xff] }
 0x15b   : > { %5093 = vmatmul.msk.f32.gmra.mxu2 %vm974_vm6, %v954_v1  ;;  %5031 = vmatmul.msk.f32.gmra.mxu0 %vm974_vm6, %v954_v1  ;;  %v920_v10 = vsel %vm169_vm0, %v6183_v23, %v633_v51  ;;  %v921_v23 = vsel %vm169_vm0, %v6232_v47, %v635_v41  ;;  %v5116_v47 = vld [vmem:[%s9023_s1 + $0xa8] sm:$0xff] }
 0x15c   : > { %2341 = vmatpush.msrb.mxu0 %v5116_v47  ;;  %2460 = vmatpush.msrb.mxu1 %v5128_v49 }
 0x162   : > { %5062 = vmatmul.msk.f32.gmra.mxu1 %vm974_vm6, %v951_v11  ;;  %v6579_v11 = vld [vmem:[#allocation2 + $0x190] sm:$0x3]  ;;  %v834_v53 = vpop.permute.xlu2 %833 }
 0x163   : > { %5094 = vmatmul.msk.f32.gmra.mxu2 %vm974_vm6, %v955_v22  ;;  %5032 = vmatmul.msk.f32.gmra.mxu0 %vm974_vm6, %v955_v22  ;;  %v786_v21 = vrot.slane %v6579_v11, 2 }
 0x165   : > { %v787_v0 = vsel %vm702_vm4, %v784_v50, %v786_v21  ;;  %v6593_v21 = vsel %vm937_vm5, %v921_v23, %v834_v53 }
 0x166   : > { %859 = vrot.lane.b32.xlu2 %v787_v0, %s5555_s30 }
 0x16a   : > { %5063 = vmatmul.msk.f32.gmra.mxu1 %vm974_vm6, %v952_v25  ;;  %v957_v25 = vsel %vm937_vm5, %v920_v10, %v832_v5  ;;  %v836_v10 = vpop.permute.xlu1 %835  ;;  %v639_v41 = vpop.permute.xlu2 %638 }
 0x16b   : > { %5095 = vmatmul.msk.f32.gmra.mxu2 %vm974_vm6, %v956_v12  ;;  %5033 = vmatmul.msk.f32.gmra.mxu0 %vm974_vm6, %v956_v12 }
 0x16f   : > { %v1094_v50 = vpop.f32.mrf.mxu0 }
 0x172   : > { %5064 = vmatmul.msk.f32.gmra.mxu1 %vm974_vm6, %v953_v60  ;;  %v637_v60 = vpop.permute.xlu0 %636  ;;  %v641_v47 = vpop.permute.xlu1 %640 }
 0x173   : > { %5096 = vmatmul.msk.f32.gmra.mxu2 %vm974_vm6, %v957_v25  ;;  %5034 = vmatmul.msk.f32.gmra.mxu0 %vm974_vm6, %v957_v25  ;;  %v840_v49 = vpop.permute.xlu2 %839 }
 0x175   : > { %v1326_v8 = vpop.f32.mrf.mxu2 }
 0x176   : > { %v1422_v46 = vadd.f32 %v1326_v8, %v1208_v45 }
 0x178   : > { %v1454_v51 = vmax.f32 %v1422_v46, 0.0 }
 0x17a   : > { %1487 = vst.msk [vmem:[#allocation3 + $0x19] sm:$0xff] %vm169_vm0, %v1454_v51  ;;  %5065 = vmatmul.msk.f32.gmra.mxu1 %vm974_vm6, %v954_v1  ;;  %v922_v1 = vsel %vm169_vm0, %v6237_v58, %v637_v60  ;;  %v923_v58 = vsel %vm169_vm0, %v6273_v18, %v639_v41  ;;  %v838_v23 = vpop.permute.xlu0 %837 }
 0x17b   : > { %5097 = vmatmul.msk.f32.gmra.mxu2 %vm974_vm6, %v6593_v21  ;;  %5035 = vmatmul.msk.f32.gmra.mxu0 %vm974_vm6, %v6593_v21  ;;  %v6610_v0 = vsel %vm937_vm5, %v922_v1, %v836_v10  ;;  %v6620_v60 = vsel %vm937_vm5, %v923_v58, %v838_v23 }
 0x17f   : > { %v1210_v5 = vpop.f32.mrf.mxu1 }
 0x180   : > { %v1097_v6 = vpop.f32.mrf.mxu0  ;;  %v1211_v45 = vadd.f32 %v1210_v5, %v1091_v35  ;;  %v924_v35 = vsel %vm169_vm0, %v6276_v17, %v641_v47 }
 0x181   : > { %v6630_v10 = vld [vmem:[#allocation3 + $0x18] sm:$0xff] }
 0x182   : > { %5066 = vmatmul.msk.f32.gmra.mxu1 %vm974_vm6, %v955_v22  ;;  %v643_v47 = vpop.permute.xlu0 %642 }
 0x183   : > { %5098 = vmatmul.msk.f32.gmra.mxu2 %vm974_vm6, %v6610_v0  ;;  %5036 = vmatmul.msk.f32.gmra.mxu0 %vm974_vm6, %v6610_v0 }
 0x185   : > { %v1329_v8 = vpop.f32.mrf.mxu2 }
 0x186   : > { %v1423_v53 = vadd.f32 %v1329_v8, %v1211_v45  ;;  %v6633_v45 = vsel %vm937_vm5, %v924_v35, %v840_v49 }
 0x187   : > { %v1213_v46 = vpop.f32.mrf.mxu1 }
 0x188   : > { %v1455_v51 = vmax.f32 %v1423_v53, 0.0  ;;  %v1100_v22 = vpop.f32.mrf.mxu0  ;;  %v1214_v18 = vadd.f32 %v1213_v46, %v1094_v50  ;;  %v1849_v50 = vrot.slane %v6630_v10, 2  ;;  %v1651_v46 = vrot.slane %v6630_v10, 1 }
 0x18a   : > { %1488 = vst.msk [vmem:[#allocation3 + $0x21] sm:$0xff] %vm169_vm0, %v1455_v51  ;;  %5067 = vmatmul.msk.f32.gmra.mxu1 %vm974_vm6, %v956_v12 }
 0x18b   : > { %5099 = vmatmul.msk.f32.gmra.mxu2 %vm974_vm6, %v6620_v60  ;;  %5037 = vmatmul.msk.f32.gmra.mxu0 %vm974_vm6, %v6620_v60 }
 0x18e   : > { %v1332_v1 = vpop.f32.mrf.mxu2 }
 0x18f   : > { %v1424_v5 = vadd.f32 %v1332_v1, %v1214_v18  ;;  %v1216_v41 = vpop.f32.mrf.mxu1 }
 0x190   : > { %v6635_v12 = vpop.f32.mrf.mxu0  ;;  %v1217_v1 = vadd.f32 %v1216_v41, %v1097_v6 }
 0x191   : > { %v1456_v8 = vmax.f32 %v1424_v5, 0.0  ;;  %v6637_v58 = vld [vmem:[#allocation3 + $0x20] sm:$0xff]  ;;  %v1543_v23 = vld [vmem:[#allocation3 + $0x28] sm:$0x3]  ;;  %v842_v5 = vpop.permute.xlu1 %841 }
 0x192   : > { %v1850_v53 = vrot.slane %v6637_v58, 2  ;;  %v1852_v17 = vrot.slane %v1543_v23, 2  ;;  %v1652_v51 = vrot.slane %v6637_v58, 1  ;;  %5068 = vmatmul.msk.f32.gmra.mxu1 %vm974_vm6, %v957_v25  ;;  %v925_v25 = vsel %vm169_vm0, %v6318_v19, %v643_v47  ;;  %v6671_v47 = vld [vmem:[#allocation2 + $0x198] sm:$0xff] }
 0x193   : > { %1489 = vst.msk [vmem:[#allocation3 + $0x31] sm:$0xff] %vm169_vm0, %v1456_v8  ;;  %5100 = vmatmul.msk.f32.gmra.mxu2 %vm974_vm6, %v6633_v45  ;;  %5038 = vmatmul.msk.f32.gmra.mxu0 %vm974_vm6, %v6633_v45  ;;  %v9069_v19 = vrot.slane %v6552_v7, 1 }
 0x194   : > { %v1853_v18 = vsel %vm702_vm4, %v1850_v53, %v1852_v17  ;;  %v1851_v35 = vsel %vm702_vm4, %v1849_v50, %v1850_v53  ;;  %v1653_v49 = vsel %vm503_vm3, %v1651_v46, %v1652_v51  ;;  %v587_v17 = vrot.slane %v6579_v11, 1  ;;  %v645_v46 = vpop.permute.xlu2 %644 }
 0x195   : > { %1940 = vrot.lane.b32.xlu0 %v1853_v18, %s5555_s30  ;;  %1938 = vrot.lane.b32.xlu2 %v1851_v35, %s5555_s30  ;;  %v6659_v50 = vsel %vm937_vm5, %v925_v25, %v842_v5  ;;  %v1654_v53 = vrot.slane %v1543_v23, 1  ;;  %v6673_v18 = vld [vmem:[#allocation2 + $0x1a0] sm:$0xff]  ;;  %v926_v23 = vsel %vm169_vm0, %v6320_v27, %v645_v46  ;;  %v844_v35 = vpop.permute.xlu0 %843 }
 0x196   : > { %1740 = vrot.lane.b32.xlu1 %v1653_v49, %s5554_s29  ;;  %v1335_v8 = vpop.f32.mrf.mxu2  ;;  %v588_v11 = vsel %vm503_vm3, %v9069_v19, %v587_v17  ;;  %v9033_v25 = vrot.slane %v6673_v18, 1  ;;  %v6685_v17 = vsel %vm937_vm5, %v926_v23, %v844_v35 }
 0x197   : > { %v1425_v59 = vadd.f32 %v1335_v8, %v1217_v1  ;;  %v1219_v13 = vpop.f32.mrf.mxu1  ;;  %v589_v1 = vrot.slane %v6671_v47, 1 }
 0x198   : > { %v6661_v6 = vpop.f32.mrf.mxu0 }
 0x199   : > { %v1457_v41 = vmax.f32 %v1425_v59, 0.0  ;;  %v1655_v59 = vsel %vm503_vm3, %v1652_v51, %v1654_v53  ;;  %v591_v27 = vsel %vm503_vm3, %v589_v1, %v9033_v25 }
 0x19a   : > { %5069 = vmatmul.msk.f32.gmra.mxu1 %vm974_vm6, %v6593_v21  ;;  %v1220_v21 = vadd.f32 %v1219_v13, %v1100_v22  ;;  %v6687_v51 = vld [vmem:[#allocation3 + $0x30] sm:$0xff] }
 0x19b   : > { %1490 = vst.msk [vmem:[#allocation3 + $0x39] sm:$0xff] %vm169_vm0, %v1457_v41  ;;  %5101 = vmatmul.msk.f32.gmra.mxu2 %vm974_vm6, %v6659_v50  ;;  %5039 = vmatmul.msk.f32.gmra.mxu0 %vm974_vm6, %v6659_v50  ;;  %v647_v41 = vpop.permute.xlu1 %646  ;;  %v1854_v46 = vrot.slane %v6687_v51, 2 }
 0x19c   : > { %v846_v1 = vpop.permute.xlu2 %845 }
 0x19d   : > { %1742 = vrot.lane.b32.xlu2 %v1655_v59, %s5554_s29  ;;  %v649_v25 = vpop.permute.xlu0 %648 }
 0x19e   : > { %660 = vrot.lane.b32.xlu1 %v588_v11, %s5554_s29  ;;  %v1338_v49 = vpop.f32.mrf.mxu2  ;;  %v1656_v11 = vrot.slane %v6687_v51, 1 }
 0x19f   : > { %v1426_v5 = vadd.f32 %v1338_v49, %v1220_v21  ;;  %v1222_v8 = vpop.f32.mrf.mxu1  ;;  %v927_v49 = vsel %vm169_vm0, %v6375_v20, %v647_v41 }
 0x1a0   : > { %v6689_v13 = vpop.f32.mrf.mxu0  ;;  %v1223_v21 = vadd.f32 %v1222_v8, %v6635_v12  ;;  %v788_v12 = vrot.slane %v6671_v47, 2  ;;  %v9036_v8 = vrot.slane %v6673_v18, 2 }
 0x1a1   : > { %v1458_v22 = vmax.f32 %v1426_v5, 0.0 }
 0x1a2   : > { %v6694_v53 = vld [vmem:[#allocation3 + $0x38] sm:$0xff]  ;;  %5070 = vmatmul.msk.f32.gmra.mxu1 %vm974_vm6, %v6610_v0  ;;  %v5115_v0 = vld [vmem:[%s9023_s1 + $0xa0] sm:$0xff]  ;;  %v1546_v5 = vld [vmem:[#allocation3 + $0x40] sm:$0x3] }
 0x1a3   : > { %1491 = vst.msk [vmem:[#allocation3 + $0x49] sm:$0xff] %vm169_vm0, %v1458_v22  ;;  %5102 = vmatmul.msk.f32.gmra.mxu2 %vm974_vm6, %v6685_v17  ;;  %v1855_v19 = vrot.slane %v6694_v53, 2  ;;  %v1657_v59 = vrot.slane %v6694_v53, 1  ;;  %5040 = vmatmul.msk.f32.gmra.mxu0 %vm974_vm6, %v6685_v17  ;;  %v1659_v41 = vrot.slane %v1546_v5, 1 }
 0x1a4   : > { %2342 = vmatpush.msrb.mxu0 %v5115_v0 }
 0x1a5   : > { %662 = vrot.lane.b32.xlu2 %v591_v27, %s5554_s29  ;;  %v1856_v23 = vsel %vm702_vm4, %v1854_v46, %v1855_v19  ;;  %v1658_v35 = vsel %vm503_vm3, %v1656_v11, %v1657_v59  ;;  %v6721_v27 = vsel %vm937_vm5, %v927_v49, %v846_v1  ;;  %v1857_v46 = vrot.slane %v1546_v5, 2 }
 0x1a6   : > { %1942 = vrot.lane.b32.xlu1 %v1856_v23, %s5555_s30  ;;  %1744 = vrot.lane.b32.xlu0 %v1658_v35, %s5554_s29  ;;  %v1341_v22 = vpop.f32.mrf.mxu2  ;;  %v6733_v23 = vld [vmem:[#allocation3] sm:$0xff]  ;;  %v6735_v35 = vld [vmem:[#allocation3 + $0x8] sm:$0xff]  ;;  %v1660_v5 = vsel %vm503_vm3, %v1657_v59, %v1659_v41 }
 0x1a7   : > { %v1427_v0 = vadd.f32 %v1341_v22, %v1223_v21  ;;  %v1225_v30 = vpop.f32.mrf.mxu1  ;;  %v790_v21 = vsel %vm702_vm4, %v788_v12, %v9036_v8  ;;  %v1858_v49 = vsel %vm702_vm4, %v1855_v19, %v1857_v46  ;;  %v928_v22 = vsel %vm169_vm0, %v6379_v42, %v649_v25  ;;  %v850_v42 = vpop.permute.xlu0 %849 }
 0x1a8   : > { %v6723_v11 = vpop.f32.mrf.mxu0  ;;  %v1226_v1 = vadd.f32 %v1225_v30, %v6661_v6  ;;  %v9035_v19 = vrot.slane %v6735_v35, 2 }
 0x1a9   : > { %v1459_v20 = vmax.f32 %v1427_v0, 0.0  ;;  %v848_v0 = vpop.permute.xlu1 %847 }
 0x1aa   : > { %5071 = vmatmul.msk.f32.gmra.mxu1 %vm974_vm6, %v6620_v60  ;;  %v5127_v60 = vld [vmem:[%s9023_s1 + $0x100] sm:$0xff]  ;;  %v6753_v30 = vsel %vm937_vm5, %v928_v22, %v848_v0  ;;  %v6755_v6 = vld [vmem:[#allocation3 + $0x48] sm:$0xff] }
 0x1ab   : > { %1492 = vst.msk [vmem:[#allocation3 + $0x51] sm:$0xff] %vm169_vm0, %v1459_v20  ;;  %5103 = vmatmul.msk.f32.gmra.mxu2 %vm974_vm6, %v6721_v27  ;;  %5041 = vmatmul.msk.f32.gmra.mxu0 %vm974_vm6, %v6721_v27  ;;  %v1844_v20 = vrot.slane %v6733_v23, 2  ;;  %v1661_v22 = vrot.slane %v6755_v6, 1 }
 0x1ac   : > { %2461 = vmatpush.msrb.mxu1 %v5127_v60 }
 0x1ad   : > { %1944 = vrot.lane.b32.xlu2 %v1858_v49, %s5555_s30  ;;  %v1846_v41 = vsel %vm702_vm4, %v1844_v20, %v9035_v19  ;;  %v651_v49 = vpop.permute.xlu2 %650 }
 0x1ae   : > { %1746 = vrot.lane.b32.xlu1 %v1660_v5, %s5554_s29  ;;  %861 = vrot.lane.b32.xlu0 %v790_v21, %s5555_s30  ;;  %v1344_v12 = vpop.f32.mrf.mxu2 }
 0x1af   : > { %v1428_v46 = vadd.f32 %v1344_v12, %v1226_v1  ;;  %v1228_v60 = vpop.f32.mrf.mxu1  ;;  %v1859_v1 = vrot.slane %v6755_v6, 2 }
 0x1b0   : > { %v6757_v59 = vpop.f32.mrf.mxu0  ;;  %v1229_v12 = vadd.f32 %v1228_v60, %v6689_v13 }
 0x1b1   : > { %v1460_v25 = vmax.f32 %v1428_v46, 0.0  ;;  %v929_v46 = vsel %vm169_vm0, %v6433_v52, %v651_v49 }
 0x1b2   : > { %v6762_v21 = vld [vmem:[#allocation3 + $0x50] sm:$0xff]  ;;  %5072 = vmatmul.msk.f32.gmra.mxu1 %vm974_vm6, %v6633_v45  ;;  %v1549_v8 = vld [vmem:[#allocation3 + $0x58] sm:$0x3]  ;;  %v6786_v13 = vsel %vm937_vm5, %v929_v46, %v850_v42  ;;  %v9040_v46 = vrot.slane %v6735_v35, 1 }
 0x1b3   : > { %1493 = vst.msk [vmem:[#allocation3 + $0x61] sm:$0xff] %vm169_vm0, %v1460_v25  ;;  %5104 = vmatmul.msk.f32.gmra.mxu2 %vm974_vm6, %v6753_v30  ;;  %v1860_v5 = vrot.slane %v6762_v21, 2  ;;  %v1662_v0 = vrot.slane %v6762_v21, 1  ;;  %5042 = vmatmul.msk.f32.gmra.mxu0 %vm974_vm6, %v6753_v30  ;;  %v6780_v25 = vld [vmem:[#allocation2 + $0x1a8] sm:$0x3]  ;;  %v1862_v49 = vrot.slane %v1549_v8, 2 }
 0x1b4   : > { %v592_v60 = vrot.slane %v6780_v25, 1  ;;  %v1664_v44 = vrot.slane %v1549_v8, 1 }
 0x1b5   : > { %v1861_v45 = vsel %vm702_vm4, %v1859_v1, %v1860_v5  ;;  %v1663_v20 = vsel %vm503_vm3, %v1661_v22, %v1662_v0  ;;  %v852_v1 = vpop.permute.xlu1 %851  ;;  %v1863_v8 = vsel %vm702_vm4, %v1860_v5, %v1862_v49  ;;  %v854_v5 = vpop.permute.xlu2 %853 }
 0x1b6   : > { %1934 = vrot.lane.b32.xlu1 %v1846_v41, %s5555_s30  ;;  %1946 = vrot.lane.b32.xlu0 %v1861_v45, %s5555_s30  ;;  %v1347_v19 = vpop.f32.mrf.mxu2  ;;  %v653_v41 = vpop.permute.xlu0 %652 }
 0x1b7   : > { %1748 = vrot.lane.b32.xlu2 %v1663_v20, %s5554_s29  ;;  %v1429_v14 = vadd.f32 %v1347_v19, %v1229_v12  ;;  %v1231_v48 = vpop.f32.mrf.mxu1  ;;  %v9070_v19 = vrot.slane %v6673_v18, 1  ;;  %v1665_v12 = vsel %vm503_vm3, %v1662_v0, %v1664_v44  ;;  %v1646_v20 = vrot.slane %v6733_v23, 1 }
 0x1b8   : > { %v6789_v22 = vpop.f32.mrf.mxu0 }
 0x1b9   : > { %v1461_v52 = vmax.f32 %v1429_v14, 0.0  ;;  %v593_v42 = vsel %vm503_vm3, %v9070_v19, %v592_v60  ;;  %v1232_v14 = vadd.f32 %v1231_v48, %v6723_v11 }
 0x1ba   : > { %5073 = vmatmul.msk.f32.gmra.mxu1 %vm974_vm6, %v6659_v50  ;;  %v930_v50 = vsel %vm169_vm0, %v6440_v56, %v653_v41  ;;  %v6814_v44 = vld [vmem:[#allocation3 + $0x60] sm:$0xff] }
 0x1bb   : > { %1494 = vst.msk [vmem:[#allocation3 + $0x69] sm:$0xff] %vm169_vm0, %v1461_v52  ;;  %5105 = vmatmul.msk.f32.gmra.mxu2 %vm974_vm6, %v6786_v13  ;;  %5043 = vmatmul.msk.f32.gmra.mxu0 %vm974_vm6, %v6786_v13  ;;  %v6812_v11 = vsel %vm937_vm5, %v930_v50, %v852_v1  ;;  %v1648_v52 = vsel %vm503_vm3, %v1646_v20, %v9040_v46  ;;  %v1864_v1 = vrot.slane %v6814_v44, 2  ;;  %v791_v46 = vrot.slane %v6780_v25, 2 }
 0x1bd   : > { %v655_v41 = vpop.permute.xlu1 %654 }
 0x1be   : > { %1948 = vrot.lane.b32.xlu1 %v1863_v8, %s5555_s30  ;;  %1750 = vrot.lane.b32.xlu0 %v1665_v12, %s5554_s29  ;;  %v1350_v45 = vpop.f32.mrf.mxu2  ;;  %v931_v50 = vsel %vm169_vm0, %v6483_v54, %v655_v41  ;;  %v657_v54 = vpop.permute.xlu2 %656  ;;  %v9071_v41 = vrot.slane %v6673_v18, 2 }
 0x1bf   : > { %664 = vrot.lane.b32.xlu2 %v593_v42, %s5554_s29  ;;  %v1430_v60 = vadd.f32 %v1350_v45, %v1232_v14  ;;  %v1234_v48 = vpop.f32.mrf.mxu1  ;;  %v1666_v42 = vrot.slane %v6814_v44, 1 }
 0x1c0   : > { %v6816_v56 = vpop.f32.mrf.mxu0  ;;  %v1235_v8 = vadd.f32 %v1234_v48, %v6757_v59  ;;  %v6844_v59 = vsel %vm937_vm5, %v931_v50, %v854_v5  ;;  %v792_v25 = vsel %vm702_vm4, %v9071_v41, %v791_v46  ;;  %v1540_v5 = vld [vmem:[#allocation3 + $0x10] sm:$0x3] }
 0x1c1   : > { %v1462_v0 = vmax.f32 %v1430_v60, 0.0 }
 0x1c2   : > { %v6821_v49 = vld [vmem:[#allocation3 + $0x68] sm:$0xff]  ;;  %5074 = vmatmul.msk.f32.gmra.mxu1 %vm974_vm6, %v6685_v17  ;;  %v1552_v20 = vld [vmem:[#allocation3 + $0x70] sm:$0x3] }
 0x1c3   : > { %1495 = vst.msk [vmem:[#allocation3 + $0x79] sm:$0xff] %vm169_vm0, %v1462_v0  ;;  %5106 = vmatmul.msk.f32.gmra.mxu2 %vm974_vm6, %v6812_v11  ;;  %v1865_v19 = vrot.slane %v6821_v49, 2  ;;  %v1667_v14 = vrot.slane %v6821_v49, 1  ;;  %5044 = vmatmul.msk.f32.gmra.mxu0 %vm974_vm6, %v6812_v11  ;;  %v1867_v55 = vrot.slane %v1552_v20, 2 }
 0x1c5   : > { %v1866_v17 = vsel %vm702_vm4, %v1864_v1, %v1865_v19  ;;  %v1668_v12 = vsel %vm503_vm3, %v1666_v42, %v1667_v14  ;;  %v1669_v42 = vrot.slane %v1552_v20, 1  ;;  %v1649_v20 = vrot.slane %v1540_v5, 1 }
 0x1c6   : > { %1736 = vrot.lane.b32.xlu0 %v1648_v52, %s5554_s29  ;;  %1752 = vrot.lane.b32.xlu1 %v1668_v12, %s5554_s29  ;;  %v1353_v45 = vpop.f32.mrf.mxu2  ;;  %v856_v52 = vpop.permute.xlu0 %855  ;;  %v1868_v12 = vsel %vm702_vm4, %v1865_v19, %v1867_v55  ;;  %v9072_v19 = vrot.slane %v6735_v35, 1 }
 0x1c7   : > { %1950 = vrot.lane.b32.xlu2 %v1866_v17, %s5555_s30  ;;  %v1431_v60 = vadd.f32 %v1353_v45, %v1235_v8  ;;  %v1237_v0 = vpop.f32.mrf.mxu1  ;;  %v1670_v17 = vsel %vm503_vm3, %v1667_v14, %v1669_v42 }
 0x1c8   : > { %v1124_v48 = vpop.f32.mrf.mxu0  ;;  %v1238_v8 = vadd.f32 %v1237_v0, %v6789_v22  ;;  %v1650_v42 = vsel %vm503_vm3, %v9072_v19, %v1649_v20 }
 0x1c9   : > { %v1463_v1 = vmax.f32 %v1431_v60, 0.0  ;;  %v1847_v60 = vrot.slane %v1540_v5, 2  ;;  %v5126_v5 = vld [vmem:[%s9023_s1 + $0xf8] sm:$0xff] }
 0x1ca   : > { %5075 = vmatmul.msk.f32.gmra.mxu1 %vm974_vm6, %v6721_v27  ;;  %v932_v27 = vsel %vm169_vm0, %v6487_v28, %v657_v54  ;;  %v6867_v14 = vld [vmem:[#allocation3 + $0x78] sm:$0xff]  ;;  %v9073_v54 = vrot.slane %v6735_v35, 2 }
 0x1cb   : > { %1496 = vst.msk [vmem:[#allocation3 + $0x81] sm:$0xff] %vm169_vm0, %v1463_v1  ;;  %5107 = vmatmul.msk.f32.gmra.mxu2 %vm974_vm6, %v6844_v59  ;;  %5045 = vmatmul.msk.f32.gmra.mxu0 %vm974_vm6, %v6844_v59  ;;  %v6865_v22 = vsel %vm937_vm5, %v932_v27, %v856_v52  ;;  %v1671_v41 = vrot.slane %v6867_v14, 1 }
 0x1cc   : > { %v1848_v52 = vsel %vm702_vm4, %v9073_v54, %v1847_v60  ;;  %2462 = vmatpush.msrb.mxu1 %v5126_v5 }
 0x1ce   : > { %863 = vrot.lane.b32.xlu0 %v792_v25, %s5555_s30  ;;  %1754 = vrot.lane.b32.xlu1 %v1670_v17, %s5554_s29  ;;  %v1356_v50 = vpop.f32.mrf.mxu2  ;;  %v659_v55 = vpop.permute.xlu0 %658 }
 0x1cf   : > { %1952 = vrot.lane.b32.xlu2 %v1868_v12, %s5555_s30  ;;  %v1432_v46 = vadd.f32 %v1356_v50, %v1238_v8  ;;  %v1240_v45 = vpop.f32.mrf.mxu1  ;;  %v933_v27 = vsel %vm169_vm0, %v6548_v9, %v659_v55  ;;  %v858_v12 = vpop.permute.xlu1 %857 }
 0x1d0   : > { %v1127_v0 = vpop.f32.mrf.mxu0  ;;  %v1241_v8 = vadd.f32 %v1240_v45, %v6816_v56 }
 0x1d1   : > { %v1464_v28 = vmax.f32 %v1432_v46, 0.0 }
 0x1d2   : > { %v6869_v1 = vld [vmem:[#allocation3 + $0x80] sm:$0xff]  ;;  %5076 = vmatmul.msk.f32.gmra.mxu1 %vm974_vm6, %v6753_v30  ;;  %v5114_v30 = vld [vmem:[%s9023_s1 + $0x98] sm:$0xff] }
 0x1d3   : > { %1497 = vst.msk [vmem:[#allocation3 + $0x91] sm:$0xff] %vm169_vm0, %v1464_v28  ;;  %5108 = vmatmul.msk.f32.gmra.mxu2 %vm974_vm6, %v6865_v22  ;;  %v1672_v25 = vrot.slane %v6869_v1, 1  ;;  %5046 = vmatmul.msk.f32.gmra.mxu0 %vm974_vm6, %v6865_v22  ;;  %v1555_v46 = vld [vmem:[#allocation3 + $0x88] sm:$0x3]  ;;  %v970_v28 = vsel %vm937_vm5, %v933_v27, %v858_v12  ;;  %v1870_v19 = vrot.slane %v6869_v1, 2  ;;  %v5124_v27 = vld [vmem:[%s9023_s1 + $0xe8] sm:$0xff] }
 0x1d4   : > { %2343 = vmatpush.msrb.mxu0 %v5114_v30  ;;  %v1674_v54 = vrot.slane %v1555_v46, 1  ;;  %v1872_v9 = vrot.slane %v1555_v46, 2  ;;  %2220 = vmatpush.msra.mxu3 %v5124_v27 }
 0x1d5   : > { %v1673_v17 = vsel %vm503_vm3, %v1671_v41, %v1672_v25 }
 0x1d6   : > { %1738 = vrot.lane.b32.xlu0 %v1650_v42, %s5554_s29  ;;  %1936 = vrot.lane.b32.xlu1 %v1848_v52, %s5555_s30  ;;  %v1359_v50 = vpop.f32.mrf.mxu2  ;;  %v1869_v42 = vrot.slane %v6867_v14, 2  ;;  %v1675_v41 = vsel %vm503_vm3, %v1672_v25, %v1674_v54  ;;  %v1873_v30 = vsel %vm702_vm4, %v1870_v19, %v1872_v9  ;;  %v5122_v9 = vld [vmem:[%s9023_s1 + $0xd8] sm:$0xff] }
 0x1d7   : > { %1756 = vrot.lane.b32.xlu2 %v1673_v17, %s5554_s29  ;;  %v1433_v20 = vadd.f32 %v1359_v50, %v1241_v8  ;;  %v1243_v60 = vpop.f32.mrf.mxu1 }
 0x1d8   : > { %v1130_v56 = vpop.f32.mrf.mxu0  ;;  %v1244_v55 = vadd.f32 %v1243_v60, %v1124_v48  ;;  %v1871_v52 = vsel %vm702_vm4, %v1869_v42, %v1870_v19  ;;  %v5123_v60 = vld [vmem:[%s9023_s1 + $0xe0] sm:$0xff] }
 0x1d9   : > { %v1465_v45 = vmax.f32 %v1433_v20, 0.0  ;;  %2221 = vmatpush.msra.mxu3 %v5123_v60 }
 0x1da   : > { %5077 = vmatmul.msk.f32.gmra.mxu1 %vm974_vm6, %v6786_v13  ;;  %v6913_v8 = vld [vmem:[#allocation3 + $0x90] sm:$0xff] }
 0x1db   : > { %1498 = vst.msk [vmem:[#allocation3 + $0x99] sm:$0xff] %vm169_vm0, %v1465_v45  ;;  %5109 = vmatmul.msk.f32.gmra.mxu2 %vm974_vm6, %v970_v28  ;;  %5047 = vmatmul.msk.f32.gmra.mxu0 %vm974_vm6, %v970_v28  ;;  %v1874_v50 = vrot.slane %v6913_v8, 2  ;;  %v1676_v20 = vrot.slane %v6913_v8, 1 }
 0x1dc   : > { %2222 = vmatpush.msra.mxu3 %v5122_v9  ;;  %v6955_v9 = vpop.permute.xlu2 %859 }
 0x1de   : > { %1954 = vrot.lane.b32.xlu0 %v1871_v52, %s5555_s30  ;;  %1758 = vrot.lane.b32.xlu1 %v1675_v41, %s5554_s29  ;;  %v1362_v13 = vpop.f32.mrf.mxu2 }
 0x1df   : > { %1956 = vrot.lane.b32.xlu2 %v1873_v30, %s5555_s30  ;;  %v1434_v48 = vadd.f32 %v1362_v13, %v1244_v55  ;;  %v1246_v5 = vpop.f32.mrf.mxu1 }
 0x1e0   : > { %v1133_v17 = vpop.f32.mrf.mxu0  ;;  %v1247_v28 = vadd.f32 %v1246_v5, %v1127_v0 }
 0x1e1   : > { %v1466_v12 = vmax.f32 %v1434_v48, 0.0  ;;  %v5120_v48 = vld [vmem:[%s9023_s1 + $0xc8] sm:$0xff] }
 0x1e2   : > { %v6918_v25 = vld [vmem:[#allocation3 + $0x98] sm:$0xff]  ;;  %v1558_v46 = vld [vmem:[#allocation3 + $0xa0] sm:$0x3]  ;;  %5078 = vmatmul.msk.f32.gmra.mxu1 %vm974_vm6, %v6812_v11 }
 0x1e3   : > { %1499 = vst.msk [vmem:[#allocation3 + $0xa9] sm:$0xff] %vm169_vm0, %v1466_v12  ;;  %v1875_v45 = vrot.slane %v6918_v25, 2  ;;  %v1677_v19 = vrot.slane %v6918_v25, 1  ;;  %v1679_v54 = vrot.slane %v1558_v46, 1  ;;  %v5121_v11 = vld [vmem:[%s9023_s1 + $0xd0] sm:$0xff]  ;;  %v1877_v27 = vrot.slane %v1558_v46, 2 }
 0x1e4   : > { %2223 = vmatpush.msra.mxu3 %v5121_v11  ;;  %v5119_v12 = vld [vmem:[%s9023_s1 + $0xc0] sm:$0xff] }
 0x1e5   : > { %v1876_v55 = vsel %vm702_vm4, %v1874_v50, %v1875_v45  ;;  %v1680_v42 = vsel %vm503_vm3, %v1677_v19, %v1679_v54  ;;  %v1678_v0 = vsel %vm503_vm3, %v1676_v20, %v1677_v19  ;;  %v1878_v20 = vsel %vm702_vm4, %v1875_v45, %v1877_v27 }
 0x1e6   : > { %1958 = vrot.lane.b32.xlu1 %v1876_v55, %s5555_s30  ;;  %1760 = vrot.lane.b32.xlu0 %v1678_v0, %s5554_s29  ;;  %v1365_v52 = vpop.f32.mrf.mxu2 }
 0x1e7   : > { %1762 = vrot.lane.b32.xlu2 %v1680_v42, %s5554_s29  ;;  %v1435_v41 = vadd.f32 %v1365_v52, %v1247_v28  ;;  %v1249_v30 = vpop.f32.mrf.mxu1  ;;  %2224 = vmatpush.msra.mxu3 %v5120_v48 }
 0x1e8   : > { %v1136_v13 = vpop.f32.mrf.mxu0  ;;  %v1250_v50 = vadd.f32 %v1249_v30, %v1130_v56 }
 0x1e9   : > { %v1467_v5 = vmax.f32 %v1435_v41, 0.0  ;;  %2225 = vmatpush.msra.mxu3 %v5119_v12 }
 0x1ea   : > { %5079 = vmatmul.msk.f32.gmra.mxu1 %vm974_vm6, %v6844_v59  ;;  %v6953_v28 = vld [vmem:[#allocation3 + $0xa8] sm:$0xff] }
 0x1eb   : > { %1500 = vst.msk [vmem:[#allocation3 + $0xb1] sm:$0xff] %vm169_vm0, %v1467_v5  ;;  %v1681_v11 = vrot.slane %v6953_v28, 1  ;;  %v1879_v55 = vrot.slane %v6953_v28, 2 }
 0x1ee   : > { %1960 = vrot.lane.b32.xlu0 %v1878_v20, %s5555_s30  ;;  %v1368_v60 = vpop.f32.mrf.mxu2 }
 0x1ef   : > { %v1436_v46 = vadd.f32 %v1368_v60, %v1250_v50  ;;  %v1252_v19 = vpop.f32.mrf.mxu1  ;;  %v1939_v60 = vpop.permute.xlu2 %1938 }
 0x1f0   : > { %v1139_v54 = vpop.f32.mrf.mxu0  ;;  %v1253_v45 = vadd.f32 %v1252_v19, %v1133_v17  ;;  %v5125_v19 = vld [vmem:[%s9023_s1 + $0xf0] sm:$0xff] }
 0x1f1   : > { %v1468_v59 = vmax.f32 %v1436_v46, 0.0  ;;  %2463 = vmatpush.msrb.mxu1 %v5125_v19 }
 0x1f2   : > { %v6959_v42 = vld [vmem:[#allocation3 + $0xb0] sm:$0xff]  ;;  %v1561_v56 = vld [vmem:[#allocation3 + $0xb8] sm:$0x3]  ;;  %5080 = vmatmul.msk.f32.gmra.mxu1 %vm974_vm6, %v6865_v22 }
 0x1f3   : > { %1501 = vst.msk [vmem:[#allocation3 + $0xc1] sm:$0xff] %vm169_vm0, %v1468_v59  ;;  %v1682_v0 = vrot.slane %v6959_v42, 1  ;;  %v1684_v52 = vrot.slane %v1561_v56, 1  ;;  %v1880_v41 = vrot.slane %v6959_v42, 2  ;;  %v1882_v20 = vrot.slane %v1561_v56, 2  ;;  %v5113_v59 = vld [vmem:[%s9023_s1 + $0x90] sm:$0xff] }
 0x1f4   : > { %2344 = vmatpush.msrb.mxu0 %v5113_v59 }
 0x1f5   : > { %v1685_v30 = vsel %vm503_vm3, %v1682_v0, %v1684_v52  ;;  %v1683_v48 = vsel %vm503_vm3, %v1681_v11, %v1682_v0  ;;  %v1881_v5 = vsel %vm702_vm4, %v1879_v55, %v1880_v41  ;;  %v1883_v11 = vsel %vm702_vm4, %v1880_v41, %v1882_v20 }
 0x1f6   : > { %1766 = vrot.lane.b32.xlu0 %v1685_v30, %s5554_s29  ;;  %1764 = vrot.lane.b32.xlu1 %v1683_v48, %s5554_s29  ;;  %v1371_v27 = vpop.f32.mrf.mxu2 }
 0x1f7   : > { %v1437_v22 = vadd.f32 %v1371_v27, %v1253_v45  ;;  %1962 = vrot.lane.b32.xlu2 %v1881_v5, %s5555_s30  ;;  %v1255_v17 = vpop.f32.mrf.mxu1  ;;  %v1743_v20 = vpop.permute.xlu2 %1742 }
 0x1f8   : > { %v1142_v12 = vpop.f32.mrf.mxu0  ;;  %v1256_v46 = vadd.f32 %v1255_v17, %v1136_v13 }
 0x1f9   : > { %v1469_v50 = vmax.f32 %v1437_v22, 0.0 }
 0x1fa   : > { %v6981_v56 = vld [vmem:[#allocation3 + $0xc0] sm:$0xff] }
 0x1fb   : > { %1502 = vst.msk [vmem:[#allocation3 + $0xc9] sm:$0xff] %vm169_vm0, %v1469_v50  ;;  %v1884_v30 = vrot.slane %v6981_v56, 2  ;;  %v1686_v48 = vrot.slane %v6981_v56, 1 }
 0x1fe   : > { %1964 = vrot.lane.b32.xlu1 %v1883_v11, %s5555_s30  ;;  %v1374_v55 = vpop.f32.mrf.mxu2 }
 0x1ff   : > { %v1438_v45 = vadd.f32 %v1374_v55, %v1256_v46  ;;  %v1258_v0 = vpop.f32.mrf.mxu1 }
 0x200   : > { %v1145_v13 = vpop.f32.mrf.mxu0  ;;  %v1259_v41 = vadd.f32 %v1258_v0, %v1139_v54 }
 0x201   : > { %v1470_v52 = vmax.f32 %v1438_v45, 0.0 }
 0x202   : > { %v6985_v5 = vld [vmem:[#allocation3 + $0xc8] sm:$0xff]  ;;  %v1564_v27 = vld [vmem:[#allocation3 + $0xd0] sm:$0x3] }
 0x203   : > { %1503 = vst.msk [vmem:[#allocation3 + $0xd9] sm:$0xff] %vm169_vm0, %v1470_v52  ;;  %v1885_v22 = vrot.slane %v6985_v5, 2  ;;  %v1687_v17 = vrot.slane %v6985_v5, 1  ;;  %v1689_v50 = vrot.slane %v1564_v27, 1  ;;  %v1887_v0 = vrot.slane %v1564_v27, 2  ;;  %v663_v27 = vpop.permute.xlu2 %662 }
 0x205   : > { %v1886_v46 = vsel %vm702_vm4, %v1884_v30, %v1885_v22  ;;  %v1690_v19 = vsel %vm503_vm3, %v1687_v17, %v1689_v50  ;;  %v1688_v59 = vsel %vm503_vm3, %v1686_v48, %v1687_v17  ;;  %v1888_v17 = vsel %vm702_vm4, %v1885_v22, %v1887_v0 }
 0x206   : > { %1966 = vrot.lane.b32.xlu0 %v1886_v46, %s5555_s30  ;;  %1770 = vrot.lane.b32.xlu1 %v1690_v19, %s5554_s29  ;;  %v1377_v11 = vpop.f32.mrf.mxu2 }
 0x207   : > { %1768 = vrot.lane.b32.xlu2 %v1688_v59, %s5554_s29  ;;  %v1439_v54 = vadd.f32 %v1377_v11, %v1259_v41  ;;  %v1261_v45 = vpop.f32.mrf.mxu1  ;;  %v1941_v19 = vpop.permute.xlu0 %1940 }
 0x208   : > { %v1741_v55 = vpop.permute.xlu1 %1740  ;;  %v1148_v30 = vpop.f32.mrf.mxu0  ;;  %v1262_v48 = vadd.f32 %v1261_v45, %v1142_v12 }
 0x209   : > { %v1471_v52 = vmax.f32 %v1439_v54, 0.0  ;;  %v2044_v26 = vsel %vm169_vm0, %v6630_v10, %v1741_v55 }
 0x20a   : > { %v6999_v50 = vsel %vm937_vm5, %v2044_v26, %v1939_v60  ;;  %v7005_v46 = vld [vmem:[#allocation3 + $0xd8] sm:$0xff]  ;;  %v2045_v26 = vsel %vm169_vm0, %v6637_v58, %v1743_v20 }
 0x20b   : > { %1504 = vst.msk [vmem:[#allocation3 + $0xe1] sm:$0xff] %vm169_vm0, %v1471_v52  ;;  %5131 = vmatmul.msk.f32.vlgmr.msra.gmra.mxu3 %vm974_vm6, %v6999_v50  ;;  %v1691_v12 = vrot.slane %v7005_v46, 1  ;;  %v1889_v22 = vrot.slane %v7005_v46, 2  ;;  %v7017_v45 = vsel %vm937_vm5, %v2045_v26, %v1941_v19 }
 0x20e   : > { %v1380_v41 = vpop.f32.mrf.mxu2 }
 0x20f   : > { %1968 = vrot.lane.b32.xlu2 %v1888_v17, %s5555_s30  ;;  %v1440_v10 = vadd.f32 %v1380_v41, %v1262_v48  ;;  %v1264_v59 = vpop.f32.mrf.mxu1 }
 0x210   : > { %v661_v60 = vpop.permute.xlu1 %660  ;;  %v1151_v17 = vpop.f32.mrf.mxu0 }
 0x211   : > { %v1472_v11 = vmax.f32 %v1440_v10, 0.0  ;;  %v934_v54 = vsel %vm169_vm0, %v6552_v7, %v661_v60  ;;  %v1265_v7 = vadd.f32 %v1264_v59, %v1145_v13 }
 0x212   : > { %v971_v55 = vsel %vm937_vm5, %v934_v54, %v6955_v9  ;;  %v7019_v0 = vld [vmem:[#allocation3 + $0xe0] sm:$0xff]  ;;  %v1567_v52 = vld [vmem:[#allocation3 + $0xe8] sm:$0x3] }
 0x213   : > { %1505 = vst.msk [vmem:[#allocation3 + $0xf1] sm:$0xff] %vm169_vm0, %v1472_v11  ;;  %5048 = vmatmul.msk.f32.gmra.mxu0 %vm974_vm6, %v971_v55  ;;  %5110 = vmatmul.msk.f32.gmra.mxu2 %vm974_vm6, %v971_v55  ;;  %v1692_v58 = vrot.slane %v7019_v0, 1  ;;  %v1694_v20 = vrot.slane %v1567_v52, 1  ;;  %v1890_v48 = vrot.slane %v7019_v0, 2  ;;  %v1892_v26 = vrot.slane %v1567_v52, 2  ;;  %v1945_v11 = vpop.permute.xlu2 %1944 }
 0x214   : > { %5132 = vmatmul.msk.f32.gmra.mxu3 %vm974_vm6, %v7017_v45 }
 0x215   : > { %v1695_v9 = vsel %vm503_vm3, %v1692_v58, %v1694_v20  ;;  %v1693_v41 = vsel %vm503_vm3, %v1691_v12, %v1692_v58  ;;  %v1891_v19 = vsel %vm702_vm4, %v1889_v22, %v1890_v48 }
 0x216   : > { %1772 = vrot.lane.b32.xlu0 %v1693_v41, %s5554_s29  ;;  %v1383_v10 = vpop.f32.mrf.mxu2  ;;  %1970 = vrot.lane.b32.xlu1 %v1891_v19, %s5555_s30 }
 0x217   : > { %1774 = vrot.lane.b32.xlu2 %v1695_v9, %s5554_s29  ;;  %v1441_v13 = vadd.f32 %v1383_v10, %v1265_v7  ;;  %v1267_v20 = vpop.f32.mrf.mxu1  ;;  %v1893_v7 = vsel %vm702_vm4, %v1890_v48, %v1892_v26 }
 0x218   : > { %v1943_v60 = vpop.permute.xlu1 %1942  ;;  %v1745_v59 = vpop.permute.xlu0 %1744  ;;  %v1268_v22 = vadd.f32 %v1267_v20, %v1148_v30 }
 0x219   : > { %v1473_v54 = vmax.f32 %v1441_v13, 0.0  ;;  %v2046_v55 = vsel %vm169_vm0, %v6687_v51, %v1745_v59  ;;  %v1154_v58 = vpop.f32.mrf.mxu0  ;;  %v935_v51 = vsel %vm169_vm0, %v6671_v47, %v663_v27 }
 0x21a   : > { %v7037_v12 = vsel %vm937_vm5, %v2046_v55, %v1943_v60  ;;  %v7045_v52 = vld [vmem:[#allocation3 + $0xf0] sm:$0xff] }
 0x21b   : > { %1506 = vst.msk [vmem:[#allocation3 + $0xf9] sm:$0xff] %vm169_vm0, %v1473_v54  ;;  %5195 = vmatmul.msk.f32.vlgmr.msrb.gmra.mxu1 %vm974_vm6, %v7037_v12  ;;  %v1696_v13 = vrot.slane %v7045_v52, 1  ;;  %v1894_v59 = vrot.slane %v7045_v52, 2  ;;  %v1749_v55 = vpop.permute.xlu2 %1748 }
 0x21c   : > { %5133 = vmatmul.msk.f32.gmra.mxu3 %vm974_vm6, %v7037_v12 }
 0x21e   : > { %1972 = vrot.lane.b32.xlu0 %v1893_v7, %s5555_s30  ;;  %v1386_v9 = vpop.f32.mrf.mxu2 }
 0x21f   : > { %v1442_v41 = vadd.f32 %v1386_v9, %v1268_v22  ;;  %v1270_v60 = vpop.f32.mrf.mxu1 }
 0x220   : > { %v1747_v19 = vpop.permute.xlu1 %1746  ;;  %v862_v10 = vpop.permute.xlu0 %861 }
 0x221   : > { %v1474_v30 = vmax.f32 %v1442_v41, 0.0  ;;  %v2047_v48 = vsel %vm169_vm0, %v6694_v53, %v1747_v19  ;;  %v972_v26 = vsel %vm937_vm5, %v935_v51, %v862_v10  ;;  %v1271_v53 = vadd.f32 %v1270_v60, %v1151_v17  ;;  %v1157_v10 = vpop.f32.mrf.mxu0 }
 0x222   : > { %5111 = vmatmul.msk.f32.gmra.mxu2 %vm974_vm6, %v972_v26  ;;  %v7057_v47 = vsel %vm937_vm5, %v2047_v48, %v1945_v11  ;;  %v7059_v27 = vld [vmem:[#allocation3 + $0xf8] sm:$0xff]  ;;  %v1570_v54 = vld [vmem:[#allocation3 + $0x100] sm:$0x3] }
 0x223   : > { %1507 = vst.msk [vmem:[#allocation3 + $0x109] sm:$0xff] %vm169_vm0, %v1474_v30  ;;  %5196 = vmatmul.msk.f32.gmra.mxu1 %vm974_vm6, %v7057_v47  ;;  %v1697_v20 = vrot.slane %v7059_v27, 1  ;;  %v1699_v22 = vrot.slane %v1570_v54, 1  ;;  %v1895_v7 = vrot.slane %v7059_v27, 2  ;;  %v1897_v19 = vrot.slane %v1570_v54, 2  ;;  %v665_v54 = vpop.permute.xlu2 %664 }
 0x224   : > { %5134 = vmatmul.msk.f32.gmra.mxu3 %vm974_vm6, %v7057_v47  ;;  %v2048_v30 = vsel %vm169_vm0, %v6755_v6, %v1749_v55 }
 0x225   : > { %v1700_v11 = vsel %vm503_vm3, %v1697_v20, %v1699_v22  ;;  %v1698_v51 = vsel %vm503_vm3, %v1696_v13, %v1697_v20  ;;  %v1896_v9 = vsel %vm702_vm4, %v1894_v59, %v1895_v7  ;;  %v1898_v20 = vsel %vm702_vm4, %v1895_v7, %v1897_v19 }
 0x226   : > { %1778 = vrot.lane.b32.xlu0 %v1700_v11, %s5554_s29  ;;  %1776 = vrot.lane.b32.xlu1 %v1698_v51, %s5554_s29  ;;  %v1389_v41 = vpop.f32.mrf.mxu2 }
 0x227   : > { %v1443_v17 = vadd.f32 %v1389_v41, %v1271_v53  ;;  %1974 = vrot.lane.b32.xlu2 %v1896_v9, %s5555_s30  ;;  %v1273_v59 = vpop.f32.mrf.mxu1 }
 0x228   : > { %v1935_v48 = vpop.permute.xlu1 %1934  ;;  %v1947_v26 = vpop.permute.xlu0 %1946  ;;  %v1274_v53 = vadd.f32 %v1273_v59, %v1154_v58 }
 0x229   : > { %v1475_v60 = vmax.f32 %v1443_v17, 0.0  ;;  %v7077_v13 = vsel %vm937_vm5, %v2048_v30, %v1947_v26 }
 0x22a   : > { %v7086_v55 = vld [vmem:[#allocation3 + $0x108] sm:$0xff] }
 0x22b   : > { %1508 = vst.msk [vmem:[#allocation3 + $0x111] sm:$0xff] %vm169_vm0, %v1475_v60  ;;  %5197 = vmatmul.msk.f32.gmra.mxu1 %vm974_vm6, %v7077_v13  ;;  %v1899_v58 = vrot.slane %v7086_v55, 2  ;;  %v1701_v7 = vrot.slane %v7086_v55, 1  ;;  %v1160_v60 = vpop.f32.mrf.mxu0 }
 0x22c   : > { %5135 = vmatmul.msk.f32.gmra.mxu3 %vm974_vm6, %v7077_v13 }
 0x22e   : > { %1976 = vrot.lane.b32.xlu1 %v1898_v20, %s5555_s30  ;;  %v1392_v6 = vpop.f32.mrf.mxu2 }
 0x22f   : > { %v1444_v22 = vadd.f32 %v1392_v6, %v1274_v53  ;;  %v1276_v17 = vpop.f32.mrf.mxu1 }
 0x230   : > { %v1949_v11 = vpop.permute.xlu1 %1948  ;;  %v1751_v51 = vpop.permute.xlu0 %1750  ;;  %v1277_v59 = vadd.f32 %v1276_v17, %v1157_v10 }
 0x231   : > { %v1476_v9 = vmax.f32 %v1444_v22, 0.0  ;;  %v2049_v41 = vsel %vm169_vm0, %v6762_v21, %v1751_v51  ;;  %v1951_v10 = vpop.permute.xlu2 %1950 }
 0x232   : > { %v7093_v19 = vsel %vm937_vm5, %v2049_v41, %v1949_v11  ;;  %v7095_v30 = vld [vmem:[#allocation3 + $0x110] sm:$0xff]  ;;  %v1573_v26 = vld [vmem:[#allocation3 + $0x118] sm:$0x3] }
 0x233   : > { %1509 = vst.msk [vmem:[#allocation3 + $0x121] sm:$0xff] %vm169_vm0, %v1476_v9  ;;  %5198 = vmatmul.msk.f32.gmra.mxu1 %vm974_vm6, %v7093_v19  ;;  %v1900_v21 = vrot.slane %v7095_v30, 2  ;;  %v1702_v53 = vrot.slane %v7095_v30, 1  ;;  %v1704_v20 = vrot.slane %v1573_v26, 1  ;;  %v1902_v43 = vrot.slane %v1573_v26, 2 }
 0x234   : > { %5136 = vmatmul.msk.f32.gmra.mxu3 %vm974_vm6, %v7093_v19 }
 0x235   : > { %v1901_v6 = vsel %vm702_vm4, %v1899_v58, %v1900_v21  ;;  %v1705_v22 = vsel %vm503_vm3, %v1702_v53, %v1704_v20  ;;  %v1703_v11 = vsel %vm503_vm3, %v1701_v7, %v1702_v53 }
 0x236   : > { %1978 = vrot.lane.b32.xlu0 %v1901_v6, %s5555_s30  ;;  %1782 = vrot.lane.b32.xlu1 %v1705_v22, %s5554_s29  ;;  %v1395_v51 = vpop.f32.mrf.mxu2 }
 0x237   : > { %1780 = vrot.lane.b32.xlu2 %v1703_v11, %s5554_s29  ;;  %v1445_v9 = vadd.f32 %v1395_v51, %v1277_v59  ;;  %v1279_v7 = vpop.f32.mrf.mxu1 }
 0x238   : > { %v1753_v41 = vpop.permute.xlu1 %1752  ;;  %v1737_v17 = vpop.permute.xlu0 %1736  ;;  %v1280_v26 = vadd.f32 %v1279_v7, %v1160_v60 }
 0x239   : > { %v1477_v61 = vmax.f32 %v1445_v9, 0.0  ;;  %v2050_v58 = vsel %vm169_vm0, %v6814_v44, %v1753_v41  ;;  %v2042_v20 = vsel %vm169_vm0, %v6733_v23, %v1737_v17  ;;  %v1903_v44 = vsel %vm702_vm4, %v1900_v21, %v1902_v43  ;;  %v1163_v23 = vpop.f32.mrf.mxu0  ;;  %v1953_v60 = vpop.permute.xlu2 %1952 }
 0x23a   : > { %v2078_v53 = vsel %vm937_vm5, %v2042_v20, %v1935_v48  ;;  %v7116_v6 = vsel %vm937_vm5, %v2050_v58, %v1951_v10  ;;  %v7125_v59 = vld [vmem:[#allocation3 + $0x120] sm:$0xff]  ;;  %v936_v48 = vsel %vm169_vm0, %v6673_v18, %v665_v54 }
 0x23b   : > { %1510 = vst.msk [vmem:[#allocation3 + $0x129] sm:$0xff] %vm169_vm0, %v1477_v61  ;;  %5163 = vmatmul.msk.f32.vlgmr.msrb.gmra.mxu0 %vm974_vm6, %v2078_v53  ;;  %5199 = vmatmul.msk.f32.gmra.mxu1 %vm974_vm6, %v7116_v6  ;;  %v1706_v10 = vrot.slane %v7125_v59, 1  ;;  %v1904_v17 = vrot.slane %v7125_v59, 2 }
 0x23c   : > { %5137 = vmatmul.msk.f32.gmra.mxu3 %vm974_vm6, %v7116_v6 }
 0x23e   : > { %v1398_v22 = vpop.f32.mrf.mxu2 }
 0x23f   : > { %1980 = vrot.lane.b32.xlu2 %v1903_v44, %s5555_s30  ;;  %v1446_v61 = vadd.f32 %v1398_v22, %v1280_v26  ;;  %v1282_v21 = vpop.f32.mrf.mxu1 }
 0x240   : > { %v1755_v11 = vpop.permute.xlu1 %1754  ;;  %v864_v51 = vpop.permute.xlu0 %863  ;;  %v1283_v20 = vadd.f32 %v1282_v21, %v1163_v23 }
 0x241   : > { %v1478_v9 = vmax.f32 %v1446_v61, 0.0  ;;  %v2051_v41 = vsel %vm169_vm0, %v6821_v49, %v1755_v11  ;;  %v973_v43 = vsel %vm937_vm5, %v936_v48, %v864_v51  ;;  %v1166_v23 = vpop.f32.mrf.mxu0 }
 0x242   : > { %5112 = vmatmul.msk.f32.gmra.mxu2 %vm974_vm6, %v973_v43  ;;  %v7137_v18 = vsel %vm937_vm5, %v2051_v41, %v1953_v60  ;;  %v7139_v54 = vld [vmem:[#allocation3 + $0x128] sm:$0xff]  ;;  %v1576_v58 = vld [vmem:[#allocation3 + $0x130] sm:$0x3] }
 0x243   : > { %1511 = vst.msk [vmem:[#allocation3 + $0x139] sm:$0xff] %vm169_vm0, %v1478_v9  ;;  %5200 = vmatmul.msk.f32.gmra.mxu1 %vm974_vm6, %v7137_v18  ;;  %v1707_v49 = vrot.slane %v7139_v54, 1  ;;  %v1709_v7 = vrot.slane %v1576_v58, 1  ;;  %v1905_v53 = vrot.slane %v7139_v54, 2  ;;  %v1907_v11 = vrot.slane %v1576_v58, 2 }
 0x244   : > { %5138 = vmatmul.msk.f32.gmra.mxu3 %vm974_vm6, %v7137_v18 }
 0x245   : > { %v1710_v26 = vsel %vm503_vm3, %v1707_v49, %v1709_v7  ;;  %v1708_v44 = vsel %vm503_vm3, %v1706_v10, %v1707_v49  ;;  %v1906_v48 = vsel %vm702_vm4, %v1904_v17, %v1905_v53  ;;  %v1908_v17 = vsel %vm702_vm4, %v1905_v53, %v1907_v11  ;;  %v1757_v49 = vpop.permute.xlu2 %1756 }
 0x246   : > { %1784 = vrot.lane.b32.xlu0 %v1708_v44, %s5554_s29  ;;  %v1401_v22 = vpop.f32.mrf.mxu2  ;;  %1982 = vrot.lane.b32.xlu1 %v1906_v48, %s5555_s30 }
 0x247   : > { %1786 = vrot.lane.b32.xlu2 %v1710_v26, %s5554_s29  ;;  %v1447_v61 = vadd.f32 %v1401_v22, %v1283_v20  ;;  %v1285_v43 = vpop.f32.mrf.mxu1 }
 0x248   : > { %v1937_v51 = vpop.permute.xlu1 %1936  ;;  %v1739_v60 = vpop.permute.xlu0 %1738  ;;  %v1286_v21 = vadd.f32 %v1285_v43, %v1166_v23 }
 0x249   : > { %v1479_v9 = vmax.f32 %v1447_v61, 0.0  ;;  %v2043_v41 = vsel %vm169_vm0, %v6735_v35, %v1739_v60  ;;  %v2052_v35 = vsel %vm169_vm0, %v6867_v14, %v1757_v49  ;;  %v1169_v44 = vpop.f32.mrf.mxu0 }
 0x24a   : > { %v2079_v10 = vsel %vm937_vm5, %v2043_v41, %v1937_v51  ;;  %v7161_v20 = vld [vmem:[#allocation3 + $0x138] sm:$0xff] }
 0x24b   : > { %1512 = vst.msk [vmem:[#allocation3 + $0x141] sm:$0xff] %vm169_vm0, %v1479_v9  ;;  %5164 = vmatmul.msk.f32.gmra.mxu0 %vm974_vm6, %v2079_v10  ;;  %v1711_v23 = vrot.slane %v7161_v20, 1  ;;  %v1909_v53 = vrot.slane %v7161_v20, 2 }
 0x24e   : > { %1984 = vrot.lane.b32.xlu0 %v1908_v17, %s5555_s30  ;;  %v1404_v58 = vpop.f32.mrf.mxu2 }
 0x24f   : > { %v1448_v7 = vadd.f32 %v1404_v58, %v1286_v21  ;;  %v1288_v61 = vpop.f32.mrf.mxu1 }
 0x250   : > { %v1955_v26 = vpop.permute.xlu0 %1954  ;;  %v1759_v51 = vpop.permute.xlu1 %1758  ;;  %v1289_v60 = vadd.f32 %v1288_v61, %v1169_v44 }
 0x251   : > { %v1480_v48 = vmax.f32 %v1448_v7, 0.0  ;;  %v7166_v22 = vsel %vm937_vm5, %v2052_v35, %v1955_v26  ;;  %v2053_v49 = vsel %vm169_vm0, %v6869_v1, %v1759_v51  ;;  %v1957_v35 = vpop.permute.xlu2 %1956 }
 0x252   : > { %5139 = vmatmul.msk.f32.gmra.mxu3 %vm974_vm6, %v7166_v22  ;;  %5201 = vmatmul.msk.f32.gmra.mxu1 %vm974_vm6, %v7166_v22  ;;  %v7174_v11 = vld [vmem:[#allocation3 + $0x140] sm:$0xff]  ;;  %v1579_v14 = vld [vmem:[#allocation3 + $0x148] sm:$0x3]  ;;  %v7190_v44 = vsel %vm937_vm5, %v2053_v49, %v1957_v35  ;;  %v5232_v35 = vld [vmem:[%s9023_s1 + $0x148] sm:$0xff] }
 0x253   : > { %1513 = vst.msk [vmem:[#allocation3 + $0x151] sm:$0xff] %vm169_vm0, %v1480_v48  ;;  %5165 = vmatmul.msk.f32.gmra.mxu0 %vm974_vm6, %v6999_v50  ;;  %v1712_v9 = vrot.slane %v7174_v11, 1  ;;  %v1714_v41 = vrot.slane %v1579_v14, 1  ;;  %v1910_v43 = vrot.slane %v7174_v11, 2  ;;  %v1912_v7 = vrot.slane %v1579_v14, 2  ;;  %v1172_v48 = vpop.f32.mrf.mxu0  ;;  %3477 = vmatpush.msrb.mxu3 %v5232_v35 }
 0x255   : > { %v1715_v10 = vsel %vm503_vm3, %v1712_v9, %v1714_v41  ;;  %v1713_v21 = vsel %vm503_vm3, %v1711_v23, %v1712_v9  ;;  %v1911_v17 = vsel %vm702_vm4, %v1909_v53, %v1910_v43  ;;  %v1913_v23 = vsel %vm702_vm4, %v1910_v43, %v1912_v7  ;;  %v5238_v7 = vld [vmem:[%s9023_s1 + $0x178] sm:$0xff] }
 0x256   : > { %1790 = vrot.lane.b32.xlu0 %v1715_v10, %s5554_s29  ;;  %1788 = vrot.lane.b32.xlu1 %v1713_v21, %s5554_s29  ;;  %v1407_v50 = vpop.f32.mrf.mxu2 }
 0x257   : > { %v1449_v58 = vadd.f32 %v1407_v50, %v1289_v60  ;;  %1986 = vrot.lane.b32.xlu2 %v1911_v17, %s5555_s30  ;;  %v1291_v1 = vpop.f32.mrf.mxu1  ;;  %3358 = vmatpush.msrb.mxu2 %v5238_v7 }
 0x258   : > { %v1761_v61 = vpop.permute.xlu0 %1760  ;;  %v1292_v53 = vadd.f32 %v1291_v1, %v1172_v48  ;;  %v1959_v14 = vpop.permute.xlu1 %1958 }
 0x259   : > { %v1481_v26 = vmax.f32 %v1449_v58, 0.0  ;;  %v2054_v51 = vsel %vm169_vm0, %v6913_v8, %v1761_v61 }
 0x25a   : > { %5140 = vmatmul.msk.f32.gmra.mxu3 %vm974_vm6, %v7190_v44  ;;  %5202 = vmatmul.msk.f32.gmra.mxu1 %vm974_vm6, %v7190_v44  ;;  %v7203_v60 = vld [vmem:[#allocation3 + $0x150] sm:$0xff]  ;;  %v7206_v10 = vsel %vm937_vm5, %v2054_v51, %v1959_v14 }
 0x25b   : > { %1514 = vst.msk [vmem:[#allocation3 + $0x159] sm:$0xff] %vm169_vm0, %v1481_v26  ;;  %5166 = vmatmul.msk.f32.gmra.mxu0 %vm974_vm6, %v7017_v45  ;;  %v1914_v21 = vrot.slane %v7203_v60, 2  ;;  %v1716_v45 = vrot.slane %v7203_v60, 1  ;;  %v1763_v26 = vpop.permute.xlu2 %1762 }
 0x25e   : > { %1988 = vrot.lane.b32.xlu1 %v1913_v23, %s5555_s30  ;;  %v1410_v9 = vpop.f32.mrf.mxu2  ;;  %v2055_v23 = vsel %vm169_vm0, %v6918_v25, %v1763_v26 }
 0x25f   : > { %v1450_v41 = vadd.f32 %v1410_v9, %v1292_v53 }
 0x260   : > { %v1961_v61 = vpop.permute.xlu0 %1960 }
 0x261   : > { %v1482_v17 = vmax.f32 %v1450_v41, 0.0  ;;  %v7236_v14 = vsel %vm937_vm5, %v2055_v23, %v1961_v61  ;;  %v1175_v23 = vpop.f32.mrf.mxu0 }
 0x262   : > { %5141 = vmatmul.msk.f32.gmra.mxu3 %vm974_vm6, %v7206_v10  ;;  %5203 = vmatmul.msk.f32.gmra.mxu1 %vm974_vm6, %v7206_v10  ;;  %v7214_v8 = vld [vmem:[#allocation3 + $0x158] sm:$0xff]  ;;  %v1582_v43 = vld [vmem:[#allocation3 + $0x160] sm:$0x3] }
 0x263   : > { %5167 = vmatmul.msk.f32.gmra.mxu0 %vm974_vm6, %v7037_v12  ;;  %v1915_v49 = vrot.slane %v7214_v8, 2  ;;  %v1717_v50 = vrot.slane %v7214_v8, 1  ;;  %v1719_v58 = vrot.slane %v1582_v43, 1  ;;  %1515 = vst.msk [vmem:[#allocation3 + $0x169] sm:$0xff] %vm169_vm0, %v1482_v17  ;;  %v1917_v53 = vrot.slane %v1582_v43, 2  ;;  %v1963_v25 = vpop.permute.xlu2 %1962 }
 0x265   : > { %v1916_v1 = vsel %vm702_vm4, %v1914_v21, %v1915_v49  ;;  %v1720_v12 = vsel %vm503_vm3, %v1717_v50, %v1719_v58  ;;  %v1718_v48 = vsel %vm503_vm3, %v1716_v45, %v1717_v50  ;;  %v1918_v9 = vsel %vm702_vm4, %v1915_v49, %v1917_v53  ;;  %v5244_v45 = vld [vmem:[%s9023_s1 + $0x1a8] sm:$0xff]  ;;  %v1294_v49 = vpop.f32.mrf.mxu1 }
 0x266   : > { %1990 = vrot.lane.b32.xlu0 %v1916_v1, %s5555_s30  ;;  %1794 = vrot.lane.b32.xlu1 %v1720_v12, %s5554_s29 }
 0x267   : > { %1792 = vrot.lane.b32.xlu2 %v1718_v48, %s5554_s29  ;;  %3596 = vmatpush.msra.mxu0 %v5244_v45 }
 0x268   : > { %v1765_v51 = vpop.permute.xlu1 %1764 }
 0x269   : > { %v2056_v41 = vsel %vm169_vm0, %v6953_v28, %v1765_v51  ;;  %v1767_v28 = vpop.permute.xlu0 %1766  ;;  %v1295_v51 = vadd.f32 %v1294_v49, %v1175_v23 }
 0x26a   : > { %5142 = vmatmul.msk.f32.gmra.mxu3 %vm974_vm6, %v7236_v14  ;;  %5204 = vmatmul.msk.f32.gmra.mxu1 %vm974_vm6, %v7236_v14  ;;  %v7249_v21 = vsel %vm937_vm5, %v2056_v41, %v1963_v25  ;;  %v2057_v17 = vsel %vm169_vm0, %v6959_v42, %v1767_v28 }
 0x26b   : > { %5168 = vmatmul.msk.f32.gmra.mxu0 %vm974_vm6, %v7057_v47 }
 0x26f   : > { %1992 = vrot.lane.b32.xlu2 %v1918_v9, %s5555_s30 }
 0x270   : > { %v1965_v47 = vpop.permute.xlu1 %1964 }
 0x271   : > { %v7263_v43 = vsel %vm937_vm5, %v2057_v17, %v1965_v47 }
 0x272   : > { %5143 = vmatmul.msk.f32.gmra.mxu3 %vm974_vm6, %v7249_v21  ;;  %5205 = vmatmul.msk.f32.gmra.mxu1 %vm974_vm6, %v7249_v21 }
 0x273   : > { %5169 = vmatmul.msk.f32.gmra.mxu0 %vm974_vm6, %v7077_v13  ;;  %v1769_v13 = vpop.permute.xlu2 %1768 }
 0x274   : > { %v2058_v58 = vsel %vm169_vm0, %v6981_v56, %v1769_v13  ;;  %v7332_v13 = vld [vmem:[#allocation3 + $0x168] sm:$0xff] }
 0x278   : > { %v1967_v50 = vpop.permute.xlu0 %1966  ;;  %v1771_v7 = vpop.permute.xlu1 %1770 }
 0x279   : > { %v7274_v42 = vsel %vm937_vm5, %v2058_v58, %v1967_v50  ;;  %v2059_v35 = vsel %vm169_vm0, %v6985_v5, %v1771_v7  ;;  %v5243_v50 = vld [vmem:[%s9023_s1 + $0x1a0] sm:$0xff] }
 0x27a   : > { %5144 = vmatmul.msk.f32.gmra.mxu3 %vm974_vm6, %v7263_v43  ;;  %5206 = vmatmul.msk.f32.gmra.mxu1 %vm974_vm6, %v7263_v43 }
 0x27b   : > { %5170 = vmatmul.msk.f32.gmra.mxu0 %vm974_vm6, %v7093_v19  ;;  %v1297_v19 = vpop.f32.mrf.mxu1  ;;  %v1969_v26 = vpop.permute.xlu2 %1968 }
 0x27c   : > { %v7285_v56 = vsel %vm937_vm5, %v2059_v35, %v1969_v26  ;;  %3597 = vmatpush.msra.mxu0 %v5243_v50  ;;  %v1178_v35 = vpop.f32.mrf.mxu0 }
 0x282   : > { %5145 = vmatmul.msk.f32.gmra.mxu3 %vm974_vm6, %v7274_v42  ;;  %5207 = vmatmul.msk.f32.gmra.mxu1 %vm974_vm6, %v7274_v42 }
 0x283   : > { %5171 = vmatmul.msk.f32.gmra.mxu0 %vm974_vm6, %v7116_v6  ;;  %v7295_v48 = vpop.f32.mrf.mxu1  ;;  %v1775_v53 = vpop.permute.xlu2 %1774 }
 0x284   : > { %v2061_v45 = vsel %vm169_vm0, %v7019_v0, %v1775_v53 }
 0x288   : > { %v1773_v1 = vpop.permute.xlu0 %1772  ;;  %v1971_v12 = vpop.permute.xlu1 %1970 }
 0x289   : > { %v2060_v6 = vsel %vm169_vm0, %v7005_v46, %v1773_v1  ;;  %v5237_v46 = vld [vmem:[%s9023_s1 + $0x170] sm:$0xff] }
 0x28a   : > { %5146 = vmatmul.msk.f32.gmra.mxu3 %vm974_vm6, %v7285_v56  ;;  %5208 = vmatmul.msk.f32.gmra.mxu1 %vm974_vm6, %v7285_v56  ;;  %v7300_v61 = vsel %vm937_vm5, %v2060_v6, %v1971_v12 }
 0x28b   : > { %5172 = vmatmul.msk.f32.gmra.mxu0 %vm974_vm6, %v7137_v18  ;;  %v5231_v18 = vld [vmem:[%s9023_s1 + $0x140] sm:$0xff]  ;;  %3359 = vmatpush.msrb.mxu2 %v5237_v46  ;;  %v1975_v58 = vpop.permute.xlu2 %1974  ;;  %v1721_v46 = vrot.slane %v7332_v13, 1 }
 0x28c   : > { %3478 = vmatpush.msrb.mxu3 %v5231_v18  ;;  %v1298_v18 = vadd.f32 %v1297_v19, %v1178_v35 }
 0x28e   : > { %v7297_v5 = vpop.f32.mrf.mxu3 }
 0x290   : > { %v1973_v9 = vpop.permute.xlu0 %1972 }
 0x291   : > { %v7319_v47 = vsel %vm937_vm5, %v2061_v45, %v1973_v9 }
 0x292   : > { %5147 = vmatmul.msk.f32.gmra.mxu3 %vm974_vm6, %v7300_v61  ;;  %5209 = vmatmul.msk.f32.gmra.mxu1 %vm974_vm6, %v7300_v61 }
 0x293   : > { %5173 = vmatmul.msk.f32.gmra.mxu0 %vm974_vm6, %v7166_v22  ;;  %v1781_v35 = vpop.permute.xlu2 %1780 }
 0x296   : > { %v1413_v41 = vpop.f32.mrf.mxu2 }
 0x297   : > { %v1451_v25 = vadd.f32 %v1413_v41, %v1295_v51  ;;  %v7326_v17 = vpop.f32.mrf.mxu3 }
 0x298   : > { %v7316_v28 = vpop.f32.mrf.mxu1  ;;  %v1777_v49 = vpop.permute.xlu1 %1776 }
 0x299   : > { %v1483_v22 = vmax.f32 %v1451_v25, 0.0  ;;  %v2062_v0 = vsel %vm169_vm0, %v7045_v52, %v1777_v49  ;;  %v1779_v53 = vpop.permute.xlu0 %1778 }
 0x29a   : > { %5148 = vmatmul.msk.f32.gmra.mxu3 %vm974_vm6, %v7319_v47  ;;  %5210 = vmatmul.msk.f32.gmra.mxu1 %vm974_vm6, %v7319_v47  ;;  %v7340_v26 = vsel %vm937_vm5, %v2062_v0, %v1975_v58  ;;  %v2063_v19 = vsel %vm169_vm0, %v7059_v27, %v1779_v53 }
 0x29b   : > { %1516 = vst.msk [vmem:[#allocation3 + $0x171] sm:$0xff] %vm169_vm0, %v1483_v22  ;;  %5174 = vmatmul.msk.f32.gmra.mxu0 %vm974_vm6, %v7190_v44  ;;  %v1919_v44 = vrot.slane %v7332_v13, 2  ;;  %v1981_v53 = vpop.permute.xlu2 %1980 }
 0x29f   : > { %v7354_v51 = vpop.f32.mrf.mxu3 }
 0x2a0   : > { %v7337_v7 = vpop.f32.mrf.mxu1  ;;  %v1977_v22 = vpop.permute.xlu1 %1976 }
 0x2a1   : > { %v7367_v50 = vsel %vm937_vm5, %v2063_v19, %v1977_v22  ;;  %v5236_v19 = vld [vmem:[%s9023_s1 + $0x168] sm:$0xff] }
 0x2a2   : > { %5149 = vmatmul.msk.f32.gmra.mxu3 %vm974_vm6, %v7340_v26  ;;  %5211 = vmatmul.msk.f32.gmra.mxu1 %vm974_vm6, %v7340_v26  ;;  %v7346_v52 = vld [vmem:[#allocation3 + $0x170] sm:$0xff]  ;;  %v1585_v1 = vld [vmem:[#allocation3 + $0x178] sm:$0x3] }
 0x2a3   : > { %5175 = vmatmul.msk.f32.gmra.mxu0 %vm974_vm6, %v7206_v10  ;;  %v1920_v6 = vrot.slane %v7346_v52, 2  ;;  %v1722_v12 = vrot.slane %v7346_v52, 1  ;;  %v1724_v23 = vrot.slane %v1585_v1, 1  ;;  %v1922_v58 = vrot.slane %v1585_v1, 2  ;;  %3360 = vmatpush.msrb.mxu2 %v5236_v19 }
 0x2a5   : > { %v1921_v9 = vsel %vm702_vm4, %v1919_v44, %v1920_v6  ;;  %v1725_v41 = vsel %vm503_vm3, %v1722_v12, %v1724_v23  ;;  %v1723_v25 = vsel %vm503_vm3, %v1721_v46, %v1722_v12  ;;  %v1416_v45 = vpop.f32.mrf.mxu2  ;;  %v1923_v44 = vsel %vm702_vm4, %v1920_v6, %v1922_v58  ;;  %v1181_v23 = vpop.f32.mrf.mxu0 }
 0x2a6   : > { %1994 = vrot.lane.b32.xlu1 %v1921_v9, %s5555_s30  ;;  %1798 = vrot.lane.b32.xlu2 %v1725_v41, %s5554_s29  ;;  %v1452_v10 = vadd.f32 %v1416_v45, %v1298_v18  ;;  %v2064_v46 = vsel %vm169_vm0, %v7086_v55, %v1781_v35  ;;  %v1787_v58 = vpop.permute.xlu2 %1786 }
 0x2a7   : > { %1796 = vrot.lane.b32.xlu0 %v1723_v25, %s5554_s29  ;;  %v7377_v12 = vpop.f32.mrf.mxu3 }
 0x2a8   : > { %v1484_v49 = vmax.f32 %v1452_v10, 0.0  ;;  %v7364_v0 = vpop.f32.mrf.mxu1  ;;  %v1979_v27 = vpop.permute.xlu0 %1978 }
 0x2a9   : > { %v7383_v18 = vsel %vm937_vm5, %v2064_v46, %v1979_v27 }
 0x2aa   : > { %1517 = vst.msk [vmem:[#allocation3 + $0x181] sm:$0xff] %vm169_vm0, %v1484_v49  ;;  %5150 = vmatmul.msk.f32.gmra.mxu3 %vm974_vm6, %v7367_v50  ;;  %5212 = vmatmul.msk.f32.gmra.mxu1 %vm974_vm6, %v7367_v50  ;;  %v1301_v49 = vadd.f32 %v7295_v48, %v1181_v23 }
 0x2ab   : > { %5176 = vmatmul.msk.f32.gmra.mxu0 %vm974_vm6, %v7236_v14  ;;  %v1783_v14 = vpop.permute.xlu1 %1782 }
 0x2ac   : > { %v2065_v6 = vsel %vm169_vm0, %v7095_v30, %v1783_v14  ;;  %v5242_v14 = vld [vmem:[%s9023_s1 + $0x198] sm:$0xff] }
 0x2ad   : > { %v7399_v25 = vsel %vm937_vm5, %v2065_v6, %v1981_v53  ;;  %v2067_v6 = vsel %vm169_vm0, %v7139_v54, %v1787_v58  ;;  %3598 = vmatpush.msra.mxu0 %v5242_v14 }
 0x2af   : > { %1996 = vrot.lane.b32.xlu0 %v1923_v44, %s5555_s30  ;;  %v7395_v9 = vpop.f32.mrf.mxu3 }
 0x2b0   : > { %v7389_v1 = vpop.f32.mrf.mxu1 }
 0x2b2   : > { %5151 = vmatmul.msk.f32.gmra.mxu3 %vm974_vm6, %v7383_v18  ;;  %5213 = vmatmul.msk.f32.gmra.mxu1 %vm974_vm6, %v7383_v18 }
 0x2b3   : > { %5177 = vmatmul.msk.f32.gmra.mxu0 %vm974_vm6, %v7249_v21 }
 0x2b8   : > { %v2346_v55 = vpop.f32.mrf.mxu0  ;;  %v1785_v45 = vpop.permute.xlu0 %1784 }
 0x2b9   : > { %v2347_v41 = vadd.f32 %v2346_v55, %v7297_v5  ;;  %v7408_v22 = vpop.f32.mrf.mxu1  ;;  %v2066_v5 = vsel %vm169_vm0, %v7125_v59, %v1785_v45  ;;  %v1983_v10 = vpop.permute.xlu1 %1982  ;;  %v7454_v45 = vld [vmem:[#allocation3 + $0x180] sm:$0xff] }
 0x2ba   : > { %5152 = vmatmul.msk.f32.gmra.mxu3 %vm974_vm6, %v7399_v25  ;;  %5214 = vmatmul.msk.f32.gmra.mxu1 %vm974_vm6, %v7399_v25  ;;  %v7426_v59 = vpop.f32.mrf.mxu3 }
 0x2bb   : > { %v2561_v21 = vadd.f32 %v7316_v28, %v2347_v41  ;;  %5178 = vmatmul.msk.f32.gmra.mxu0 %vm974_vm6, %v7263_v43  ;;  %v5230_v28 = vld [vmem:[%s9023_s1 + $0x138] sm:$0xff]  ;;  %v7420_v43 = vsel %vm937_vm5, %v2066_v5, %v1983_v10  ;;  %v1987_v5 = vpop.permute.xlu2 %1986 }
 0x2bc   : > { %3479 = vmatpush.msrb.mxu3 %v5230_v28  ;;  %v1924_v28 = vrot.slane %v7454_v45, 2 }
 0x2bd   : > { %v2593_v30 = vmax.f32 %v2561_v21, 0.0 }
 0x2bf   : > { %2625 = vst.msk [vmem:[#allocation2 + $0x19] sm:$0xff] %vm169_vm0, %v2593_v30 }
 0x2c0   : > { %v1985_v27 = vpop.permute.xlu0 %1984 }
 0x2c1   : > { %v7431_v46 = vpop.f32.mrf.mxu1  ;;  %v7440_v48 = vsel %vm937_vm5, %v2067_v6, %v1985_v27 }
 0x2c2   : > { %5153 = vmatmul.msk.f32.gmra.mxu3 %vm974_vm6, %v7420_v43  ;;  %5215 = vmatmul.msk.f32.gmra.mxu1 %vm974_vm6, %v7420_v43  ;;  %v7450_v54 = vpop.f32.mrf.mxu3 }
 0x2c3   : > { %5179 = vmatmul.msk.f32.gmra.mxu0 %vm974_vm6, %v7274_v42 }
 0x2c5   : > { %v1419_v35 = vpop.f32.mrf.mxu2 }
 0x2c6   : > { %v1453_v44 = vadd.f32 %v1419_v35, %v1301_v49 }
 0x2c8   : > { %v1485_v53 = vmax.f32 %v1453_v44, 0.0  ;;  %v2349_v55 = vpop.f32.mrf.mxu0  ;;  %v1789_v23 = vpop.permute.xlu1 %1788 }
 0x2c9   : > { %v2350_v42 = vadd.f32 %v2349_v55, %v7326_v17  ;;  %v2068_v21 = vsel %vm169_vm0, %v7161_v20, %v1789_v23 }
 0x2ca   : > { %1518 = vst.msk [vmem:[#allocation3 + $0x189] sm:$0xff] %vm169_vm0, %v1485_v53  ;;  %5154 = vmatmul.msk.f32.gmra.mxu3 %vm974_vm6, %v7440_v48  ;;  %5216 = vmatmul.msk.f32.gmra.mxu1 %vm974_vm6, %v7440_v48  ;;  %v1791_v53 = vpop.permute.xlu0 %1790 }
 0x2cb   : > { %v2562_v41 = vadd.f32 %v7337_v7, %v2350_v42  ;;  %5180 = vmatmul.msk.f32.gmra.mxu0 %vm974_vm6, %v7285_v56  ;;  %v7461_v7 = vsel %vm937_vm5, %v2068_v21, %v1987_v5 }
 0x2cd   : > { %v2594_v17 = vmax.f32 %v2562_v41, 0.0  ;;  %v7489_v41 = vld [vmem:[#allocation2 + $0x18] sm:$0xff] }
 0x2cf   : > { %2626 = vst.msk [vmem:[#allocation2 + $0x21] sm:$0xff] %vm169_vm0, %v2594_v17  ;;  %v7457_v30 = vpop.f32.mrf.mxu1  ;;  %v2069_v17 = vsel %vm169_vm0, %v7174_v11, %v1791_v53  ;;  %v2789_v11 = vrot.slane %v7489_v41, 1 }
 0x2d0   : > { %v2352_v10 = vpop.f32.mrf.mxu0  ;;  %v1989_v42 = vpop.permute.xlu1 %1988 }
 0x2d1   : > { %v2353_v19 = vadd.f32 %v2352_v10, %v7354_v51  ;;  %v7463_v56 = vld [vmem:[#allocation3 + $0x188] sm:$0xff]  ;;  %v1588_v49 = vld [vmem:[#allocation3 + $0x190] sm:$0x3]  ;;  %v1726_v51 = vrot.slane %v7454_v45, 1 }
 0x2d2   : > { %5155 = vmatmul.msk.f32.gmra.mxu3 %vm974_vm6, %v7461_v7  ;;  %5217 = vmatmul.msk.f32.gmra.mxu1 %vm974_vm6, %v7461_v7  ;;  %v1925_v20 = vrot.slane %v7463_v56, 2  ;;  %v1727_v58 = vrot.slane %v7463_v56, 1  ;;  %v1729_v35 = vrot.slane %v1588_v49, 1 }
 0x2d3   : > { %v2563_v27 = vadd.f32 %v7364_v0, %v2353_v19  ;;  %5181 = vmatmul.msk.f32.gmra.mxu0 %vm974_vm6, %v7300_v61  ;;  %v7484_v0 = vpop.f32.mrf.mxu3  ;;  %v7496_v19 = vsel %vm937_vm5, %v2069_v17, %v1989_v42 }
 0x2d4   : > { %v1926_v44 = vsel %vm702_vm4, %v1924_v28, %v1925_v20  ;;  %v1730_v14 = vsel %vm503_vm3, %v1727_v58, %v1729_v35  ;;  %v1728_v6 = vsel %vm503_vm3, %v1726_v51, %v1727_v58  ;;  %v1927_v58 = vrot.slane %v1588_v49, 2 }
 0x2d5   : > { %v2595_v55 = vmax.f32 %v2563_v27, 0.0  ;;  %1998 = vrot.lane.b32.xlu2 %v1926_v44, %s5555_s30  ;;  %1802 = vrot.lane.b32.xlu0 %v1730_v14, %s5554_s29  ;;  %v2987_v35 = vrot.slane %v7489_v41, 2  ;;  %v7508_v27 = vld [vmem:[#allocation2] sm:$0xff]  ;;  %v7510_v44 = vld [vmem:[#allocation2 + $0x8] sm:$0xff]  ;;  %v1793_v14 = vpop.permute.xlu2 %1792 }
 0x2d6   : > { %1800 = vrot.lane.b32.xlu1 %v1728_v6, %s5554_s29  ;;  %v7482_v23 = vld [vmem:[#allocation2 + $0x20] sm:$0xff]  ;;  %v1928_v53 = vsel %vm702_vm4, %v1925_v20, %v1927_v58  ;;  %v2983_v42 = vrot.slane %v7510_v44, 2  ;;  %v2784_v20 = vrot.slane %v7508_v27, 1  ;;  %v2070_v58 = vsel %vm169_vm0, %v7203_v60, %v1793_v14  ;;  %v2678_v14 = vld [vmem:[#allocation2 + $0x10] sm:$0x3] }
 0x2d7   : > { %2627 = vst.msk [vmem:[#allocation2 + $0x31] sm:$0xff] %vm169_vm0, %v2595_v55  ;;  %v7487_v61 = vpop.f32.mrf.mxu1  ;;  %v2988_v5 = vrot.slane %v7482_v23, 2  ;;  %v2790_v10 = vrot.slane %v7482_v23, 1  ;;  %v2982_v55 = vrot.slane %v7508_v27, 2 }
 0x2d8   : > { %v2355_v21 = vpop.f32.mrf.mxu0 }
 0x2d9   : > { %v2356_v28 = vadd.f32 %v2355_v21, %v7377_v12  ;;  %v2989_v12 = vsel %vm702_vm4, %v2987_v35, %v2988_v5  ;;  %v2791_v49 = vsel %vm503_vm3, %v2789_v11, %v2790_v10 }
 0x2da   : > { %5156 = vmatmul.msk.f32.gmra.mxu3 %vm974_vm6, %v7496_v19  ;;  %5218 = vmatmul.msk.f32.gmra.mxu1 %vm974_vm6, %v7496_v19 }
 0x2db   : > { %v2564_v51 = vadd.f32 %v7389_v1, %v2356_v28  ;;  %5182 = vmatmul.msk.f32.gmra.mxu0 %vm974_vm6, %v7319_v47  ;;  %v2681_v1 = vld [vmem:[#allocation2 + $0x28] sm:$0x3]  ;;  %v1991_v47 = vpop.permute.xlu0 %1990  ;;  %v7522_v17 = vpop.f32.mrf.mxu3  ;;  %v2785_v28 = vrot.slane %v7510_v44, 1 }
 0x2dc   : > { %v2792_v11 = vrot.slane %v2681_v1, 1 }
 0x2dd   : > { %v2596_v6 = vmax.f32 %v2564_v51, 0.0  ;;  %3076 = vrot.lane.b32.xlu0 %v2989_v12, %s5555_s30  ;;  %2878 = vrot.lane.b32.xlu2 %v2791_v49, %s5554_s29  ;;  %v7532_v51 = vsel %vm937_vm5, %v2070_v58, %v1991_v47  ;;  %v2984_v49 = vsel %vm702_vm4, %v2982_v55, %v2983_v42  ;;  %v2786_v60 = vsel %vm503_vm3, %v2784_v20, %v2785_v28 }
 0x2de   : > { %2000 = vrot.lane.b32.xlu1 %v1928_v53, %s5555_s30  ;;  %v2793_v47 = vsel %vm503_vm3, %v2790_v10, %v2792_v11  ;;  %v2985_v55 = vrot.slane %v2678_v14, 2 }
 0x2df   : > { %2628 = vst.msk [vmem:[#allocation2 + $0x39] sm:$0xff] %vm169_vm0, %v2596_v6  ;;  %v7525_v21 = vpop.f32.mrf.mxu1  ;;  %v1795_v6 = vpop.permute.xlu1 %1794 }
 0x2e0   : > { %v2358_v35 = vpop.f32.mrf.mxu0  ;;  %v2071_v58 = vsel %vm169_vm0, %v7214_v8, %v1795_v6  ;;  %v2986_v8 = vsel %vm702_vm4, %v2983_v42, %v2985_v55 }
 0x2e1   : > { %v2359_v12 = vadd.f32 %v2358_v35, %v7395_v9 }
 0x2e2   : > { %5157 = vmatmul.msk.f32.gmra.mxu3 %vm974_vm6, %v7532_v51  ;;  %5219 = vmatmul.msk.f32.gmra.mxu1 %vm974_vm6, %v7532_v51 }
 0x2e3   : > { %v2565_v53 = vadd.f32 %v7408_v22, %v2359_v12  ;;  %5183 = vmatmul.msk.f32.gmra.mxu0 %vm974_vm6, %v7340_v26  ;;  %v2787_v22 = vrot.slane %v2678_v14, 1  ;;  %v1993_v26 = vpop.permute.xlu2 %1992  ;;  %v7551_v20 = vpop.f32.mrf.mxu3 }
 0x2e4   : > { %v7557_v11 = vsel %vm937_vm5, %v2071_v58, %v1993_v26 }
 0x2e5   : > { %v2597_v9 = vmax.f32 %v2565_v53, 0.0  ;;  %2880 = vrot.lane.b32.xlu0 %v2793_v47, %s5554_s29  ;;  %3072 = vrot.lane.b32.xlu2 %v2984_v49, %s5555_s30  ;;  %v2990_v49 = vrot.slane %v2681_v1, 2  ;;  %v2788_v6 = vsel %vm503_vm3, %v2785_v28, %v2787_v22 }
 0x2e6   : > { %2874 = vrot.lane.b32.xlu1 %v2786_v60, %s5554_s29  ;;  %v7573_v60 = vld [vmem:[#allocation2 + $0x38] sm:$0xff]  ;;  %v2684_v14 = vld [vmem:[#allocation2 + $0x40] sm:$0x3] }
 0x2e7   : > { %2629 = vst.msk [vmem:[#allocation2 + $0x49] sm:$0xff] %vm169_vm0, %v2597_v9  ;;  %v7553_v12 = vpop.f32.mrf.mxu1  ;;  %v2991_v1 = vsel %vm702_vm4, %v2988_v5, %v2990_v49  ;;  %v5229_v5 = vld [vmem:[%s9023_s1 + $0x130] sm:$0xff]  ;;  %v2795_v28 = vrot.slane %v7573_v60, 1  ;;  %v2797_v47 = vrot.slane %v2684_v14, 1  ;;  %v2993_v9 = vrot.slane %v7573_v60, 2 }
 0x2e8   : > { %v2361_v35 = vpop.f32.mrf.mxu0  ;;  %3480 = vmatpush.msrb.mxu3 %v5229_v5 }
 0x2e9   : > { %v2362_v10 = vadd.f32 %v2361_v35, %v7426_v59  ;;  %v2798_v49 = vsel %vm503_vm3, %v2795_v28, %v2797_v47 }
 0x2ea   : > { %5158 = vmatmul.msk.f32.gmra.mxu3 %vm974_vm6, %v7557_v11  ;;  %5220 = vmatmul.msk.f32.gmra.mxu1 %vm974_vm6, %v7557_v11 }
 0x2eb   : > { %v2566_v53 = vadd.f32 %v7431_v46, %v2362_v10  ;;  %5184 = vmatmul.msk.f32.gmra.mxu0 %vm974_vm6, %v7367_v50  ;;  %v7577_v46 = vld [vmem:[#allocation2 + $0x30] sm:$0xff]  ;;  %v5235_v50 = vld [vmem:[%s9023_s1 + $0x160] sm:$0xff]  ;;  %v7589_v22 = vpop.f32.mrf.mxu3 }
 0x2ec   : > { %3361 = vmatpush.msrb.mxu2 %v5235_v50  ;;  %v2992_v55 = vrot.slane %v7577_v46, 2  ;;  %v2794_v10 = vrot.slane %v7577_v46, 1 }
 0x2ed   : > { %v2598_v59 = vmax.f32 %v2566_v53, 0.0  ;;  %3074 = vrot.lane.b32.xlu0 %v2986_v8, %s5555_s30  ;;  %2876 = vrot.lane.b32.xlu2 %v2788_v6, %s5554_s29 }
 0x2ee   : > { %3078 = vrot.lane.b32.xlu1 %v2991_v1, %s5555_s30  ;;  %v2994_v8 = vsel %vm702_vm4, %v2992_v55, %v2993_v9 }
 0x2ef   : > { %2630 = vst.msk [vmem:[#allocation2 + $0x51] sm:$0xff] %vm169_vm0, %v2598_v59  ;;  %v7591_v26 = vpop.f32.mrf.mxu1 }
 0x2f0   : > { %v2364_v42 = vpop.f32.mrf.mxu0 }
 0x2f1   : > { %v2365_v58 = vadd.f32 %v2364_v42, %v7450_v54  ;;  %v2796_v54 = vsel %vm503_vm3, %v2794_v10, %v2795_v28  ;;  %v2995_v42 = vrot.slane %v2684_v14, 2 }
 0x2f3   : > { %v2567_v35 = vadd.f32 %v7457_v30, %v2365_v58  ;;  %5185 = vmatmul.msk.f32.gmra.mxu0 %vm974_vm6, %v7383_v18  ;;  %v7606_v18 = vld [vmem:[#allocation2 + $0x48] sm:$0xff]  ;;  %v5241_v30 = vld [vmem:[%s9023_s1 + $0x190] sm:$0xff]  ;;  %v7621_v10 = vpop.f32.mrf.mxu3 }
 0x2f4   : > { %3599 = vmatpush.msra.mxu0 %v5241_v30  ;;  %v2997_v28 = vrot.slane %v7606_v18, 2  ;;  %v2799_v47 = vrot.slane %v7606_v18, 1 }
 0x2f5   : > { %v2599_v6 = vmax.f32 %v2567_v35, 0.0  ;;  %2884 = vrot.lane.b32.xlu0 %v2798_v49, %s5554_s29  ;;  %3080 = vrot.lane.b32.xlu2 %v2994_v8, %s5555_s30 }
 0x2f6   : > { %2882 = vrot.lane.b32.xlu1 %v2796_v54, %s5554_s29  ;;  %v7603_v53 = vld [vmem:[#allocation2 + $0x50] sm:$0xff]  ;;  %v2687_v14 = vld [vmem:[#allocation2 + $0x58] sm:$0x3] }
 0x2f7   : > { %2631 = vst.msk [vmem:[#allocation2 + $0x61] sm:$0xff] %vm169_vm0, %v2599_v6  ;;  %v2998_v1 = vrot.slane %v7603_v53, 2  ;;  %v2800_v50 = vrot.slane %v7603_v53, 1  ;;  %v7623_v49 = vpop.f32.mrf.mxu1  ;;  %v2802_v54 = vrot.slane %v2687_v14, 1 }
 0x2f8   : > { %v2367_v59 = vpop.f32.mrf.mxu0 }
 0x2f9   : > { %v2368_v5 = vadd.f32 %v2367_v59, %v7484_v0  ;;  %v2999_v55 = vsel %vm702_vm4, %v2997_v28, %v2998_v1  ;;  %v2801_v35 = vsel %vm503_vm3, %v2799_v47, %v2800_v50  ;;  %v2996_v0 = vsel %vm702_vm4, %v2993_v9, %v2995_v42  ;;  %v7634_v9 = vld [vmem:[#allocation3 + $0x198] sm:$0xff]  ;;  %v7636_v59 = vld [vmem:[#allocation3 + $0x1a0] sm:$0xff] }
 0x2fa   : > { %v2803_v47 = vsel %vm503_vm3, %v2800_v50, %v2802_v54  ;;  %v1929_v54 = vrot.slane %v7634_v9, 2 }
 0x2fb   : > { %v2568_v58 = vadd.f32 %v7487_v61, %v2368_v5  ;;  %5186 = vmatmul.msk.f32.gmra.mxu0 %vm974_vm6, %v7399_v25  ;;  %v3000_v61 = vrot.slane %v2687_v14, 2 }
 0x2fd   : > { %v2600_v8 = vmax.f32 %v2568_v58, 0.0  ;;  %3084 = vrot.lane.b32.xlu0 %v2999_v55, %s5555_s30  ;;  %2886 = vrot.lane.b32.xlu2 %v2801_v35, %s5554_s29  ;;  %v3001_v5 = vsel %vm702_vm4, %v2998_v1, %v3000_v61  ;;  %v7648_v58 = vpop.f32.mrf.mxu3 }
 0x2fe   : > { %3082 = vrot.lane.b32.xlu1 %v2996_v0, %s5555_s30  ;;  %v7639_v42 = vld [vmem:[#allocation2 + $0x60] sm:$0xff] }
 0x2ff   : > { %2632 = vst.msk [vmem:[#allocation2 + $0x69] sm:$0xff] %vm169_vm0, %v2600_v8  ;;  %v7650_v55 = vpop.f32.mrf.mxu1  ;;  %v2804_v1 = vrot.slane %v7639_v42, 1 }
 0x300   : > { %v2370_v25 = vpop.f32.mrf.mxu0 }
 0x301   : > { %v2371_v6 = vadd.f32 %v2370_v25, %v7522_v17 }
 0x303   : > { %v2569_v30 = vadd.f32 %v7525_v21, %v2371_v6  ;;  %5187 = vmatmul.msk.f32.gmra.mxu0 %vm974_vm6, %v7420_v43  ;;  %v1731_v21 = vrot.slane %v7634_v9, 1  ;;  %v1732_v43 = vrot.slane %v7636_v59, 1  ;;  %v3002_v6 = vrot.slane %v7639_v42, 2 }
 0x305   : > { %v2601_v28 = vmax.f32 %v2569_v30, 0.0  ;;  %3086 = vrot.lane.b32.xlu2 %v3001_v5, %s5555_s30  ;;  %v1733_v25 = vsel %vm503_vm3, %v1731_v21, %v1732_v43  ;;  %v1930_v30 = vrot.slane %v7636_v59, 2  ;;  %v1591_v21 = vld [vmem:[#allocation3 + $0x1a8] sm:$0x3] }
 0x306   : > { %2888 = vrot.lane.b32.xlu1 %v2803_v47, %s5554_s29  ;;  %v7644_v17 = vld [vmem:[#allocation2 + $0x68] sm:$0xff] }
 0x307   : > { %2633 = vst.msk [vmem:[#allocation2 + $0x79] sm:$0xff] %vm169_vm0, %v2601_v28  ;;  %v2805_v50 = vrot.slane %v7644_v17, 1  ;;  %v3003_v14 = vrot.slane %v7644_v17, 2  ;;  %v2690_v28 = vld [vmem:[#allocation2 + $0x70] sm:$0x3] }
 0x308   : > { %v2373_v35 = vpop.f32.mrf.mxu0 }
 0x309   : > { %v2374_v8 = vadd.f32 %v2373_v35, %v7551_v20  ;;  %v2806_v0 = vsel %vm503_vm3, %v2804_v1, %v2805_v50  ;;  %v3004_v5 = vsel %vm702_vm4, %v3002_v6, %v3003_v14  ;;  %v7671_v1 = vpop.f32.mrf.mxu3  ;;  %v7673_v35 = vpop.f32.mrf.mxu1 }
 0x30a   : > { %2890 = vrot.lane.b32.xlu0 %v2806_v0, %s5554_s29  ;;  %v2807_v0 = vrot.slane %v2690_v28, 1 }
 0x30b   : > { %v2570_v61 = vadd.f32 %v7553_v12, %v2374_v8  ;;  %5188 = vmatmul.msk.f32.gmra.mxu0 %vm974_vm6, %v7440_v48  ;;  %v1931_v12 = vsel %vm702_vm4, %v1929_v54, %v1930_v30  ;;  %v3005_v48 = vrot.slane %v2690_v28, 2 }
 0x30d   : > { %v2602_v20 = vmax.f32 %v2570_v61, 0.0  ;;  %1804 = vrot.lane.b32.xlu2 %v1733_v25, %s5554_s29  ;;  %v1734_v61 = vrot.slane %v1591_v21, 1  ;;  %v3006_v6 = vsel %vm702_vm4, %v3003_v14, %v3005_v48 }
 0x30e   : > { %3088 = vrot.lane.b32.xlu1 %v3004_v5, %s5555_s30  ;;  %v7688_v28 = vld [vmem:[#allocation2 + $0x78] sm:$0xff] }
 0x30f   : > { %2634 = vst.msk [vmem:[#allocation2 + $0x81] sm:$0xff] %vm169_vm0, %v2602_v20  ;;  %v2808_v20 = vsel %vm503_vm3, %v2805_v50, %v2807_v0  ;;  %v5228_v50 = vld [vmem:[%s9023_s1 + $0x128] sm:$0xff] }
 0x310   : > { %v2376_v47 = vpop.f32.mrf.mxu0  ;;  %3481 = vmatpush.msrb.mxu3 %v5228_v50 }
 0x311   : > { %v2377_v8 = vadd.f32 %v2376_v47, %v7589_v22  ;;  %v1735_v22 = vsel %vm503_vm3, %v1732_v43, %v1734_v61  ;;  %v7702_v0 = vpop.f32.mrf.mxu3 }
 0x312   : > { %2002 = vrot.lane.b32.xlu0 %v1931_v12, %s5555_s30 }
 0x313   : > { %v2571_v25 = vadd.f32 %v7591_v26, %v2377_v8  ;;  %5189 = vmatmul.msk.f32.gmra.mxu0 %vm974_vm6, %v7461_v7  ;;  %v1932_v26 = vrot.slane %v1591_v21, 2  ;;  %v5234_v7 = vld [vmem:[%s9023_s1 + $0x158] sm:$0xff]  ;;  %v2809_v21 = vrot.slane %v7688_v28, 1 }
 0x314   : > { %3362 = vmatpush.msrb.mxu2 %v5234_v7 }
 0x315   : > { %v2603_v54 = vmax.f32 %v2571_v25, 0.0  ;;  %3090 = vrot.lane.b32.xlu2 %v3006_v6, %s5555_s30  ;;  %v7704_v25 = vpop.f32.mrf.mxu1 }
 0x316   : > { %2892 = vrot.lane.b32.xlu1 %v2808_v20, %s5554_s29  ;;  %v7684_v5 = vld [vmem:[#allocation2 + $0x80] sm:$0xff]  ;;  %v2693_v20 = vld [vmem:[#allocation2 + $0x88] sm:$0x3] }
 0x317   : > { %2635 = vst.msk [vmem:[#allocation2 + $0x91] sm:$0xff] %vm169_vm0, %v2603_v54  ;;  %v2810_v47 = vrot.slane %v7684_v5, 1  ;;  %v3010_v7 = vrot.slane %v2693_v20, 2 }
 0x318   : > { %v1995_v14 = vpop.permute.xlu1 %1994  ;;  %v2379_v12 = vpop.f32.mrf.mxu0 }
 0x319   : > { %v1797_v48 = vpop.permute.xlu0 %1796  ;;  %v2380_v8 = vadd.f32 %v2379_v12, %v7621_v10  ;;  %v1933_v10 = vsel %vm702_vm4, %v1930_v30, %v1932_v26  ;;  %v5240_v30 = vld [vmem:[%s9023_s1 + $0x188] sm:$0xff] }
 0x31a   : > { %v2072_v43 = vsel %vm169_vm0, %v7332_v13, %v1797_v48  ;;  %1806 = vrot.lane.b32.xlu0 %v1735_v22, %s5554_s29  ;;  %v2811_v13 = vsel %vm503_vm3, %v2809_v21, %v2810_v47  ;;  %v1799_v22 = vpop.permute.xlu2 %1798  ;;  %3600 = vmatpush.msra.mxu0 %v5240_v30 }
 0x31b   : > { %v2572_v61 = vadd.f32 %v7623_v49, %v2380_v8  ;;  %v7708_v6 = vsel %vm937_vm5, %v2072_v43, %v1995_v14  ;;  %5190 = vmatmul.msk.f32.gmra.mxu0 %vm974_vm6, %v7496_v19  ;;  %v3008_v49 = vrot.slane %v7684_v5, 2  ;;  %v3007_v19 = vrot.slane %v7688_v28, 2 }
 0x31c   : > { %5159 = vmatmul.msk.f32.gmra.mxu3 %vm974_vm6, %v7708_v6  ;;  %5221 = vmatmul.msk.f32.gmra.mxu1 %vm974_vm6, %v7708_v6  ;;  %v2073_v14 = vsel %vm169_vm0, %v7346_v52, %v1799_v22  ;;  %v2812_v8 = vrot.slane %v2693_v20, 1 }
 0x31d   : > { %v2604_v54 = vmax.f32 %v2572_v61, 0.0  ;;  %2894 = vrot.lane.b32.xlu2 %v2811_v13, %s5554_s29  ;;  %v3009_v48 = vsel %vm702_vm4, %v3007_v19, %v3008_v49  ;;  %v3011_v52 = vsel %vm702_vm4, %v3008_v49, %v3010_v7  ;;  %v2272_v61 = vpop.f32.mrf.mxu3 }
 0x31e   : > { %2004 = vrot.lane.b32.xlu1 %v1933_v10, %s5555_s30  ;;  %v2510_v10 = vpop.f32.mrf.mxu1 }
 0x31f   : > { %2636 = vst.msk [vmem:[#allocation2 + $0x99] sm:$0xff] %vm169_vm0, %v2604_v54  ;;  %v2813_v54 = vsel %vm503_vm3, %v2810_v47, %v2812_v8 }
 0x320   : > { %v2382_v26 = vpop.f32.mrf.mxu0 }
 0x321   : > { %v1997_v12 = vpop.permute.xlu0 %1996  ;;  %v2383_v50 = vadd.f32 %v2382_v26, %v7648_v58  ;;  %v7742_v58 = vld [vmem:[#allocation2 + $0x90] sm:$0xff] }
 0x322   : > { %v7731_v43 = vsel %vm937_vm5, %v2073_v14, %v1997_v12  ;;  %3092 = vrot.lane.b32.xlu0 %v3009_v48, %s5555_s30  ;;  %v2814_v20 = vrot.slane %v7742_v58, 1  ;;  %v3012_v14 = vrot.slane %v7742_v58, 2 }
 0x323   : > { %v2573_v21 = vadd.f32 %v7650_v55, %v2383_v50  ;;  %5191 = vmatmul.msk.f32.gmra.mxu0 %vm974_vm6, %v7532_v51 }
 0x324   : > { %5160 = vmatmul.msk.f32.gmra.mxu3 %vm974_vm6, %v7731_v43  ;;  %5222 = vmatmul.msk.f32.gmra.mxu1 %vm974_vm6, %v7731_v43 }
 0x325   : > { %v2605_v13 = vmax.f32 %v2573_v21, 0.0  ;;  %3094 = vrot.lane.b32.xlu2 %v3011_v52, %s5555_s30  ;;  %v2275_v8 = vpop.f32.mrf.mxu3 }
 0x326   : > { %2896 = vrot.lane.b32.xlu1 %v2813_v54, %s5554_s29  ;;  %v7747_v51 = vld [vmem:[#allocation2 + $0x98] sm:$0xff]  ;;  %v2696_v55 = vld [vmem:[#allocation2 + $0xa0] sm:$0x3]  ;;  %v2513_v21 = vpop.f32.mrf.mxu1 }
 0x327   : > { %2637 = vst.msk [vmem:[#allocation2 + $0xa9] sm:$0xff] %vm169_vm0, %v2605_v13  ;;  %v2815_v49 = vrot.slane %v7747_v51, 1  ;;  %v2817_v19 = vrot.slane %v2696_v55, 1  ;;  %v3013_v47 = vrot.slane %v7747_v51, 2  ;;  %v5233_v13 = vld [vmem:[%s9023_s1 + $0x150] sm:$0xff] }
 0x328   : > { %v2385_v22 = vpop.f32.mrf.mxu0  ;;  %3363 = vmatpush.msrb.mxu2 %v5233_v13 }
 0x329   : > { %v2386_v30 = vadd.f32 %v2385_v22, %v7671_v1  ;;  %v2816_v26 = vsel %vm503_vm3, %v2814_v20, %v2815_v49  ;;  %v2818_v12 = vsel %vm503_vm3, %v2815_v49, %v2817_v19  ;;  %v3014_v48 = vsel %vm702_vm4, %v3012_v14, %v3013_v47 }
 0x32a   : > { %2898 = vrot.lane.b32.xlu0 %v2816_v26, %s5554_s29  ;;  %v3015_v1 = vrot.slane %v2696_v55, 2 }
 0x32b   : > { %v2574_v7 = vadd.f32 %v7673_v35, %v2386_v30  ;;  %5192 = vmatmul.msk.f32.gmra.mxu0 %vm974_vm6, %v7557_v11 }
 0x32c   : > { %v3016_v11 = vsel %vm702_vm4, %v3013_v47, %v3015_v1  ;;  %v5227_v1 = vld [vmem:[%s9023_s1 + $0x120] sm:$0xff] }
 0x32d   : > { %v2606_v50 = vmax.f32 %v2574_v7, 0.0  ;;  %2900 = vrot.lane.b32.xlu2 %v2818_v12, %s5554_s29  ;;  %v2278_v7 = vpop.f32.mrf.mxu3  ;;  %3482 = vmatpush.msrb.mxu3 %v5227_v1  ;;  %v5239_v1 = vld [vmem:[%s9023_s1 + $0x180] sm:$0xff] }
 0x32e   : > { %3096 = vrot.lane.b32.xlu1 %v3014_v48, %s5555_s30  ;;  %v7774_v55 = vld [vmem:[#allocation2 + $0xa8] sm:$0xff]  ;;  %3601 = vmatpush.msra.mxu0 %v5239_v1 }
 0x32f   : > { %2638 = vst.msk [vmem:[#allocation2 + $0xb1] sm:$0xff] %vm169_vm0, %v2606_v50 }
 0x330   : > { %v2388_v35 = vpop.f32.mrf.mxu0 }
 0x331   : > { %v2389_v52 = vadd.f32 %v2388_v35, %v7702_v0  ;;  %v3017_v0 = vrot.slane %v7774_v55, 2  ;;  %v1999_v35 = vpop.permute.xlu2 %1998 }
 0x332   : > { %3098 = vrot.lane.b32.xlu0 %v3016_v11, %s5555_s30 }
 0x333   : > { %v2575_v54 = vadd.f32 %v7704_v25, %v2389_v52  ;;  %5193 = vmatmul.msk.f32.gmra.mxu0 %vm974_vm6, %v7708_v6  ;;  %v2819_v25 = vrot.slane %v7774_v55, 1  ;;  %v2516_v6 = vpop.f32.mrf.mxu1 }
 0x335   : > { %v2607_v20 = vmax.f32 %v2575_v54, 0.0 }
 0x336   : > { %v7776_v49 = vld [vmem:[#allocation2 + $0xb0] sm:$0xff]  ;;  %v2699_v22 = vld [vmem:[#allocation2 + $0xb8] sm:$0x3] }
 0x337   : > { %2639 = vst.msk [vmem:[#allocation2 + $0xc1] sm:$0xff] %vm169_vm0, %v2607_v20  ;;  %v3018_v19 = vrot.slane %v7776_v49, 2  ;;  %v2820_v30 = vrot.slane %v7776_v49, 1  ;;  %v2822_v26 = vrot.slane %v2699_v22, 1  ;;  %v3020_v11 = vrot.slane %v2699_v22, 2 }
 0x338   : > { %v2391_v47 = vpop.f32.mrf.mxu0 }
 0x339   : > { %v2392_v14 = vadd.f32 %v2391_v47, %v2272_v61  ;;  %v3019_v12 = vsel %vm702_vm4, %v3017_v0, %v3018_v19  ;;  %v2823_v50 = vsel %vm503_vm3, %v2820_v30, %v2822_v26  ;;  %v2821_v48 = vsel %vm503_vm3, %v2819_v25, %v2820_v30  ;;  %v2281_v0 = vpop.f32.mrf.mxu3  ;;  %v2879_v25 = vpop.permute.xlu2 %2878 }
 0x33a   : > { %3100 = vrot.lane.b32.xlu2 %v3019_v12, %s5555_s30  ;;  %2904 = vrot.lane.b32.xlu0 %v2823_v50, %s5554_s29  ;;  %v3021_v20 = vsel %vm702_vm4, %v3018_v19, %v3020_v11  ;;  %v3182_v1 = vsel %vm169_vm0, %v7489_v41, %v2879_v25 }
 0x33b   : > { %v2576_v52 = vadd.f32 %v2510_v10, %v2392_v14  ;;  %2902 = vrot.lane.b32.xlu1 %v2821_v48, %s5554_s29  ;;  %5194 = vmatmul.msk.f32.gmra.mxu0 %vm974_vm6, %v7731_v43  ;;  %v2519_v30 = vpop.f32.mrf.mxu1 }
 0x33d   : > { %v2608_v61 = vmax.f32 %v2576_v52, 0.0 }
 0x33e   : > { %v7797_v10 = vld [vmem:[#allocation2 + $0xc0] sm:$0xff] }
 0x33f   : > { %2640 = vst.msk [vmem:[#allocation2 + $0xc9] sm:$0xff] %vm169_vm0, %v2608_v61  ;;  %v3022_v22 = vrot.slane %v7797_v10, 2  ;;  %v2824_v48 = vrot.slane %v7797_v10, 1 }
 0x340   : > { %v2394_v13 = vpop.f32.mrf.mxu0 }
 0x341   : > { %v2395_v54 = vadd.f32 %v2394_v13, %v2275_v8 }
 0x343   : > { %v2577_v26 = vadd.f32 %v2513_v21, %v2395_v54  ;;  %3102 = vrot.lane.b32.xlu1 %v3021_v20, %s5555_s30 }
 0x345   : > { %v2609_v47 = vmax.f32 %v2577_v26, 0.0 }
 0x346   : > { %v7799_v14 = vld [vmem:[#allocation2 + $0xc8] sm:$0xff]  ;;  %v2702_v43 = vld [vmem:[#allocation2 + $0xd0] sm:$0x3] }
 0x347   : > { %2641 = vst.msk [vmem:[#allocation2 + $0xd9] sm:$0xff] %vm169_vm0, %v2609_v47  ;;  %v3023_v8 = vrot.slane %v7799_v14, 2  ;;  %v2825_v19 = vrot.slane %v7799_v14, 1  ;;  %v2827_v12 = vrot.slane %v2702_v43, 1  ;;  %v1803_v21 = vpop.permute.xlu0 %1802 }
 0x348   : > { %v1801_v50 = vpop.permute.xlu1 %1800  ;;  %v2397_v61 = vpop.f32.mrf.mxu0 }
 0x349   : > { %v2074_v52 = vsel %vm169_vm0, %v7454_v45, %v1801_v50  ;;  %v3024_v11 = vsel %vm702_vm4, %v3022_v22, %v3023_v8  ;;  %v2828_v13 = vsel %vm503_vm3, %v2825_v19, %v2827_v12  ;;  %v2398_v54 = vadd.f32 %v2397_v61, %v2278_v7  ;;  %v2284_v45 = vpop.f32.mrf.mxu3  ;;  %v2522_v22 = vpop.f32.mrf.mxu1 }
 0x34a   : > { %3104 = vrot.lane.b32.xlu0 %v3024_v11, %s5555_s30  ;;  %v2826_v20 = vsel %vm503_vm3, %v2824_v48, %v2825_v19  ;;  %v2110_v26 = vsel %vm937_vm5, %v2074_v52, %v1999_v35  ;;  %v3025_v50 = vrot.slane %v2702_v43, 2  ;;  %v3073_v7 = vpop.permute.xlu2 %3072  ;;  %v2075_v35 = vsel %vm169_vm0, %v7463_v56, %v1803_v21 }
 0x34b   : > { %2908 = vrot.lane.b32.xlu1 %v2828_v13, %s5554_s29  ;;  %2906 = vrot.lane.b32.xlu2 %v2826_v20, %s5554_s29  ;;  %v2578_v47 = vadd.f32 %v2516_v6, %v2398_v54 }
 0x34c   : > { %5161 = vmatmul.msk.f32.gmra.mxu3 %vm974_vm6, %v2110_v26  ;;  %5223 = vmatmul.msk.f32.gmra.mxu1 %vm974_vm6, %v2110_v26  ;;  %v3026_v43 = vsel %vm702_vm4, %v3023_v8, %v3025_v50 }
 0x34d   : > { %v2610_v12 = vmax.f32 %v2578_v47, 0.0 }
 0x34e   : > { %v7835_v56 = vld [vmem:[#allocation2 + $0xd8] sm:$0xff] }
 0x34f   : > { %2642 = vst.msk [vmem:[#allocation2 + $0xe1] sm:$0xff] %vm169_vm0, %v2610_v12  ;;  %v3077_v48 = vpop.permute.xlu0 %3076  ;;  %v3027_v8 = vrot.slane %v7835_v56, 2 }
 0x350   : > { %v2001_v19 = vpop.permute.xlu1 %2000  ;;  %v7827_v52 = vsel %vm937_vm5, %v3182_v1, %v3077_v48  ;;  %v2400_v61 = vpop.f32.mrf.mxu0 }
 0x351   : > { %v2111_v6 = vsel %vm937_vm5, %v2075_v35, %v2001_v19  ;;  %v2401_v11 = vadd.f32 %v2400_v61, %v2281_v0  ;;  %5245 = vmatmul.msk.f32.vlgmr.msrb.gmra.mxu2 %vm974_vm6, %v7827_v52  ;;  %v2287_v21 = vpop.f32.mrf.mxu3  ;;  %v2525_v13 = vpop.f32.mrf.mxu1  ;;  %v2829_v19 = vrot.slane %v7835_v56, 1 }
 0x352   : > { %v2877_v50 = vpop.permute.xlu2 %2876 }
 0x353   : > { %3106 = vrot.lane.b32.xlu2 %v3026_v43, %s5555_s30  ;;  %v2579_v41 = vadd.f32 %v2519_v30, %v2401_v11 }
 0x354   : > { %5162 = vmatmul.msk.f32.gmra.mxu3 %vm974_vm6, %v2111_v6  ;;  %5224 = vmatmul.msk.f32.gmra.mxu1 %vm974_vm6, %v2111_v6 }
 0x355   : > { %v2611_v25 = vmax.f32 %v2579_v41, 0.0 }
 0x356   : > { %v7837_v54 = vld [vmem:[#allocation2 + $0xe0] sm:$0xff]  ;;  %v2705_v0 = vld [vmem:[#allocation2 + $0xe8] sm:$0x3] }
 0x357   : > { %2643 = vst.msk [vmem:[#allocation2 + $0xf1] sm:$0xff] %vm169_vm0, %v2611_v25  ;;  %v2881_v26 = vpop.permute.xlu0 %2880  ;;  %v3028_v30 = vrot.slane %v7837_v54, 2  ;;  %v2830_v47 = vrot.slane %v7837_v54, 1  ;;  %v2832_v12 = vrot.slane %v2705_v0, 1 }
 0x358   : > { %v2875_v20 = vpop.permute.xlu1 %2874  ;;  %v2403_v35 = vpop.f32.mrf.mxu0  ;;  %v3183_v25 = vsel %vm169_vm0, %v7482_v23, %v2881_v26 }
 0x359   : > { %v3180_v1 = vsel %vm169_vm0, %v7508_v27, %v2875_v20  ;;  %v2404_v6 = vadd.f32 %v2403_v35, %v2284_v45  ;;  %v3029_v61 = vsel %vm702_vm4, %v3027_v8, %v3028_v30  ;;  %v2833_v11 = vsel %vm503_vm3, %v2830_v47, %v2832_v12  ;;  %v2290_v12 = vpop.f32.mrf.mxu3  ;;  %v2528_v35 = vpop.f32.mrf.mxu1 }
 0x35a   : > { %v3216_v48 = vsel %vm937_vm5, %v3180_v1, %v3073_v7  ;;  %3108 = vrot.lane.b32.xlu1 %v3029_v61, %s5555_s30  ;;  %v2831_v43 = vsel %vm503_vm3, %v2829_v19, %v2830_v47  ;;  %v3181_v27 = vsel %vm169_vm0, %v7510_v44, %v2877_v50  ;;  %v3030_v45 = vrot.slane %v2705_v0, 2  ;;  %v3081_v44 = vpop.permute.xlu2 %3080 }
 0x35b   : > { %2912 = vrot.lane.b32.xlu2 %v2833_v11, %s5554_s29  ;;  %v2580_v41 = vadd.f32 %v2522_v22, %v2404_v6  ;;  %2910 = vrot.lane.b32.xlu0 %v2831_v43, %s5554_s29 }
 0x35c   : > { %5277 = vmatmul.msk.f32.vlgmr.msrb.gmra.mxu3 %vm974_vm6, %v3216_v48  ;;  %v3031_v0 = vsel %vm702_vm4, %v3028_v30, %v3030_v45 }
 0x35d   : > { %v2612_v7 = vmax.f32 %v2580_v41, 0.0 }
 0x35e   : > { %v7865_v23 = vld [vmem:[#allocation2 + $0xf0] sm:$0xff] }
 0x35f   : > { %2644 = vst.msk [vmem:[#allocation2 + $0xf9] sm:$0xff] %vm169_vm0, %v2612_v7  ;;  %v3075_v8 = vpop.permute.xlu0 %3074  ;;  %v3032_v6 = vrot.slane %v7865_v23, 2  ;;  %v2834_v43 = vrot.slane %v7865_v23, 1 }
 0x360   : > { %v3079_v20 = vpop.permute.xlu1 %3078  ;;  %v3217_v22 = vsel %vm937_vm5, %v3181_v27, %v3075_v8  ;;  %v2406_v1 = vpop.f32.mrf.mxu0 }
 0x361   : > { %v3219_v47 = vsel %vm937_vm5, %v3183_v25, %v3079_v20  ;;  %v2407_v19 = vadd.f32 %v2406_v1, %v2287_v21 }
 0x362   : > { %5246 = vmatmul.msk.f32.gmra.mxu2 %vm974_vm6, %v3219_v47 }
 0x363   : > { %v2581_v50 = vadd.f32 %v2525_v13, %v2407_v19  ;;  %3110 = vrot.lane.b32.xlu0 %v3031_v0, %s5555_s30  ;;  %v2531_v19 = vpop.f32.mrf.mxu1 }
 0x364   : > { %5278 = vmatmul.msk.f32.gmra.mxu3 %vm974_vm6, %v3217_v22  ;;  %v2293_v22 = vpop.f32.mrf.mxu3 }
 0x365   : > { %v2613_v26 = vmax.f32 %v2581_v50, 0.0 }
 0x366   : > { %v7867_v48 = vld [vmem:[#allocation2 + $0xf8] sm:$0xff]  ;;  %v2708_v61 = vld [vmem:[#allocation2 + $0x100] sm:$0x3] }
 0x367   : > { %2645 = vst.msk [vmem:[#allocation2 + $0x109] sm:$0xff] %vm169_vm0, %v2613_v26  ;;  %v3033_v11 = vrot.slane %v7867_v48, 2  ;;  %v2835_v30 = vrot.slane %v7867_v48, 1  ;;  %v2837_v13 = vrot.slane %v2708_v61, 1  ;;  %v2885_v7 = vpop.permute.xlu0 %2884  ;;  %v3035_v50 = vrot.slane %v2708_v61, 2 }
 0x368   : > { %v2883_v21 = vpop.permute.xlu1 %2882  ;;  %v2409_v27 = vpop.f32.mrf.mxu0  ;;  %v3185_v26 = vsel %vm169_vm0, %v7573_v60, %v2885_v7 }
 0x369   : > { %v3184_v41 = vsel %vm169_vm0, %v7577_v46, %v2883_v21  ;;  %v2410_v45 = vadd.f32 %v2409_v27, %v2290_v12  ;;  %v3034_v25 = vsel %vm702_vm4, %v3032_v6, %v3033_v11  ;;  %v2838_v20 = vsel %vm503_vm3, %v2835_v30, %v2837_v13  ;;  %v2887_v46 = vpop.permute.xlu2 %2886 }
 0x36a   : > { %v2836_v8 = vsel %vm503_vm3, %v2834_v43, %v2835_v30  ;;  %3112 = vrot.lane.b32.xlu2 %v3034_v25, %s5555_s30  ;;  %v3220_v1 = vsel %vm937_vm5, %v3184_v41, %v3081_v44  ;;  %v3036_v30 = vsel %vm702_vm4, %v3033_v11, %v3035_v50 }
 0x36b   : > { %2914 = vrot.lane.b32.xlu1 %v2836_v8, %s5554_s29  ;;  %v2582_v0 = vadd.f32 %v2528_v35, %v2410_v45  ;;  %2916 = vrot.lane.b32.xlu0 %v2838_v20, %s5554_s29  ;;  %v2534_v60 = vpop.f32.mrf.mxu1 }
 0x36c   : > { %5247 = vmatmul.msk.f32.gmra.mxu2 %vm974_vm6, %v3220_v1  ;;  %5279 = vmatmul.msk.f32.gmra.mxu3 %vm974_vm6, %v7827_v52  ;;  %v2296_v61 = vpop.f32.mrf.mxu3 }
 0x36d   : > { %5309 = vmatmul.msk.f32.vlgmr.msra.gmra.mxu0 %vm974_vm6, %v3220_v1  ;;  %v2614_v12 = vmax.f32 %v2582_v0, 0.0 }
 0x36e   : > { %v7894_v43 = vld [vmem:[#allocation2 + $0x108] sm:$0xff] }
 0x36f   : > { %2646 = vst.msk [vmem:[#allocation2 + $0x111] sm:$0xff] %vm169_vm0, %v2614_v12  ;;  %v3085_v13 = vpop.permute.xlu0 %3084  ;;  %v3037_v11 = vrot.slane %v7894_v43, 2 }
 0x370   : > { %v3083_v44 = vpop.permute.xlu1 %3082  ;;  %v2412_v6 = vpop.f32.mrf.mxu0 }
 0x371   : > { %v3221_v35 = vsel %vm937_vm5, %v3185_v26, %v3083_v44  ;;  %v2413_v21 = vadd.f32 %v2412_v6, %v2293_v22  ;;  %v3087_v27 = vpop.permute.xlu2 %3086 }
 0x373   : > { %3114 = vrot.lane.b32.xlu1 %v3036_v30, %s5555_s30  ;;  %v2583_v52 = vadd.f32 %v2531_v19, %v2413_v21  ;;  %v3186_v19 = vsel %vm169_vm0, %v7606_v18, %v2887_v46 }
 0x374   : > { %5248 = vmatmul.msk.f32.gmra.mxu2 %vm974_vm6, %v3221_v35  ;;  %5280 = vmatmul.msk.f32.gmra.mxu3 %vm974_vm6, %v3219_v47  ;;  %v2839_v47 = vrot.slane %v7894_v43, 1  ;;  %v3222_v6 = vsel %vm937_vm5, %v3186_v19, %v3085_v13  ;;  %v2299_v30 = vpop.f32.mrf.mxu3 }
 0x375   : > { %5310 = vmatmul.msk.f32.gmra.mxu0 %vm974_vm6, %v3221_v35  ;;  %v2615_v41 = vmax.f32 %v2583_v52, 0.0 }
 0x376   : > { %v7898_v7 = vld [vmem:[#allocation2 + $0x110] sm:$0xff]  ;;  %v2711_v45 = vld [vmem:[#allocation2 + $0x118] sm:$0x3] }
 0x377   : > { %2647 = vst.msk [vmem:[#allocation2 + $0x121] sm:$0xff] %vm169_vm0, %v2615_v41  ;;  %v3038_v20 = vrot.slane %v7898_v7, 2  ;;  %v2840_v8 = vrot.slane %v7898_v7, 1  ;;  %v2842_v22 = vrot.slane %v2711_v45, 1  ;;  %v3040_v52 = vrot.slane %v2711_v45, 2 }
 0x378   : > { %v2889_v25 = vpop.permute.xlu1 %2888  ;;  %v2415_v0 = vpop.f32.mrf.mxu0 }
 0x379   : > { %v2416_v12 = vadd.f32 %v2415_v0, %v2296_v61  ;;  %v3039_v50 = vsel %vm702_vm4, %v3037_v11, %v3038_v20  ;;  %v2843_v26 = vsel %vm503_vm3, %v2840_v8, %v2842_v22  ;;  %v2841_v44 = vsel %vm503_vm3, %v2839_v47, %v2840_v8  ;;  %v2537_v61 = vpop.f32.mrf.mxu1 }
 0x37a   : > { %3116 = vrot.lane.b32.xlu0 %v3039_v50, %s5555_s30  ;;  %2918 = vrot.lane.b32.xlu2 %v2841_v44, %s5554_s29  ;;  %v3187_v13 = vsel %vm169_vm0, %v7603_v53, %v2889_v25 }
 0x37b   : > { %2920 = vrot.lane.b32.xlu1 %v2843_v26, %s5554_s29  ;;  %v2584_v21 = vadd.f32 %v2534_v60, %v2416_v12  ;;  %v1805_v60 = vpop.permute.xlu2 %1804  ;;  %v3223_v47 = vsel %vm937_vm5, %v3187_v13, %v3087_v27 }
 0x37c   : > { %5249 = vmatmul.msk.f32.gmra.mxu2 %vm974_vm6, %v3222_v6  ;;  %v2891_v18 = vpop.permute.xlu0 %2890  ;;  %5281 = vmatmul.msk.f32.gmra.mxu3 %vm974_vm6, %v3220_v1  ;;  %v2076_v8 = vsel %vm169_vm0, %v7634_v9, %v1805_v60  ;;  %v3041_v1 = vsel %vm702_vm4, %v3038_v20, %v3040_v52 }
 0x37d   : > { %5311 = vmatmul.msk.f32.gmra.mxu0 %vm974_vm6, %v3222_v6  ;;  %v2616_v46 = vmax.f32 %v2584_v21, 0.0  ;;  %v2302_v21 = vpop.f32.mrf.mxu3 }
 0x37e   : > { %v7926_v53 = vld [vmem:[#allocation2 + $0x120] sm:$0xff] }
 0x37f   : > { %2648 = vst.msk [vmem:[#allocation2 + $0x129] sm:$0xff] %vm169_vm0, %v2616_v46  ;;  %v3042_v27 = vrot.slane %v7926_v53, 2  ;;  %v2844_v44 = vrot.slane %v7926_v53, 1  ;;  %v3188_v46 = vsel %vm169_vm0, %v7639_v42, %v2891_v18 }
 0x380   : > { %v3089_v41 = vpop.permute.xlu1 %3088  ;;  %v2418_v11 = vpop.f32.mrf.mxu0 }
 0x381   : > { %v2419_v22 = vadd.f32 %v2418_v11, %v2299_v30  ;;  %v2540_v11 = vpop.f32.mrf.mxu1 }
 0x382   : > { %3118 = vrot.lane.b32.xlu2 %v3041_v1, %s5555_s30 }
 0x383   : > { %v2585_v19 = vadd.f32 %v2537_v61, %v2419_v22  ;;  %v3091_v42 = vpop.permute.xlu2 %3090 }
 0x384   : > { %5250 = vmatmul.msk.f32.gmra.mxu2 %vm974_vm6, %v3223_v47  ;;  %v2003_v45 = vpop.permute.xlu0 %2002  ;;  %5282 = vmatmul.msk.f32.gmra.mxu3 %vm974_vm6, %v3221_v35 }
 0x385   : > { %5312 = vmatmul.msk.f32.gmra.mxu0 %vm974_vm6, %v3223_v47  ;;  %v2112_v25 = vsel %vm937_vm5, %v2076_v8, %v2003_v45  ;;  %v2617_v9 = vmax.f32 %v2585_v19, 0.0  ;;  %v3224_v8 = vsel %vm937_vm5, %v3188_v46, %v3089_v41 }
 0x386   : > { %5225 = vmatmul.msk.f32.gmra.mxu1 %vm974_vm6, %v2112_v25  ;;  %v7932_v20 = vld [vmem:[#allocation2 + $0x128] sm:$0xff]  ;;  %v2714_v0 = vld [vmem:[#allocation2 + $0x130] sm:$0x3] }
 0x387   : > { %2649 = vst.msk [vmem:[#allocation2 + $0x139] sm:$0xff] %vm169_vm0, %v2617_v9  ;;  %v3043_v50 = vrot.slane %v7932_v20, 2  ;;  %v2845_v26 = vrot.slane %v7932_v20, 1  ;;  %v2847_v35 = vrot.slane %v2714_v0, 1  ;;  %v3045_v41 = vrot.slane %v2714_v0, 2  ;;  %v2305_v0 = vpop.f32.mrf.mxu3 }
 0x388   : > { %v2893_v12 = vpop.permute.xlu1 %2892  ;;  %v2421_v30 = vpop.f32.mrf.mxu0 }
 0x389   : > { %v2422_v52 = vadd.f32 %v2421_v30, %v2302_v21  ;;  %v3044_v61 = vsel %vm702_vm4, %v3042_v27, %v3043_v50  ;;  %v2848_v13 = vsel %vm503_vm3, %v2845_v26, %v2847_v35  ;;  %v2846_v60 = vsel %vm503_vm3, %v2844_v44, %v2845_v26 }
 0x38a   : > { %3120 = vrot.lane.b32.xlu1 %v3044_v61, %s5555_s30  ;;  %2922 = vrot.lane.b32.xlu0 %v2846_v60, %s5554_s29  ;;  %v3189_v45 = vsel %vm169_vm0, %v7644_v17, %v2893_v12 }
 0x38b   : > { %v2586_v22 = vadd.f32 %v2540_v11, %v2422_v52  ;;  %2924 = vrot.lane.b32.xlu2 %v2848_v13, %s5554_s29  ;;  %v3225_v26 = vsel %vm937_vm5, %v3189_v45, %v3091_v42  ;;  %v2895_v17 = vpop.permute.xlu2 %2894 }
 0x38c   : > { %5251 = vmatmul.msk.f32.gmra.mxu2 %vm974_vm6, %v3224_v8  ;;  %5283 = vmatmul.msk.f32.gmra.mxu3 %vm974_vm6, %v3222_v6  ;;  %v1807_v18 = vpop.permute.xlu0 %1806  ;;  %v3046_v6 = vsel %vm702_vm4, %v3043_v50, %v3045_v41 }
 0x38d   : > { %5313 = vmatmul.msk.f32.gmra.mxu0 %vm974_vm6, %v3224_v8  ;;  %v2618_v1 = vmax.f32 %v2586_v22, 0.0  ;;  %v2077_v19 = vsel %vm169_vm0, %v7636_v59, %v1807_v18 }
 0x38e   : > { %v7962_v59 = vld [vmem:[#allocation2 + $0x138] sm:$0xff] }
 0x38f   : > { %2650 = vst.msk [vmem:[#allocation2 + $0x141] sm:$0xff] %vm169_vm0, %v2618_v1  ;;  %v3047_v35 = vrot.slane %v7962_v59, 2  ;;  %v2849_v13 = vrot.slane %v7962_v59, 1  ;;  %v2308_v41 = vpop.f32.mrf.mxu3 }
 0x390   : > { %v2005_v25 = vpop.permute.xlu1 %2004  ;;  %v2424_v27 = vpop.f32.mrf.mxu0 }
 0x391   : > { %v2113_v9 = vsel %vm937_vm5, %v2077_v19, %v2005_v25  ;;  %v2425_v44 = vadd.f32 %v2424_v27, %v2305_v0 }
 0x392   : > { %5226 = vmatmul.msk.f32.gmra.mxu1 %vm974_vm6, %v2113_v9  ;;  %3122 = vrot.lane.b32.xlu0 %v3046_v6, %s5555_s30 }
 0x393   : > { %v3095_v27 = vpop.permute.xlu2 %3094 }
 0x394   : > { %5252 = vmatmul.msk.f32.gmra.mxu2 %vm974_vm6, %v3225_v26  ;;  %5284 = vmatmul.msk.f32.gmra.mxu3 %vm974_vm6, %v3223_v47  ;;  %v3093_v21 = vpop.permute.xlu0 %3092  ;;  %v3190_v47 = vsel %vm169_vm0, %v7688_v28, %v2895_v17 }
 0x395   : > { %5314 = vmatmul.msk.f32.gmra.mxu0 %vm974_vm6, %v3225_v26  ;;  %v3226_v42 = vsel %vm937_vm5, %v3190_v47, %v3093_v21 }
 0x396   : > { %v7966_v12 = vld [vmem:[#allocation2 + $0x140] sm:$0xff]  ;;  %v2717_v50 = vld [vmem:[#allocation2 + $0x148] sm:$0x3] }
 0x397   : > { %v3048_v46 = vrot.slane %v7966_v12, 2  ;;  %v2850_v30 = vrot.slane %v7966_v12, 1  ;;  %v2852_v52 = vrot.slane %v2717_v50, 1  ;;  %v3050_v45 = vrot.slane %v2717_v50, 2 }
 0x398   : > { %v2897_v19 = vpop.permute.xlu1 %2896  ;;  %v2427_v28 = vpop.f32.mrf.mxu0 }
 0x399   : > { %v2543_v61 = vpop.f32.mrf.mxu1  ;;  %v3049_v11 = vsel %vm702_vm4, %v3047_v35, %v3048_v46  ;;  %v2853_v22 = vsel %vm503_vm3, %v2850_v30, %v2852_v52  ;;  %v2851_v18 = vsel %vm503_vm3, %v2849_v13, %v2850_v30  ;;  %v3191_v25 = vsel %vm169_vm0, %v7684_v5, %v2897_v19 }
 0x39a   : > { %v2587_v60 = vadd.f32 %v2543_v61, %v2425_v44  ;;  %3124 = vrot.lane.b32.xlu2 %v3049_v11, %s5555_s30  ;;  %2928 = vrot.lane.b32.xlu0 %v2853_v22, %s5554_s29  ;;  %v2428_v9 = vadd.f32 %v2427_v28, %v2308_v41  ;;  %v3051_v17 = vsel %vm702_vm4, %v3048_v46, %v3050_v45 }
 0x39b   : > { %2926 = vrot.lane.b32.xlu1 %v2851_v18, %s5554_s29  ;;  %v3227_v35 = vsel %vm937_vm5, %v3191_v25, %v3095_v27 }
 0x39c   : > { %v2619_v1 = vmax.f32 %v2587_v60, 0.0  ;;  %5253 = vmatmul.msk.f32.gmra.mxu2 %vm974_vm6, %v3226_v42  ;;  %5285 = vmatmul.msk.f32.gmra.mxu3 %vm974_vm6, %v3224_v8  ;;  %v2899_v8 = vpop.permute.xlu0 %2898  ;;  %v2901_v60 = vpop.permute.xlu2 %2900 }
 0x39d   : > { %5315 = vmatmul.msk.f32.gmra.mxu0 %vm974_vm6, %v3226_v42  ;;  %v3192_v50 = vsel %vm169_vm0, %v7742_v58, %v2899_v8 }
 0x39e   : > { %2651 = vst.msk [vmem:[#allocation2 + $0x151] sm:$0xff] %vm169_vm0, %v2619_v1  ;;  %v3193_v1 = vsel %vm169_vm0, %v7747_v51, %v2901_v60 }
 0x3a0   : > { %v3097_v5 = vpop.permute.xlu1 %3096 }
 0x3a1   : > { %v2546_v6 = vpop.f32.mrf.mxu1  ;;  %v3228_v46 = vsel %vm937_vm5, %v3192_v50, %v3097_v5 }
 0x3a2   : > { %v2588_v0 = vadd.f32 %v2546_v6, %v2428_v9  ;;  %v2311_v6 = vpop.f32.mrf.mxu3 }
 0x3a3   : > { %3126 = vrot.lane.b32.xlu1 %v3051_v17, %s5555_s30 }
 0x3a4   : > { %v2620_v44 = vmax.f32 %v2588_v0, 0.0  ;;  %5254 = vmatmul.msk.f32.gmra.mxu2 %vm974_vm6, %v3227_v35  ;;  %5286 = vmatmul.msk.f32.gmra.mxu3 %vm974_vm6, %v3225_v26  ;;  %v3099_v11 = vpop.permute.xlu0 %3098  ;;  %v3101_v9 = vpop.permute.xlu2 %3100 }
 0x3a5   : > { %5316 = vmatmul.msk.f32.gmra.mxu0 %vm974_vm6, %v3227_v35  ;;  %v7996_v21 = vld [vmem:[#allocation2 + $0x150] sm:$0xff]  ;;  %v3229_v19 = vsel %vm937_vm5, %v3193_v1, %v3099_v11 }
 0x3a6   : > { %2652 = vst.msk [vmem:[#allocation2 + $0x159] sm:$0xff] %vm169_vm0, %v2620_v44  ;;  %v3052_v30 = vrot.slane %v7996_v21, 2  ;;  %v2854_v47 = vrot.slane %v7996_v21, 1 }
 0x3aa   : > { %v2314_v8 = vpop.f32.mrf.mxu3 }
 0x3ac   : > { %5255 = vmatmul.msk.f32.gmra.mxu2 %vm974_vm6, %v3228_v46  ;;  %5287 = vmatmul.msk.f32.gmra.mxu3 %vm974_vm6, %v3226_v42  ;;  %v2905_v27 = vpop.permute.xlu0 %2904  ;;  %v2907_v44 = vpop.permute.xlu2 %2906 }
 0x3ad   : > { %5317 = vmatmul.msk.f32.gmra.mxu0 %vm974_vm6, %v3228_v46  ;;  %v8002_v26 = vld [vmem:[#allocation2 + $0x158] sm:$0xff]  ;;  %v2720_v52 = vld [vmem:[#allocation2 + $0x160] sm:$0x3]  ;;  %v2903_v28 = vpop.permute.xlu1 %2902  ;;  %v3195_v17 = vsel %vm169_vm0, %v7776_v49, %v2905_v27 }
 0x3ae   : > { %v3053_v61 = vrot.slane %v8002_v26, 2  ;;  %v2855_v13 = vrot.slane %v8002_v26, 1  ;;  %v2857_v58 = vrot.slane %v2720_v52, 1  ;;  %v3055_v41 = vrot.slane %v2720_v52, 2 }
 0x3af   : > { %v3194_v45 = vsel %vm169_vm0, %v7774_v55, %v2903_v28  ;;  %v2430_v55 = vpop.f32.mrf.mxu0 }
 0x3b0   : > { %v3054_v22 = vsel %vm702_vm4, %v3052_v30, %v3053_v61  ;;  %v2858_v42 = vsel %vm503_vm3, %v2855_v13, %v2857_v58  ;;  %v2856_v18 = vsel %vm503_vm3, %v2854_v47, %v2855_v13  ;;  %v3056_v25 = vsel %vm702_vm4, %v3053_v61, %v3055_v41 }
 0x3b1   : > { %3128 = vrot.lane.b32.xlu0 %v3054_v22, %s5555_s30  ;;  %2932 = vrot.lane.b32.xlu1 %v2858_v42, %s5554_s29  ;;  %v3230_v51 = vsel %vm937_vm5, %v3194_v45, %v3101_v9  ;;  %v2431_v5 = vadd.f32 %v2430_v55, %v2311_v6  ;;  %v3196_v30 = vsel %vm169_vm0, %v7797_v10, %v2907_v44 }
 0x3b2   : > { %2930 = vrot.lane.b32.xlu2 %v2856_v18, %s5554_s29 }
 0x3b4   : > { %5256 = vmatmul.msk.f32.gmra.mxu2 %vm974_vm6, %v3229_v19  ;;  %5288 = vmatmul.msk.f32.gmra.mxu3 %vm974_vm6, %v3227_v35  ;;  %v3107_v22 = vpop.permute.xlu2 %3106 }
 0x3b5   : > { %5318 = vmatmul.msk.f32.gmra.mxu0 %vm974_vm6, %v3229_v19  ;;  %v3103_v0 = vpop.permute.xlu1 %3102 }
 0x3b6   : > { %v3231_v35 = vsel %vm937_vm5, %v3195_v17, %v3103_v0 }
 0x3b7   : > { %v2433_v13 = vpop.f32.mrf.mxu0 }
 0x3b8   : > { %v2434_v60 = vadd.f32 %v2433_v13, %v2314_v8 }
 0x3ba   : > { %3130 = vrot.lane.b32.xlu2 %v3056_v25, %s5555_s30 }
 0x3bc   : > { %5257 = vmatmul.msk.f32.gmra.mxu2 %vm974_vm6, %v3230_v51  ;;  %5289 = vmatmul.msk.f32.gmra.mxu3 %vm974_vm6, %v3228_v46  ;;  %v3105_v50 = vpop.permute.xlu0 %3104  ;;  %v2913_v44 = vpop.permute.xlu2 %2912 }
 0x3bd   : > { %5319 = vmatmul.msk.f32.gmra.mxu0 %vm974_vm6, %v3230_v51  ;;  %v3232_v49 = vsel %vm937_vm5, %v3196_v30, %v3105_v50  ;;  %v2909_v58 = vpop.permute.xlu1 %2908  ;;  %v3812_v50 = vld [vmem:[%s9024_s2 + $0x88] sm:$0xff] }
 0x3be   : > { %v3197_v10 = vsel %vm169_vm0, %v7799_v14, %v2909_v58  ;;  %4733 = vmatpush.msra.mxu3 %v3812_v50 }
 0x3bf   : > { %v3233_v18 = vsel %vm937_vm5, %v3197_v10, %v3107_v22  ;;  %v8052_v41 = vpop.f32.mrf.mxu0 }
 0x3c4   : > { %5258 = vmatmul.msk.f32.gmra.mxu2 %vm974_vm6, %v3231_v35  ;;  %5290 = vmatmul.msk.f32.gmra.mxu3 %vm974_vm6, %v3229_v19 }
 0x3c5   : > { %5320 = vmatmul.msk.f32.gmra.mxu0 %vm974_vm6, %v3231_v35 }
 0x3c7   : > { %v8081_v13 = vpop.f32.mrf.mxu0 }
 0x3c9   : > { %v2549_v46 = vpop.f32.mrf.mxu1 }
 0x3ca   : > { %v2589_v52 = vadd.f32 %v2549_v46, %v2431_v5  ;;  %v3800_v5 = vld [vmem:[%s9024_s2 + $0x28] sm:$0xff] }
 0x3cb   : > { %4614 = vmatpush.msra.mxu2 %v3800_v5 }
 0x3cc   : > { %v2621_v61 = vmax.f32 %v2589_v52, 0.0  ;;  %5259 = vmatmul.msk.f32.gmra.mxu2 %vm974_vm6, %v3232_v49  ;;  %5291 = vmatmul.msk.f32.gmra.mxu3 %vm974_vm6, %v3230_v51  ;;  %v3109_v14 = vpop.permute.xlu1 %3108 }
 0x3cd   : > { %5321 = vmatmul.msk.f32.gmra.mxu0 %vm974_vm6, %v3232_v49  ;;  %v2911_v19 = vpop.permute.xlu0 %2910 }
 0x3ce   : > { %2653 = vst.msk [vmem:[#allocation2 + $0x169] sm:$0xff] %vm169_vm0, %v2621_v61  ;;  %v3198_v45 = vsel %vm169_vm0, %v7835_v56, %v2911_v19  ;;  %v3199_v61 = vsel %vm169_vm0, %v7837_v54, %v2913_v44  ;;  %v3806_v54 = vld [vmem:[%s9024_s2 + $0x58] sm:$0xff] }
 0x3cf   : > { %v8041_v47 = vpop.f32.mrf.mxu3  ;;  %v3234_v9 = vsel %vm937_vm5, %v3198_v45, %v3109_v14  ;;  %4495 = vmatpush.msra.mxu1 %v3806_v54  ;;  %v3113_v14 = vpop.permute.xlu2 %3112 }
 0x3d1   : > { %v2552_v11 = vpop.f32.mrf.mxu1 }
 0x3d2   : > { %v2590_v42 = vadd.f32 %v2552_v11, %v2434_v60 }
 0x3d4   : > { %v2622_v1 = vmax.f32 %v2590_v42, 0.0  ;;  %5260 = vmatmul.msk.f32.gmra.mxu2 %vm974_vm6, %v3233_v18  ;;  %5292 = vmatmul.msk.f32.gmra.mxu3 %vm974_vm6, %v3231_v35  ;;  %v3365_v51 = vpop.f32.mrf.mxu2 }
 0x3d5   : > { %5322 = vmatmul.msk.f32.gmra.mxu0 %vm974_vm6, %v3233_v18  ;;  %v8056_v25 = vld [vmem:[#allocation2 + $0x168] sm:$0xff]  ;;  %v3111_v46 = vpop.permute.xlu0 %3110 }
 0x3d6   : > { %2654 = vst.msk [vmem:[#allocation2 + $0x171] sm:$0xff] %vm169_vm0, %v2622_v1  ;;  %v3057_v27 = vrot.slane %v8056_v25, 2  ;;  %v2859_v35 = vrot.slane %v8056_v25, 1  ;;  %v3235_v58 = vsel %vm937_vm5, %v3199_v61, %v3111_v46  ;;  %v8108_v46 = vld [vmem:[#allocation3 + $0x8] sm:$0xff] }
 0x3d7   : > { %v8050_v28 = vpop.f32.mrf.mxu3 }
 0x3dc   : > { %5261 = vmatmul.msk.f32.gmra.mxu2 %vm974_vm6, %v3234_v9  ;;  %5293 = vmatmul.msk.f32.gmra.mxu3 %vm974_vm6, %v3232_v49 }
 0x3dd   : > { %5323 = vmatmul.msk.f32.gmra.mxu0 %vm974_vm6, %v3234_v9  ;;  %v8062_v6 = vld [vmem:[#allocation2 + $0x170] sm:$0xff]  ;;  %v2723_v0 = vld [vmem:[#allocation2 + $0x178] sm:$0x3]  ;;  %v2915_v60 = vpop.permute.xlu1 %2914 }
 0x3de   : > { %v3058_v17 = vrot.slane %v8062_v6, 2  ;;  %v2860_v56 = vrot.slane %v8062_v6, 1  ;;  %v2862_v55 = vrot.slane %v2723_v0, 1  ;;  %v3060_v11 = vrot.slane %v2723_v0, 2 }
 0x3df   : > { %v3484_v8 = vpop.f32.mrf.mxu3  ;;  %v3200_v42 = vsel %vm169_vm0, %v7865_v23, %v2915_v60 }
 0x3e0   : > { %v3059_v30 = vsel %vm702_vm4, %v3057_v27, %v3058_v17  ;;  %v2863_v52 = vsel %vm503_vm3, %v2860_v56, %v2862_v55  ;;  %v2861_v49 = vsel %vm503_vm3, %v2859_v35, %v2860_v56  ;;  %v3485_v1 = vadd.f32 %v3484_v8, %v3365_v51  ;;  %v2917_v56 = vpop.permute.xlu0 %2916 }
 0x3e1   : > { %3132 = vrot.lane.b32.xlu1 %v3059_v30, %s5555_s30  ;;  %2936 = vrot.lane.b32.xlu2 %v2863_v52, %s5554_s29  ;;  %v3061_v19 = vsel %vm702_vm4, %v3058_v17, %v3060_v11  ;;  %v3236_v27 = vsel %vm937_vm5, %v3200_v42, %v3113_v14  ;;  %v3201_v35 = vsel %vm169_vm0, %v7867_v48, %v2917_v56  ;;  %v4120_v52 = vrot.slane %v8108_v46, 2  ;;  %v2919_v48 = vpop.permute.xlu2 %2918 }
 0x3e2   : > { %2934 = vrot.lane.b32.xlu0 %v2861_v49, %s5554_s29  ;;  %v3202_v11 = vsel %vm169_vm0, %v7894_v43, %v2919_v48  ;;  %v3799_v48 = vld [vmem:[%s9024_s2 + $0x20] sm:$0xff] }
 0x3e3   : > { %4615 = vmatpush.msra.mxu2 %v3799_v48 }
 0x3e4   : > { %5262 = vmatmul.msk.f32.gmra.mxu2 %vm974_vm6, %v3235_v58  ;;  %5294 = vmatmul.msk.f32.gmra.mxu3 %vm974_vm6, %v3233_v18 }
 0x3e5   : > { %5324 = vmatmul.msk.f32.gmra.mxu0 %vm974_vm6, %v3235_v58  ;;  %v3368_v10 = vpop.f32.mrf.mxu2  ;;  %v3115_v51 = vpop.permute.xlu1 %3114 }
 0x3e6   : > { %v3237_v8 = vsel %vm937_vm5, %v3201_v35, %v3115_v51 }
 0x3e7   : > { %v3487_v22 = vpop.f32.mrf.mxu3 }
 0x3e8   : > { %v3488_v55 = vadd.f32 %v3487_v22, %v3368_v10 }
 0x3e9   : > { %v3119_v56 = vpop.permute.xlu2 %3118 }
 0x3ea   : > { %v3603_v45 = vpop.f32.mrf.mxu0  ;;  %3134 = vrot.lane.b32.xlu0 %v3061_v19, %s5555_s30 }
 0x3eb   : > { %v3699_v18 = vadd.f32 %v3603_v45, %v3485_v1 }
 0x3ec   : > { %5263 = vmatmul.msk.f32.gmra.mxu2 %vm974_vm6, %v3236_v27  ;;  %5295 = vmatmul.msk.f32.gmra.mxu3 %vm974_vm6, %v3234_v9  ;;  %v8106_v9 = vld [vmem:[#allocation3] sm:$0xff]  ;;  %v3117_v61 = vpop.permute.xlu0 %3116 }
 0x3ed   : > { %v3731_v0 = vmax.f32 %v3699_v18, 0.0  ;;  %5325 = vmatmul.msk.f32.gmra.mxu0 %vm974_vm6, %v3236_v27  ;;  %v4119_v30 = vrot.slane %v8106_v9, 2  ;;  %v3238_v54 = vsel %vm937_vm5, %v3202_v11, %v3117_v61  ;;  %v2921_v1 = vpop.permute.xlu1 %2920 }
 0x3ee   : > { %v3203_v45 = vsel %vm169_vm0, %v7898_v7, %v2921_v1 }
 0x3ef   : > { %3763 = vst.msk [vmem:[#allocation3 + $0x19] sm:$0xff] %vm169_vm0, %v3731_v0  ;;  %v3371_v23 = vpop.f32.mrf.mxu2  ;;  %v3490_v17 = vpop.f32.mrf.mxu3  ;;  %v2437_v0 = vadd.f32 %v8052_v41, %v8041_v47 }
 0x3f0   : > { %v3491_v10 = vadd.f32 %v3490_v17, %v3371_v23  ;;  %v3239_v17 = vsel %vm937_vm5, %v3203_v45, %v3119_v56 }
 0x3f2   : > { %v3606_v44 = vpop.f32.mrf.mxu0 }
 0x3f3   : > { %v3700_v5 = vadd.f32 %v3606_v44, %v3488_v55 }
 0x3f4   : > { %5264 = vmatmul.msk.f32.gmra.mxu2 %vm974_vm6, %v3237_v8  ;;  %5296 = vmatmul.msk.f32.gmra.mxu3 %vm974_vm6, %v3235_v58  ;;  %v4121_v58 = vsel %vm702_vm4, %v4119_v30, %v4120_v52 }
 0x3f5   : > { %v3732_v50 = vmax.f32 %v3700_v5, 0.0  ;;  %5326 = vmatmul.msk.f32.gmra.mxu0 %vm974_vm6, %v3237_v8  ;;  %4209 = vrot.lane.b32.xlu0 %v4121_v58, %s5555_s30  ;;  %v2925_v58 = vpop.permute.xlu2 %2924 }
 0x3f7   : > { %3764 = vst.msk [vmem:[#allocation3 + $0x21] sm:$0xff] %vm169_vm0, %v3732_v50  ;;  %v3374_v49 = vpop.f32.mrf.mxu2  ;;  %v3493_v60 = vpop.f32.mrf.mxu3 }
 0x3f8   : > { %v3494_v43 = vadd.f32 %v3493_v60, %v3374_v49 }
 0x3fa   : > { %v3609_v22 = vpop.f32.mrf.mxu0 }
 0x3fb   : > { %v3701_v42 = vadd.f32 %v3609_v22, %v3491_v10  ;;  %v3811_v22 = vld [vmem:[%s9024_s2 + $0x80] sm:$0xff] }
 0x3fc   : > { %5265 = vmatmul.msk.f32.gmra.mxu2 %vm974_vm6, %v3238_v54  ;;  %5297 = vmatmul.msk.f32.gmra.mxu3 %vm974_vm6, %v3236_v27  ;;  %v2923_v35 = vpop.permute.xlu0 %2922  ;;  %v3121_v47 = vpop.permute.xlu1 %3120 }
 0x3fd   : > { %v3733_v19 = vmax.f32 %v3701_v42, 0.0  ;;  %5327 = vmatmul.msk.f32.gmra.mxu0 %vm974_vm6, %v3238_v54  ;;  %v3204_v41 = vsel %vm169_vm0, %v7926_v53, %v2923_v35  ;;  %v2440_v53 = vadd.f32 %v8081_v13, %v8050_v28  ;;  %v3805_v42 = vld [vmem:[%s9024_s2 + $0x50] sm:$0xff]  ;;  %4734 = vmatpush.msra.mxu3 %v3811_v22  ;;  %v3205_v28 = vsel %vm169_vm0, %v7932_v20, %v2925_v58  ;;  %v3125_v35 = vpop.permute.xlu2 %3124 }
 0x3fe   : > { %v3240_v61 = vsel %vm937_vm5, %v3204_v41, %v3121_v47  ;;  %4496 = vmatpush.msra.mxu1 %v3805_v42  ;;  %v3921_v42 = vrot.slane %v8106_v9, 1 }
 0x3ff   : > { %3765 = vst.msk [vmem:[#allocation3 + $0x31] sm:$0xff] %vm169_vm0, %v3733_v19  ;;  %v3377_v14 = vpop.f32.mrf.mxu2  ;;  %v3496_v18 = vpop.f32.mrf.mxu3 }
 0x400   : > { %v3497_v30 = vadd.f32 %v3496_v18, %v3377_v14 }
 0x402   : > { %v3612_v23 = vpop.f32.mrf.mxu0 }
 0x403   : > { %v3702_v51 = vadd.f32 %v3612_v23, %v3494_v43  ;;  %v2555_v55 = vpop.f32.mrf.mxu1 }
 0x404   : > { %5266 = vmatmul.msk.f32.gmra.mxu2 %vm974_vm6, %v3239_v17  ;;  %v2591_v27 = vadd.f32 %v2555_v55, %v2437_v0  ;;  %5298 = vmatmul.msk.f32.gmra.mxu3 %vm974_vm6, %v3237_v8  ;;  %v3123_v1 = vpop.permute.xlu0 %3122 }
 0x405   : > { %v3734_v44 = vmax.f32 %v3702_v51, 0.0  ;;  %5328 = vmatmul.msk.f32.gmra.mxu0 %vm974_vm6, %v3239_v17  ;;  %v3241_v18 = vsel %vm937_vm5, %v3205_v28, %v3123_v1  ;;  %v3922_v1 = vrot.slane %v8108_v46, 1 }
 0x406   : > { %v2623_v7 = vmax.f32 %v2591_v27, 0.0 }
 0x407   : > { %3766 = vst.msk [vmem:[#allocation3 + $0x39] sm:$0xff] %vm169_vm0, %v3734_v44  ;;  %v3380_v5 = vpop.f32.mrf.mxu2  ;;  %v3499_v50 = vpop.f32.mrf.mxu3 }
 0x408   : > { %2655 = vst.msk [vmem:[#allocation2 + $0x181] sm:$0xff] %vm169_vm0, %v2623_v7  ;;  %v3500_v14 = vadd.f32 %v3499_v50, %v3380_v5 }
 0x40a   : > { %v3615_v49 = vpop.f32.mrf.mxu0 }
 0x40b   : > { %v3703_v8 = vadd.f32 %v3615_v49, %v3497_v30 }
 0x40c   : > { %5267 = vmatmul.msk.f32.gmra.mxu2 %vm974_vm6, %v3240_v61  ;;  %5299 = vmatmul.msk.f32.gmra.mxu3 %vm974_vm6, %v3238_v54 }
 0x40d   : > { %v3735_v60 = vmax.f32 %v3703_v8, 0.0  ;;  %5329 = vmatmul.msk.f32.gmra.mxu0 %vm974_vm6, %v3240_v61  ;;  %v2927_v0 = vpop.permute.xlu1 %2926  ;;  %v3815_v8 = vld [vmem:[#allocation3 + $0x10] sm:$0x3] }
 0x40e   : > { %v3206_v20 = vsel %vm169_vm0, %v7962_v59, %v2927_v0  ;;  %v3923_v0 = vsel %vm503_vm3, %v3921_v42, %v3922_v1 }
 0x40f   : > { %3767 = vst.msk [vmem:[#allocation3 + $0x49] sm:$0xff] %vm169_vm0, %v3735_v60  ;;  %v3383_v10 = vpop.f32.mrf.mxu2  ;;  %v2558_v11 = vpop.f32.mrf.mxu1  ;;  %v8162_v55 = vld [vmem:[#allocation2 + $0x180] sm:$0xff]  ;;  %v8165_v5 = vsel %vm937_vm5, %v3206_v20, %v3125_v35 }
 0x410   : > { %v3502_v54 = vpop.f32.mrf.mxu3  ;;  %v2592_v19 = vadd.f32 %v2558_v11, %v2440_v53  ;;  %v2864_v48 = vrot.slane %v8162_v55, 1 }
 0x411   : > { %v3503_v27 = vadd.f32 %v3502_v54, %v3383_v10  ;;  %v2929_v10 = vpop.permute.xlu0 %2928  ;;  %v4122_v54 = vrot.slane %v3815_v8, 2 }
 0x412   : > { %v2624_v13 = vmax.f32 %v2592_v19, 0.0  ;;  %v3618_v45 = vpop.f32.mrf.mxu0 }
 0x413   : > { %v3704_v43 = vadd.f32 %v3618_v45, %v3500_v14  ;;  %v3207_v14 = vsel %vm169_vm0, %v7966_v12, %v2929_v10 }
 0x414   : > { %2656 = vst.msk [vmem:[#allocation2 + $0x189] sm:$0xff] %vm169_vm0, %v2624_v13  ;;  %5268 = vmatmul.msk.f32.gmra.mxu2 %vm974_vm6, %v3241_v18  ;;  %5300 = vmatmul.msk.f32.gmra.mxu3 %vm974_vm6, %v3239_v17  ;;  %v3062_v17 = vrot.slane %v8162_v55, 2 }
 0x415   : > { %v3736_v56 = vmax.f32 %v3704_v43, 0.0  ;;  %5330 = vmatmul.msk.f32.gmra.mxu0 %vm974_vm6, %v3241_v18  ;;  %v3127_v22 = vpop.permute.xlu1 %3126 }
 0x416   : > { %v3243_v13 = vsel %vm937_vm5, %v3207_v14, %v3127_v22 }
 0x417   : > { %3768 = vst.msk [vmem:[#allocation3 + $0x51] sm:$0xff] %vm169_vm0, %v3736_v56  ;;  %v3386_v23 = vpop.f32.mrf.mxu2  ;;  %v4123_v56 = vsel %vm702_vm4, %v4120_v52, %v4122_v54  ;;  %v3924_v52 = vrot.slane %v3815_v8, 1 }
 0x418   : > { %v3505_v51 = vpop.f32.mrf.mxu3 }
 0x419   : > { %v3506_v19 = vadd.f32 %v3505_v51, %v3386_v23  ;;  %v2931_v23 = vpop.permute.xlu2 %2930 }
 0x41a   : > { %v3621_v44 = vpop.f32.mrf.mxu0 }
 0x41b   : > { %v3705_v7 = vadd.f32 %v3621_v44, %v3503_v27  ;;  %v8167_v47 = vld [vmem:[#allocation2 + $0x188] sm:$0xff]  ;;  %v2726_v41 = vld [vmem:[#allocation2 + $0x190] sm:$0x3] }
 0x41c   : > { %5269 = vmatmul.msk.f32.gmra.mxu2 %vm974_vm6, %v8165_v5  ;;  %v3063_v59 = vrot.slane %v8167_v47, 2  ;;  %v2865_v50 = vrot.slane %v8167_v47, 1  ;;  %v2867_v30 = vrot.slane %v2726_v41, 1  ;;  %5301 = vmatmul.msk.f32.gmra.mxu3 %vm974_vm6, %v3240_v61  ;;  %v3065_v43 = vrot.slane %v2726_v41, 2  ;;  %v8201_v27 = vld [vmem:[#allocation3 + $0x20] sm:$0xff]  ;;  %v8204_v44 = vld [vmem:[#allocation3 + $0x18] sm:$0xff] }
 0x41d   : > { %v3737_v49 = vmax.f32 %v3705_v7, 0.0  ;;  %5331 = vmatmul.msk.f32.gmra.mxu0 %vm974_vm6, %v8165_v5  ;;  %v3208_v7 = vsel %vm169_vm0, %v7996_v21, %v2931_v23  ;;  %v3927_v41 = vrot.slane %v8201_v27, 1  ;;  %v4124_v21 = vrot.slane %v8204_v44, 2 }
 0x41e   : > { %v3064_v60 = vsel %vm702_vm4, %v3062_v17, %v3063_v59  ;;  %v2868_v53 = vsel %vm503_vm3, %v2865_v50, %v2867_v30  ;;  %v2866_v58 = vsel %vm503_vm3, %v2864_v48, %v2865_v50  ;;  %v3066_v51 = vsel %vm702_vm4, %v3063_v59, %v3065_v43 }
 0x41f   : > { %3769 = vst.msk [vmem:[#allocation3 + $0x61] sm:$0xff] %vm169_vm0, %v3737_v49  ;;  %v3389_v11 = vpop.f32.mrf.mxu2  ;;  %3136 = vrot.lane.b32.xlu2 %v3064_v60, %s5555_s30  ;;  %2940 = vrot.lane.b32.xlu0 %v2868_v53, %s5554_s29  ;;  %v4125_v30 = vrot.slane %v8201_v27, 2  ;;  %v3925_v48 = vsel %vm503_vm3, %v3922_v1, %v3924_v52  ;;  %v3926_v49 = vrot.slane %v8204_v44, 1  ;;  %v8236_v1 = vld [vmem:[#allocation3 + $0x30] sm:$0xff] }
 0x420   : > { %v3508_v61 = vpop.f32.mrf.mxu3  ;;  %2938 = vrot.lane.b32.xlu1 %v2866_v58, %s5554_s29  ;;  %v8253_v52 = vld [vmem:[#allocation3 + $0x50] sm:$0xff] }
 0x421   : > { %v3928_v53 = vsel %vm503_vm3, %v3926_v49, %v3927_v41  ;;  %v4126_v10 = vsel %vm702_vm4, %v4124_v21, %v4125_v30  ;;  %v3131_v54 = vpop.permute.xlu2 %3130 }
 0x422   : > { %v3624_v28 = vpop.f32.mrf.mxu0 }
 0x423   : > { %v3706_v45 = vadd.f32 %v3624_v28, %v3506_v19  ;;  %v3129_v46 = vpop.permute.xlu0 %3128  ;;  %v2933_v8 = vpop.permute.xlu1 %2932 }
 0x424   : > { %5270 = vmatmul.msk.f32.gmra.mxu2 %vm974_vm6, %v3243_v13  ;;  %5302 = vmatmul.msk.f32.gmra.mxu3 %vm974_vm6, %v3241_v18  ;;  %v3509_v18 = vadd.f32 %v3508_v61, %v3389_v11  ;;  %v8210_v50 = vsel %vm937_vm5, %v3208_v7, %v3129_v46  ;;  %v8229_v11 = vld [vmem:[#allocation3 + $0x38] sm:$0xff]  ;;  %v3209_v22 = vsel %vm169_vm0, %v8002_v26, %v2933_v8  ;;  %v4129_v26 = vrot.slane %v8236_v1, 2 }
 0x425   : > { %v3738_v20 = vmax.f32 %v3706_v45, 0.0  ;;  %5332 = vmatmul.msk.f32.gmra.mxu0 %vm974_vm6, %v3243_v13  ;;  %v4130_v14 = vrot.slane %v8229_v11, 2  ;;  %v3245_v43 = vsel %vm937_vm5, %v3209_v22, %v3131_v54  ;;  %v4135_v8 = vrot.slane %v8253_v52, 2 }
 0x427   : > { %3770 = vst.msk [vmem:[#allocation3 + $0x69] sm:$0xff] %vm169_vm0, %v3738_v20  ;;  %v3392_v12 = vpop.f32.mrf.mxu2  ;;  %4011 = vrot.lane.b32.xlu2 %v3923_v0, %s5554_s29  ;;  %4211 = vrot.lane.b32.xlu0 %v4123_v56, %s5555_s30  ;;  %v3932_v0 = vrot.slane %v8229_v11, 1  ;;  %v3931_v20 = vrot.slane %v8236_v1, 1  ;;  %v4131_v23 = vsel %vm702_vm4, %v4129_v26, %v4130_v14 }
 0x428   : > { %v3511_v35 = vpop.f32.mrf.mxu3  ;;  %3138 = vrot.lane.b32.xlu1 %v3066_v51, %s5555_s30  ;;  %v3821_v51 = vld [vmem:[#allocation3 + $0x40] sm:$0x3] }
 0x429   : > { %v3512_v42 = vadd.f32 %v3511_v35, %v3392_v12  ;;  %v3933_v35 = vsel %vm503_vm3, %v3931_v20, %v3932_v0  ;;  %v4132_v49 = vrot.slane %v3821_v51, 2  ;;  %v3934_v21 = vrot.slane %v3821_v51, 1  ;;  %v8288_v51 = vld [vmem:[#allocation2 + $0x198] sm:$0xff] }
 0x42a   : > { %v3627_v17 = vpop.f32.mrf.mxu0 }
 0x42b   : > { %v3707_v59 = vadd.f32 %v3627_v17, %v3509_v18  ;;  %v3810_v18 = vld [vmem:[%s9024_s2 + $0x78] sm:$0xff] }
 0x42c   : > { %5271 = vmatmul.msk.f32.gmra.mxu2 %vm974_vm6, %v8210_v50  ;;  %5303 = vmatmul.msk.f32.gmra.mxu3 %vm974_vm6, %v8165_v5  ;;  %v8231_v5 = vld [vmem:[#allocation3 + $0x28] sm:$0x3] }
 0x42d   : > { %v3739_v60 = vmax.f32 %v3707_v59, 0.0  ;;  %5333 = vmatmul.msk.f32.gmra.mxu0 %vm974_vm6, %v8210_v50  ;;  %v3929_v28 = vrot.slane %v8231_v5, 1  ;;  %4735 = vmatpush.msra.mxu3 %v3810_v18  ;;  %v3804_v59 = vld [vmem:[%s9024_s2 + $0x48] sm:$0xff]  ;;  %v4127_v20 = vrot.slane %v8231_v5, 2 }
 0x42e   : > { %4497 = vmatpush.msra.mxu1 %v3804_v59  ;;  %v8277_v54 = vld [vmem:[#allocation3 + $0x68] sm:$0xff] }
 0x42f   : > { %3771 = vst.msk [vmem:[#allocation3 + $0x79] sm:$0xff] %vm169_vm0, %v3739_v60  ;;  %v3395_v58 = vpop.f32.mrf.mxu2  ;;  %4013 = vrot.lane.b32.xlu2 %v3925_v48, %s5554_s29  ;;  %4015 = vrot.lane.b32.xlu0 %v3928_v53, %s5554_s29  ;;  %v3930_v12 = vsel %vm503_vm3, %v3927_v41, %v3929_v28  ;;  %v8262_v41 = vld [vmem:[#allocation3 + $0x48] sm:$0xff]  ;;  %v3942_v26 = vrot.slane %v8277_v54, 1  ;;  %v4128_v18 = vsel %vm702_vm4, %v4125_v30, %v4127_v20 }
 0x430   : > { %v3514_v61 = vpop.f32.mrf.mxu3  ;;  %4213 = vrot.lane.b32.xlu1 %v4126_v10, %s5555_s30  ;;  %v4134_v53 = vrot.slane %v8262_v41, 2 }
 0x431   : > { %v3515_v17 = vadd.f32 %v3514_v61, %v3395_v58  ;;  %v4133_v58 = vsel %vm702_vm4, %v4130_v14, %v4132_v49 }
 0x432   : > { %v3630_v19 = vpop.f32.mrf.mxu0  ;;  %v4136_v22 = vsel %vm702_vm4, %v4134_v53, %v4135_v8 }
 0x433   : > { %v3708_v45 = vadd.f32 %v3630_v19, %v3512_v42  ;;  %v3935_v42 = vsel %vm503_vm3, %v3932_v0, %v3934_v21 }
 0x434   : > { %5272 = vmatmul.msk.f32.gmra.mxu2 %vm974_vm6, %v3245_v43  ;;  %5304 = vmatmul.msk.f32.gmra.mxu3 %vm974_vm6, %v3243_v13  ;;  %v3798_v13 = vld [vmem:[%s9024_s2 + $0x18] sm:$0xff] }
 0x435   : > { %v3740_v56 = vmax.f32 %v3708_v45, 0.0  ;;  %5334 = vmatmul.msk.f32.gmra.mxu0 %vm974_vm6, %v3245_v43  ;;  %4616 = vmatpush.msra.mxu2 %v3798_v13  ;;  %v3937_v45 = vrot.slane %v8253_v52, 1 }
 0x437   : > { %3772 = vst.msk [vmem:[#allocation3 + $0x81] sm:$0xff] %vm169_vm0, %v3740_v56  ;;  %v3398_v46 = vpop.f32.mrf.mxu2  ;;  %4217 = vrot.lane.b32.xlu2 %v4131_v23, %s5555_s30  ;;  %4017 = vrot.lane.b32.xlu0 %v3930_v12, %s5554_s29  ;;  %v3936_v23 = vrot.slane %v8262_v41, 1 }
 0x438   : > { %v3517_v7 = vpop.f32.mrf.mxu3  ;;  %4019 = vrot.lane.b32.xlu1 %v3933_v35, %s5554_s29 }
 0x439   : > { %v3518_v28 = vadd.f32 %v3517_v7, %v3398_v46  ;;  %v8290_v46 = vld [vmem:[#allocation2 + $0x1a0] sm:$0xff]  ;;  %v3938_v35 = vsel %vm503_vm3, %v3936_v23, %v3937_v45 }
 0x43a   : > { %v3633_v48 = vpop.f32.mrf.mxu0  ;;  %v3068_v59 = vrot.slane %v8290_v46, 2 }
 0x43b   : > { %v3709_v60 = vadd.f32 %v3633_v48, %v3515_v17  ;;  %v3067_v17 = vrot.slane %v8288_v51, 2 }
 0x43c   : > { %5305 = vmatmul.msk.f32.gmra.mxu3 %vm974_vm6, %v8210_v50  ;;  %v8280_v50 = vld [vmem:[#allocation3 + $0x60] sm:$0xff] }
 0x43d   : > { %v3741_v10 = vmax.f32 %v3709_v60, 0.0  ;;  %v3941_v0 = vrot.slane %v8280_v50, 1 }
 0x43f   : > { %3773 = vst.msk [vmem:[#allocation3 + $0x91] sm:$0xff] %vm169_vm0, %v3741_v10  ;;  %v3401_v61 = vpop.f32.mrf.mxu2  ;;  %4219 = vrot.lane.b32.xlu2 %v4133_v58, %s5555_s30  ;;  %4221 = vrot.lane.b32.xlu0 %v4136_v22, %s5555_s30  ;;  %v3943_v13 = vsel %vm503_vm3, %v3941_v0, %v3942_v26  ;;  %v3069_v10 = vsel %vm702_vm4, %v3067_v17, %v3068_v59 }
 0x440   : > { %v3520_v19 = vpop.f32.mrf.mxu3  ;;  %4021 = vrot.lane.b32.xlu1 %v3935_v42, %s5554_s29 }
 0x441   : > { %v3521_v48 = vadd.f32 %v3520_v19, %v3401_v61  ;;  %v8313_v61 = vld [vmem:[#allocation2 + $0x1a8] sm:$0x3] }
 0x442   : > { %v3636_v14 = vpop.f32.mrf.mxu0  ;;  %v2872_v20 = vrot.slane %v8313_v61, 1 }
 0x443   : > { %v3710_v56 = vadd.f32 %v3636_v14, %v3518_v28  ;;  %v2869_v14 = vrot.slane %v8288_v51, 1 }
 0x444   : > { %5306 = vmatmul.msk.f32.gmra.mxu3 %vm974_vm6, %v3245_v43  ;;  %v3824_v43 = vld [vmem:[#allocation3 + $0x58] sm:$0x3] }
 0x445   : > { %v3742_v12 = vmax.f32 %v3710_v56, 0.0  ;;  %v4137_v60 = vrot.slane %v3824_v43, 2  ;;  %v3939_v53 = vrot.slane %v3824_v43, 1  ;;  %v2870_v56 = vrot.slane %v8290_v46, 1 }
 0x446   : > { %v4139_v43 = vrot.slane %v8280_v50, 2 }
 0x447   : > { %3774 = vst.msk [vmem:[#allocation3 + $0x99] sm:$0xff] %vm169_vm0, %v3742_v12  ;;  %v3404_v5 = vpop.f32.mrf.mxu2  ;;  %4023 = vrot.lane.b32.xlu2 %v3938_v35, %s5554_s29  ;;  %4027 = vrot.lane.b32.xlu0 %v3943_v13, %s5554_s29  ;;  %v4138_v58 = vsel %vm702_vm4, %v4135_v8, %v4137_v60  ;;  %v3940_v42 = vsel %vm503_vm3, %v3937_v45, %v3939_v53  ;;  %v4140_v45 = vrot.slane %v8277_v54, 2  ;;  %v2937_v60 = vpop.permute.xlu2 %2936  ;;  %v8334_v53 = vld [vmem:[#allocation3 + $0x80] sm:$0xff] }
 0x448   : > { %v3523_v7 = vpop.f32.mrf.mxu3  ;;  %4215 = vrot.lane.b32.xlu1 %v4128_v18, %s5555_s30  ;;  %v2871_v18 = vsel %vm503_vm3, %v2869_v14, %v2870_v56 }
 0x449   : > { %v3524_v28 = vadd.f32 %v3523_v7, %v3404_v5  ;;  %v2873_v7 = vsel %vm503_vm3, %v2870_v56, %v2872_v20 }
 0x44a   : > { %v3639_v49 = vpop.f32.mrf.mxu0 }
 0x44b   : > { %v3711_v21 = vadd.f32 %v3639_v49, %v3521_v48  ;;  %v3827_v49 = vld [vmem:[#allocation3 + $0x70] sm:$0x3] }
 0x44c   : > { %v3944_v56 = vrot.slane %v3827_v49, 1 }
 0x44d   : > { %v3743_v30 = vmax.f32 %v3711_v21, 0.0 }
 0x44f   : > { %3775 = vst.msk [vmem:[#allocation3 + $0xa9] sm:$0xff] %vm169_vm0, %v3743_v30  ;;  %v3407_v22 = vpop.f32.mrf.mxu2  ;;  %4223 = vrot.lane.b32.xlu2 %v4138_v58, %s5555_s30  ;;  %3140 = vrot.lane.b32.xlu0 %v3069_v10, %s5555_s30  ;;  %v4142_v58 = vrot.slane %v3827_v49, 2  ;;  %v3947_v49 = vrot.slane %v8334_v53, 1 }
 0x450   : > { %v3526_v19 = vpop.f32.mrf.mxu3  ;;  %4025 = vrot.lane.b32.xlu1 %v3940_v42, %s5554_s29  ;;  %v8336_v42 = vld [vmem:[#allocation3 + $0x78] sm:$0xff] }
 0x451   : > { %v3527_v21 = vadd.f32 %v3526_v19, %v3407_v22  ;;  %v4144_v19 = vrot.slane %v8336_v42, 2 }
 0x452   : > { %v3642_v8 = vpop.f32.mrf.mxu0 }
 0x453   : > { %v3712_v23 = vadd.f32 %v3642_v8, %v3524_v28  ;;  %v3133_v0 = vpop.permute.xlu1 %3132  ;;  %v3211_v28 = vsel %vm169_vm0, %v8062_v6, %v2937_v60  ;;  %v4145_v8 = vrot.slane %v8334_v53, 2  ;;  %v3797_v6 = vld [vmem:[%s9024_s2 + $0x10] sm:$0xff]  ;;  %v8365_v60 = vld [vmem:[#allocation3 + $0x90] sm:$0xff] }
 0x454   : > { %v2935_v12 = vpop.permute.xlu0 %2934  ;;  %4617 = vmatpush.msra.mxu2 %v3797_v6 }
 0x455   : > { %v3744_v35 = vmax.f32 %v3712_v23, 0.0  ;;  %v3210_v13 = vsel %vm169_vm0, %v8056_v25, %v2935_v12  ;;  %v4141_v25 = vsel %vm702_vm4, %v4139_v43, %v4140_v45  ;;  %v3809_v12 = vld [vmem:[%s9024_s2 + $0x70] sm:$0xff] }
 0x456   : > { %v3246_v5 = vsel %vm937_vm5, %v3210_v13, %v3133_v0  ;;  %v4143_v0 = vsel %vm702_vm4, %v4140_v45, %v4142_v58  ;;  %v3945_v13 = vsel %vm503_vm3, %v3942_v26, %v3944_v56  ;;  %4736 = vmatpush.msra.mxu3 %v3809_v12  ;;  %v3803_v58 = vld [vmem:[%s9024_s2 + $0x40] sm:$0xff]  ;;  %v3830_v56 = vld [vmem:[#allocation3 + $0x88] sm:$0x3] }
 0x457   : > { %3776 = vst.msk [vmem:[#allocation3 + $0xb1] sm:$0xff] %vm169_vm0, %v3744_v35  ;;  %5273 = vmatmul.msk.f32.gmra.mxu2 %vm974_vm6, %v3246_v5  ;;  %5307 = vmatmul.msk.f32.gmra.mxu3 %vm974_vm6, %v3246_v5  ;;  %v3410_v17 = vpop.f32.mrf.mxu2  ;;  %v3949_v6 = vrot.slane %v3830_v56, 1 }
 0x458   : > { %5335 = vmatmul.msk.f32.gmra.mxu0 %vm974_vm6, %v3246_v5  ;;  %v3529_v48 = vpop.f32.mrf.mxu3  ;;  %2942 = vrot.lane.b32.xlu2 %v2871_v18, %s5554_s29  ;;  %v4146_v18 = vsel %vm702_vm4, %v4144_v19, %v4145_v8  ;;  %v8361_v5 = vld [vmem:[#allocation3 + $0x98] sm:$0xff] }
 0x459   : > { %4225 = vrot.lane.b32.xlu1 %v4141_v25, %s5555_s30  ;;  %2944 = vrot.lane.b32.xlu0 %v2873_v7, %s5554_s29  ;;  %v3530_v45 = vadd.f32 %v3529_v48, %v3410_v17  ;;  %v3070_v7 = vrot.slane %v8313_v61, 2  ;;  %v3952_v26 = vrot.slane %v8361_v5, 1  ;;  %v3946_v17 = vrot.slane %v8336_v42, 1 }
 0x45a   : > { %v3645_v10 = vpop.f32.mrf.mxu0  ;;  %4498 = vmatpush.msra.mxu1 %v3803_v58  ;;  %v4150_v12 = vrot.slane %v8361_v5, 2 }
 0x45b   : > { %v3713_v30 = vadd.f32 %v3645_v10, %v3527_v21  ;;  %v3071_v48 = vsel %vm702_vm4, %v3068_v59, %v3070_v7  ;;  %v3951_v10 = vrot.slane %v8365_v60, 1  ;;  %v3833_v59 = vld [vmem:[#allocation3 + $0xa0] sm:$0x3] }
 0x45c   : > { %v3135_v14 = vpop.permute.xlu0 %3134 }
 0x45d   : > { %v3745_v20 = vmax.f32 %v3713_v30, 0.0  ;;  %v3247_v22 = vsel %vm937_vm5, %v3211_v28, %v3135_v14  ;;  %v3948_v30 = vsel %vm503_vm3, %v3946_v17, %v3947_v49  ;;  %v3953_v14 = vsel %vm503_vm3, %v3951_v10, %v3952_v26 }
 0x45e   : > { %v8392_v17 = vld [vmem:[#allocation3 + $0xb8] sm:$0x3] }
 0x45f   : > { %3777 = vst.msk [vmem:[#allocation3 + $0xc1] sm:$0xff] %vm169_vm0, %v3745_v20  ;;  %5274 = vmatmul.msk.f32.gmra.mxu2 %vm974_vm6, %v3247_v22  ;;  %5308 = vmatmul.msk.f32.gmra.mxu3 %vm974_vm6, %v3247_v22  ;;  %v3413_v23 = vpop.f32.mrf.mxu2 }
 0x460   : > { %5336 = vmatmul.msk.f32.gmra.mxu0 %vm974_vm6, %v3247_v22  ;;  %v3532_v35 = vpop.f32.mrf.mxu3  ;;  %4227 = vrot.lane.b32.xlu2 %v4143_v0, %s5555_s30  ;;  %v4147_v0 = vrot.slane %v3830_v56, 2 }
 0x461   : > { %4029 = vrot.lane.b32.xlu1 %v3945_v13, %s5554_s29  ;;  %4229 = vrot.lane.b32.xlu0 %v4146_v18, %s5555_s30  ;;  %v3533_v20 = vadd.f32 %v3532_v35, %v3413_v23  ;;  %v4152_v13 = vrot.slane %v3833_v59, 2  ;;  %v3950_v23 = vsel %vm503_vm3, %v3947_v49, %v3949_v6  ;;  %v3959_v49 = vrot.slane %v8392_v17, 1 }
 0x462   : > { %v3648_v43 = vpop.f32.mrf.mxu0 }
 0x463   : > { %v3714_v25 = vadd.f32 %v3648_v43, %v3530_v45  ;;  %v4148_v43 = vsel %vm702_vm4, %v4145_v8, %v4147_v0  ;;  %v4153_v35 = vsel %vm702_vm4, %v4150_v12, %v4152_v13  ;;  %v8408_v13 = vld [vmem:[#allocation3 + $0xa8] sm:$0xff] }
 0x465   : > { %v3746_v21 = vmax.f32 %v3714_v25, 0.0 }
 0x467   : > { %3778 = vst.msk [vmem:[#allocation3 + $0xc9] sm:$0xff] %vm169_vm0, %v3746_v21  ;;  %v3416_v61 = vpop.f32.mrf.mxu2  ;;  %v8390_v21 = vld [vmem:[#allocation3 + $0xb0] sm:$0xff] }
 0x468   : > { %v3535_v28 = vpop.f32.mrf.mxu3  ;;  %4031 = vrot.lane.b32.xlu2 %v3948_v30, %s5554_s29  ;;  %v3954_v30 = vrot.slane %v3833_v59, 1  ;;  %v3957_v8 = vrot.slane %v8390_v21, 1 }
 0x469   : > { %3142 = vrot.lane.b32.xlu1 %v3071_v48, %s5555_s30  ;;  %4035 = vrot.lane.b32.xlu0 %v3953_v14, %s5554_s29  ;;  %v3536_v25 = vadd.f32 %v3535_v28, %v3416_v61  ;;  %v4149_v14 = vrot.slane %v8365_v60, 2 }
 0x46a   : > { %v3651_v22 = vpop.f32.mrf.mxu0  ;;  %v3955_v28 = vsel %vm503_vm3, %v3952_v26, %v3954_v30 }
 0x46b   : > { %v3715_v19 = vadd.f32 %v3651_v22, %v3533_v20  ;;  %v4151_v20 = vsel %vm702_vm4, %v4149_v14, %v4150_v12  ;;  %v3960_v22 = vsel %vm503_vm3, %v3957_v8, %v3959_v49  ;;  %v8411_v12 = vld [vmem:[#allocation3 + $0xc0] sm:$0xff] }
 0x46d   : > { %v3747_v18 = vmax.f32 %v3715_v19, 0.0 }
 0x46e   : > { %v8406_v0 = vld [vmem:[#allocation3 + $0xc8] sm:$0xff] }
 0x46f   : > { %3779 = vst.msk [vmem:[#allocation3 + $0xd9] sm:$0xff] %vm169_vm0, %v3747_v18  ;;  %v3419_v45 = vpop.f32.mrf.mxu2  ;;  %v4155_v18 = vrot.slane %v8390_v21, 2 }
 0x470   : > { %v3538_v7 = vpop.f32.mrf.mxu3  ;;  %4231 = vrot.lane.b32.xlu2 %v4148_v43, %s5555_s30  ;;  %v4160_v43 = vrot.slane %v8406_v0, 2 }
 0x471   : > { %4033 = vrot.lane.b32.xlu1 %v3950_v23, %s5554_s29  ;;  %4235 = vrot.lane.b32.xlu0 %v4153_v35, %s5555_s30  ;;  %v3539_v59 = vadd.f32 %v3538_v7, %v3419_v45  ;;  %v4154_v45 = vrot.slane %v8408_v13, 2  ;;  %v3956_v7 = vrot.slane %v8408_v13, 1  ;;  %v4159_v35 = vrot.slane %v8411_v12, 2 }
 0x472   : > { %v3654_v48 = vpop.f32.mrf.mxu0 }
 0x473   : > { %v3716_v10 = vadd.f32 %v3654_v48, %v3536_v25  ;;  %v4156_v48 = vsel %vm702_vm4, %v4154_v45, %v4155_v18  ;;  %v3958_v30 = vsel %vm503_vm3, %v3956_v7, %v3957_v8  ;;  %v4161_v49 = vsel %vm702_vm4, %v4159_v35, %v4160_v43  ;;  %v3796_v45 = vld [vmem:[%s9024_s2 + $0x8] sm:$0xff] }
 0x474   : > { %4618 = vmatpush.msra.mxu2 %v3796_v45 }
 0x475   : > { %v3748_v58 = vmax.f32 %v3716_v10, 0.0 }
 0x477   : > { %3780 = vst.msk [vmem:[#allocation3 + $0xe1] sm:$0xff] %vm169_vm0, %v3748_v58  ;;  %v3422_v61 = vpop.f32.mrf.mxu2 }
 0x478   : > { %v3541_v56 = vpop.f32.mrf.mxu3  ;;  %4037 = vrot.lane.b32.xlu2 %v3955_v28, %s5554_s29 }
 0x479   : > { %4233 = vrot.lane.b32.xlu1 %v4151_v20, %s5555_s30  ;;  %4041 = vrot.lane.b32.xlu0 %v3960_v22, %s5554_s29  ;;  %v8404_v19 = vpop.permute.xlu2 %3136  ;;  %v3542_v58 = vadd.f32 %v3541_v56, %v3422_v61  ;;  %v3961_v61 = vrot.slane %v8411_v12, 1  ;;  %v3802_v56 = vld [vmem:[%s9024_s2 + $0x38] sm:$0xff] }
 0x47a   : > { %v3657_v6 = vpop.f32.mrf.mxu0  ;;  %4499 = vmatpush.msra.mxu1 %v3802_v56 }
 0x47b   : > { %v3717_v26 = vadd.f32 %v3657_v6, %v3539_v59  ;;  %v3962_v59 = vrot.slane %v8406_v0, 1  ;;  %v8429_v6 = vld [vmem:[#allocation3 + $0xd8] sm:$0xff] }
 0x47c   : > { %v3966_v7 = vrot.slane %v8429_v6, 1 }
 0x47d   : > { %v3749_v23 = vmax.f32 %v3717_v26, 0.0  ;;  %v4157_v26 = vrot.slane %v8392_v17, 2  ;;  %v3963_v35 = vsel %vm503_vm3, %v3961_v61, %v3962_v59 }
 0x47e   : > { %v8426_v28 = vld [vmem:[#allocation3 + $0xe0] sm:$0xff]  ;;  %v3842_v56 = vld [vmem:[#allocation3 + $0xe8] sm:$0x3] }
 0x47f   : > { %3781 = vst.msk [vmem:[#allocation3 + $0xf1] sm:$0xff] %vm169_vm0, %v3749_v23  ;;  %v3425_v25 = vpop.f32.mrf.mxu2  ;;  %v3967_v8 = vrot.slane %v8426_v28, 1  ;;  %v4167_v2 = vrot.slane %v3842_v56, 2 }
 0x480   : > { %v3544_v10 = vpop.f32.mrf.mxu3  ;;  %4237 = vrot.lane.b32.xlu2 %v4156_v48, %s5555_s30  ;;  %v8443_v48 = vpop.permute.xlu0 %4209 }
 0x481   : > { %4039 = vrot.lane.b32.xlu1 %v3958_v30, %s5554_s29  ;;  %4241 = vrot.lane.b32.xlu0 %v4161_v49, %s5555_s30  ;;  %v8424_v14 = vpop.permute.xlu2 %4011  ;;  %v3801_v30 = vld [vmem:[%s9024_s2 + $0x30] sm:$0xff]  ;;  %v3795_v49 = vld [vmem:[%s9024_s2] sm:$0xff]  ;;  %v3545_v61 = vadd.f32 %v3544_v10, %v3425_v25 }
 0x482   : > { %v3660_v20 = vpop.f32.mrf.mxu0  ;;  %4500 = vmatpush.msra.mxu1 %v3801_v30  ;;  %4619 = vmatpush.msra.mxu2 %v3795_v49  ;;  %v3808_v25 = vld [vmem:[%s9024_s2 + $0x68] sm:$0xff]  ;;  %v3807_v30 = vld [vmem:[%s9024_s2 + $0x60] sm:$0xff] }
 0x483   : > { %v3718_v22 = vadd.f32 %v3660_v20, %v3542_v58  ;;  %v4158_v20 = vsel %vm702_vm4, %v4155_v18, %v4157_v26  ;;  %4737 = vmatpush.msra.mxu3 %v3808_v25 }
 0x485   : > { %v3750_v23 = vmax.f32 %v3718_v22, 0.0  ;;  %v3968_v22 = vsel %vm503_vm3, %v3966_v7, %v3967_v8  ;;  %4738 = vmatpush.msra.mxu3 %v3807_v30  ;;  %v4164_v30 = vrot.slane %v8429_v6, 2 }
 0x487   : > { %3782 = vst.msk [vmem:[#allocation3 + $0xf9] sm:$0xff] %vm169_vm0, %v3750_v23  ;;  %v3428_v17 = vpop.f32.mrf.mxu2  ;;  %v3839_v23 = vld [vmem:[#allocation3 + $0xd0] sm:$0x3] }
 0x488   : > { %v3547_v58 = vpop.f32.mrf.mxu3  ;;  %4043 = vrot.lane.b32.xlu2 %v3963_v35, %s5554_s29  ;;  %v4162_v18 = vrot.slane %v3839_v23, 2  ;;  %v3964_v26 = vrot.slane %v3839_v23, 1  ;;  %v4165_v35 = vrot.slane %v8426_v28, 2 }
 0x489   : > { %4239 = vrot.lane.b32.xlu1 %v4158_v20, %s5555_s30  ;;  %4047 = vrot.lane.b32.xlu0 %v3968_v22, %s5554_s29  ;;  %v8458_v24 = vpop.permute.xlu2 %4013  ;;  %v3548_v22 = vadd.f32 %v3547_v58, %v3428_v17 }
 0x48a   : > { %v3663_v45 = vpop.f32.mrf.mxu0  ;;  %v4163_v7 = vsel %vm702_vm4, %v4160_v43, %v4162_v18  ;;  %v3965_v20 = vsel %vm503_vm3, %v3962_v59, %v3964_v26  ;;  %v3969_v26 = vrot.slane %v3842_v56, 1  ;;  %v4166_v56 = vsel %vm702_vm4, %v4164_v30, %v4165_v35 }
 0x48b   : > { %v3719_v57 = vadd.f32 %v3663_v45, %v3545_v61 }
 0x48d   : > { %v3751_v37 = vmax.f32 %v3719_v57, 0.0  ;;  %v4168_v57 = vsel %vm702_vm4, %v4165_v35, %v4167_v2 }
 0x48e   : > { %v8474_v23 = vld [vmem:[#allocation3 + $0xf8] sm:$0xff]  ;;  %v8476_v43 = vld [vmem:[#allocation3 + $0x100] sm:$0x3] }
 0x48f   : > { %3783 = vst.msk [vmem:[#allocation3 + $0x109] sm:$0xff] %vm169_vm0, %v3751_v37  ;;  %v3431_v10 = vpop.f32.mrf.mxu2  ;;  %v3972_v17 = vrot.slane %v8474_v23, 1  ;;  %v3974_v58 = vrot.slane %v8476_v43, 1 }
 0x490   : > { %v3550_v49 = vpop.f32.mrf.mxu3  ;;  %4243 = vrot.lane.b32.xlu2 %v4163_v7, %s5555_s30 }
 0x491   : > { %4045 = vrot.lane.b32.xlu1 %v3965_v20, %s5554_s29  ;;  %4247 = vrot.lane.b32.xlu0 %v4168_v57, %s5555_s30  ;;  %v2941_v37 = vpop.permute.xlu0 %2940  ;;  %v8484_v7 = vpop.permute.xlu2 %4217  ;;  %v3975_v20 = vsel %vm503_vm3, %v3972_v17, %v3974_v58  ;;  %v3551_v57 = vadd.f32 %v3550_v49, %v3431_v10 }
 0x492   : > { %v3666_v61 = vpop.f32.mrf.mxu0  ;;  %v2939_v45 = vpop.permute.xlu1 %2938 }
 0x493   : > { %v3720_v18 = vadd.f32 %v3666_v61, %v3548_v22  ;;  %v3212_v59 = vsel %vm169_vm0, %v8162_v55, %v2939_v45  ;;  %v3970_v55 = vsel %vm503_vm3, %v3967_v8, %v3969_v26  ;;  %v3213_v45 = vsel %vm169_vm0, %v8167_v47, %v2941_v37  ;;  %v8500_v8 = vld [vmem:[#allocation3 + $0xf0] sm:$0xff] }
 0x494   : > { %v3248_v2 = vsel %vm937_vm5, %v3212_v59, %v8404_v19  ;;  %v4169_v49 = vrot.slane %v8500_v8, 2  ;;  %v3971_v47 = vrot.slane %v8500_v8, 1 }
 0x495   : > { %v3752_v25 = vmax.f32 %v3720_v18, 0.0  ;;  %5275 = vmatmul.msk.f32.gmra.mxu2 %vm974_vm6, %v3248_v2  ;;  %5337 = vmatmul.msk.f32.gmra.mxu0 %vm974_vm6, %v3248_v2  ;;  %v4170_v2 = vrot.slane %v8474_v23, 2 }
 0x496   : > { %v8504_v58 = vld [vmem:[#allocation3 + $0x108] sm:$0xff] }
 0x497   : > { %3784 = vst.msk [vmem:[#allocation3 + $0x111] sm:$0xff] %vm169_vm0, %v3752_v25  ;;  %v3434_v19 = vpop.f32.mrf.mxu2  ;;  %v4171_v30 = vsel %vm702_vm4, %v4169_v49, %v4170_v2 }
 0x498   : > { %4049 = vrot.lane.b32.xlu2 %v3970_v55, %s5554_s29  ;;  %v3553_v22 = vpop.f32.mrf.mxu3  ;;  %v4174_v55 = vrot.slane %v8504_v58, 2 }
 0x499   : > { %4245 = vrot.lane.b32.xlu1 %v4166_v56, %s5555_s30  ;;  %4053 = vrot.lane.b32.xlu0 %v3975_v20, %s5554_s29  ;;  %v4212_v61 = vpop.permute.xlu0 %4211  ;;  %v8513_v25 = vpop.permute.xlu2 %4219  ;;  %v3973_v20 = vsel %vm503_vm3, %v3971_v47, %v3972_v17 }
 0x49a   : > { %v3669_v18 = vpop.f32.mrf.mxu0  ;;  %v3139_v59 = vpop.permute.xlu1 %3138 }
 0x49b   : > { %v3721_v26 = vadd.f32 %v3669_v18, %v3551_v57  ;;  %v3249_v35 = vsel %vm937_vm5, %v3213_v45, %v3139_v59  ;;  %v4317_v57 = vsel %vm169_vm0, %v8106_v9, %v8424_v14  ;;  %v3554_v45 = vadd.f32 %v3553_v22, %v3434_v19 }
 0x49c   : > { %v4353_v9 = vsel %vm937_vm5, %v4317_v57, %v8443_v48  ;;  %v4172_v22 = vrot.slane %v8476_v43, 2  ;;  %v5488_v57 = vld [vmem:[#allocation3 + $0x8] sm:$0xff] }
 0x49d   : > { %v3753_v10 = vmax.f32 %v3721_v26, 0.0  ;;  %5276 = vmatmul.msk.f32.gmra.mxu2 %vm974_vm6, %v3249_v35  ;;  %5338 = vmatmul.msk.f32.gmra.mxu0 %vm974_vm6, %v3249_v35 }
 0x49e   : > { %v8510_v37 = vld [vmem:[#allocation3 + $0x110] sm:$0xff]  ;;  %v3848_v48 = vld [vmem:[#allocation3 + $0x118] sm:$0x3] }
 0x49f   : > { %3785 = vst.msk [vmem:[#allocation3 + $0x121] sm:$0xff] %vm169_vm0, %v3753_v10  ;;  %v4175_v56 = vrot.slane %v8510_v37, 2  ;;  %v3977_v47 = vrot.slane %v8510_v37, 1  ;;  %v3437_v14 = vpop.f32.mrf.mxu2 }
 0x4a0   : > { %4249 = vrot.lane.b32.xlu2 %v4171_v30, %s5555_s30  ;;  %v3556_v19 = vpop.f32.mrf.mxu3 }
 0x4a1   : > { %4051 = vrot.lane.b32.xlu1 %v3973_v20, %s5554_s29  ;;  %v4176_v18 = vsel %vm702_vm4, %v4174_v55, %v4175_v56  ;;  %v4016_v59 = vpop.permute.xlu0 %4015  ;;  %v3976_v55 = vrot.slane %v8504_v58, 1  ;;  %v4173_v20 = vsel %vm702_vm4, %v4170_v2, %v4172_v22  ;;  %v4024_v43 = vpop.permute.xlu2 %4023 }
 0x4a2   : > { %4253 = vrot.lane.b32.xlu0 %v4176_v18, %s5555_s30  ;;  %v3672_v26 = vpop.f32.mrf.mxu0  ;;  %v4214_v35 = vpop.permute.xlu1 %4213  ;;  %v4319_v10 = vsel %vm169_vm0, %v8204_v44, %v4016_v59  ;;  %v3557_v18 = vadd.f32 %v3556_v19, %v3437_v14 }
 0x4a3   : > { %v3722_v49 = vadd.f32 %v3672_v26, %v3554_v45  ;;  %v4355_v17 = vsel %vm937_vm5, %v4319_v10, %v4214_v35  ;;  %v3978_v44 = vsel %vm503_vm3, %v3976_v55, %v3977_v47  ;;  %v4318_v45 = vsel %vm169_vm0, %v5488_v57, %v8458_v24 }
 0x4a4   : > { %5341 = vmatmul.msk.f32.vlgmr.msra.gmra.mxu1 %vm974_vm6, %v4355_v17  ;;  %v4354_v2 = vsel %vm937_vm5, %v4318_v45, %v4212_v61 }
 0x4a5   : > { %v3754_v30 = vmax.f32 %v3722_v49, 0.0  ;;  %5373 = vmatmul.msk.f32.vlgmr.msra.gmra.mxu2 %vm974_vm6, %v4353_v9  ;;  %v4177_v9 = vrot.slane %v3848_v48, 2 }
 0x4a6   : > { %v8550_v24 = vld [vmem:[#allocation3 + $0x120] sm:$0xff] }
 0x4a7   : > { %3786 = vst.msk [vmem:[#allocation3 + $0x129] sm:$0xff] %vm169_vm0, %v3754_v30  ;;  %v3979_v30 = vrot.slane %v3848_v48, 1  ;;  %v3440_v19 = vpop.f32.mrf.mxu2 }
 0x4a8   : > { %4055 = vrot.lane.b32.xlu2 %v3978_v44, %s5554_s29  ;;  %v3559_v55 = vpop.f32.mrf.mxu3 }
 0x4a9   : > { %4251 = vrot.lane.b32.xlu1 %v4173_v20, %s5555_s30  ;;  %v4018_v59 = vpop.permute.xlu0 %4017  ;;  %v3980_v20 = vsel %vm503_vm3, %v3977_v47, %v3979_v30  ;;  %v3560_v57 = vadd.f32 %v3559_v55, %v3440_v19  ;;  %v4179_v19 = vrot.slane %v8550_v24, 2 }
 0x4aa   : > { %v3675_v26 = vpop.f32.mrf.mxu0  ;;  %v4020_v35 = vpop.permute.xlu1 %4019 }
 0x4ab   : > { %v3723_v10 = vadd.f32 %v3675_v26, %v3557_v18  ;;  %v4321_v49 = vsel %vm169_vm0, %v8236_v1, %v4020_v35  ;;  %v4178_v1 = vsel %vm702_vm4, %v4175_v56, %v4177_v9  ;;  %v4224_v35 = vpop.permute.xlu2 %4223 }
 0x4ac   : > { %v8548_v22 = vsel %vm937_vm5, %v4321_v49, %v8484_v7  ;;  %v3981_v7 = vrot.slane %v8550_v24, 1 }
 0x4ad   : > { %v3755_v14 = vmax.f32 %v3723_v10, 0.0  ;;  %5374 = vmatmul.msk.f32.gmra.mxu2 %vm974_vm6, %v4354_v2  ;;  %5405 = vmatmul.msk.f32.vlgmr.msra.gmra.mxu3 %vm974_vm6, %v8548_v22 }
 0x4ae   : > { %v8555_v44 = vld [vmem:[#allocation3 + $0x128] sm:$0xff]  ;;  %v3851_v48 = vld [vmem:[#allocation3 + $0x130] sm:$0x3] }
 0x4af   : > { %3787 = vst.msk [vmem:[#allocation3 + $0x139] sm:$0xff] %vm169_vm0, %v3755_v14  ;;  %v3982_v61 = vrot.slane %v8555_v44, 1  ;;  %v3984_v49 = vrot.slane %v3851_v48, 1  ;;  %v4180_v47 = vrot.slane %v8555_v44, 2  ;;  %v4182_v14 = vrot.slane %v3851_v48, 2 }
 0x4b0   : > { %4255 = vrot.lane.b32.xlu2 %v4178_v1, %s5555_s30 }
 0x4b1   : > { %4057 = vrot.lane.b32.xlu1 %v3980_v20, %s5554_s29  ;;  %v3983_v45 = vsel %vm503_vm3, %v3981_v7, %v3982_v61  ;;  %v4222_v18 = vpop.permute.xlu0 %4221  ;;  %v3985_v55 = vsel %vm503_vm3, %v3982_v61, %v3984_v49  ;;  %v4181_v1 = vsel %vm702_vm4, %v4179_v19, %v4180_v47  ;;  %v4323_v61 = vsel %vm169_vm0, %v8262_v41, %v4024_v43 }
 0x4b2   : > { %4059 = vrot.lane.b32.xlu0 %v3983_v45, %s5554_s29  ;;  %v3678_v26 = vpop.f32.mrf.mxu0  ;;  %v4022_v10 = vpop.permute.xlu1 %4021  ;;  %v4359_v45 = vsel %vm937_vm5, %v4323_v61, %v4222_v18 }
 0x4b3   : > { %v3724_v56 = vadd.f32 %v3678_v26, %v3560_v57  ;;  %v4322_v9 = vsel %vm169_vm0, %v8229_v11, %v4022_v10  ;;  %v4183_v11 = vsel %vm702_vm4, %v4180_v47, %v4182_v14  ;;  %v2943_v57 = vpop.permute.xlu2 %2942 }
 0x4b4   : > { %v4358_v30 = vsel %vm937_vm5, %v4322_v9, %v8513_v25  ;;  %v4320_v25 = vsel %vm169_vm0, %v8201_v27, %v4018_v59  ;;  %v3214_v26 = vsel %vm169_vm0, %v8288_v51, %v2943_v57 }
 0x4b5   : > { %v3756_v2 = vmax.f32 %v3724_v56, 0.0  ;;  %5375 = vmatmul.msk.f32.gmra.mxu2 %vm974_vm6, %v4355_v17  ;;  %5406 = vmatmul.msk.f32.gmra.mxu3 %vm974_vm6, %v4358_v30 }
 0x4b6   : > { %v8583_v20 = vld [vmem:[#allocation3 + $0x138] sm:$0xff] }
 0x4b7   : > { %3788 = vst.msk [vmem:[#allocation3 + $0x141] sm:$0xff] %vm169_vm0, %v3756_v2  ;;  %v4184_v59 = vrot.slane %v8583_v20, 2  ;;  %v3986_v18 = vrot.slane %v8583_v20, 1 }
 0x4b8   : > { %4061 = vrot.lane.b32.xlu2 %v3985_v55, %s5554_s29 }
 0x4b9   : > { %4257 = vrot.lane.b32.xlu1 %v4181_v1, %s5555_s30  ;;  %v4028_v17 = vpop.permute.xlu0 %4027 }
 0x4ba   : > { %4259 = vrot.lane.b32.xlu0 %v4183_v11, %s5555_s30  ;;  %v4216_v7 = vpop.permute.xlu1 %4215 }
 0x4bb   : > { %v4356_v48 = vsel %vm937_vm5, %v4320_v25, %v4216_v7  ;;  %v4325_v25 = vsel %vm169_vm0, %v8280_v50, %v4028_v17  ;;  %v4228_v61 = vpop.permute.xlu2 %4227 }
 0x4bc   : > { %5342 = vmatmul.msk.f32.gmra.mxu1 %vm974_vm6, %v4356_v48 }
 0x4bd   : > { %5376 = vmatmul.msk.f32.gmra.mxu2 %vm974_vm6, %v4356_v48  ;;  %5407 = vmatmul.msk.f32.gmra.mxu3 %vm974_vm6, %v4359_v45 }
 0x4be   : > { %v8594_v27 = vld [vmem:[#allocation3 + $0x140] sm:$0xff]  ;;  %v3854_v56 = vld [vmem:[#allocation3 + $0x148] sm:$0x3] }
 0x4bf   : > { %v4185_v41 = vrot.slane %v8594_v27, 2  ;;  %v3987_v43 = vrot.slane %v8594_v27, 1  ;;  %v3989_v10 = vrot.slane %v3854_v56, 1  ;;  %v4187_v1 = vrot.slane %v3854_v56, 2 }
 0x4c1   : > { %v4186_v49 = vsel %vm702_vm4, %v4184_v59, %v4185_v41  ;;  %v3990_v9 = vsel %vm503_vm3, %v3987_v43, %v3989_v10  ;;  %v3988_v51 = vsel %vm503_vm3, %v3986_v18, %v3987_v43  ;;  %v3141_v47 = vpop.permute.xlu0 %3140  ;;  %v4188_v11 = vsel %vm702_vm4, %v4185_v41, %v4187_v1 }
 0x4c2   : > { %4261 = vrot.lane.b32.xlu2 %v4186_v49, %s5555_s30  ;;  %4065 = vrot.lane.b32.xlu0 %v3990_v9, %s5554_s29  ;;  %v3250_v2 = vsel %vm937_vm5, %v3214_v26, %v3141_v47  ;;  %v4026_v14 = vpop.permute.xlu1 %4025 }
 0x4c3   : > { %4063 = vrot.lane.b32.xlu1 %v3988_v51, %s5554_s29  ;;  %5339 = vmatmul.msk.f32.gmra.mxu0 %vm974_vm6, %v3250_v2  ;;  %v4324_v19 = vsel %vm169_vm0, %v8253_v52, %v4026_v14  ;;  %v4032_v10 = vpop.permute.xlu2 %4031 }
 0x4c4   : > { %5343 = vmatmul.msk.f32.gmra.mxu1 %vm974_vm6, %v8548_v22  ;;  %v4360_v55 = vsel %vm937_vm5, %v4324_v19, %v4224_v35  ;;  %v3562_v35 = vpop.f32.mrf.mxu3 }
 0x4c5   : > { %5377 = vmatmul.msk.f32.gmra.mxu2 %vm974_vm6, %v8548_v22  ;;  %5408 = vmatmul.msk.f32.gmra.mxu3 %vm974_vm6, %v4360_v55  ;;  %v3443_v22 = vpop.f32.mrf.mxu2 }
 0x4c6   : > { %v3563_v26 = vadd.f32 %v3562_v35, %v3443_v22 }
 0x4cb   : > { %4263 = vrot.lane.b32.xlu1 %v4188_v11, %s5555_s30  ;;  %v4226_v7 = vpop.permute.xlu1 %4225  ;;  %v2945_v48 = vpop.permute.xlu0 %2944 }
 0x4cc   : > { %v4361_v52 = vsel %vm937_vm5, %v4325_v25, %v4226_v7  ;;  %5344 = vmatmul.msk.f32.gmra.mxu1 %vm974_vm6, %v4358_v30  ;;  %v3565_v43 = vpop.f32.mrf.mxu3  ;;  %v3215_v18 = vsel %vm169_vm0, %v8290_v46, %v2945_v48  ;;  %v4232_v1 = vpop.permute.xlu2 %4231 }
 0x4cd   : > { %5378 = vmatmul.msk.f32.gmra.mxu2 %vm974_vm6, %v4358_v30  ;;  %5409 = vmatmul.msk.f32.gmra.mxu3 %vm974_vm6, %v4361_v52  ;;  %v3446_v30 = vpop.f32.mrf.mxu2 }
 0x4ce   : > { %v3566_v9 = vadd.f32 %v3565_v43, %v3446_v30 }
 0x4d3   : > { %v4030_v57 = vpop.permute.xlu1 %4029  ;;  %v4230_v49 = vpop.permute.xlu0 %4229 }
 0x4d4   : > { %v4326_v50 = vsel %vm169_vm0, %v8277_v54, %v4030_v57  ;;  %5345 = vmatmul.msk.f32.gmra.mxu1 %vm974_vm6, %v4359_v45 }
 0x4d5   : > { %v3681_v17 = vpop.f32.mrf.mxu0  ;;  %5379 = vmatmul.msk.f32.gmra.mxu2 %vm974_vm6, %v4359_v45  ;;  %v4362_v59 = vsel %vm937_vm5, %v4326_v50, %v4228_v61  ;;  %v4327_v45 = vsel %vm169_vm0, %v8336_v42, %v4032_v10 }
 0x4d6   : > { %v3725_v56 = vadd.f32 %v3681_v17, %v3563_v26  ;;  %5410 = vmatmul.msk.f32.gmra.mxu3 %vm974_vm6, %v4362_v59  ;;  %v4363_v47 = vsel %vm937_vm5, %v4327_v45, %v4230_v49 }
 0x4d8   : > { %v3757_v41 = vmax.f32 %v3725_v56, 0.0 }
 0x4da   : > { %3789 = vst.msk [vmem:[#allocation3 + $0x151] sm:$0xff] %vm169_vm0, %v3757_v41  ;;  %v4038_v41 = vpop.permute.xlu2 %4037 }
 0x4db   : > { %v3143_v54 = vpop.permute.xlu1 %3142  ;;  %v4330_v10 = vsel %vm169_vm0, %v8361_v5, %v4038_v41 }
 0x4dc   : > { %v3251_v51 = vsel %vm937_vm5, %v3215_v18, %v3143_v54  ;;  %5346 = vmatmul.msk.f32.gmra.mxu1 %vm974_vm6, %v4360_v55 }
 0x4dd   : > { %v3684_v2 = vpop.f32.mrf.mxu0  ;;  %5340 = vmatmul.msk.f32.gmra.mxu0 %vm974_vm6, %v3251_v51  ;;  %5380 = vmatmul.msk.f32.gmra.mxu2 %vm974_vm6, %v4360_v55  ;;  %v4036_v55 = vpop.permute.xlu0 %4035 }
 0x4de   : > { %v3726_v14 = vadd.f32 %v3684_v2, %v3566_v9  ;;  %5411 = vmatmul.msk.f32.gmra.mxu3 %vm974_vm6, %v4363_v47  ;;  %v3449_v2 = vpop.f32.mrf.mxu2 }
 0x4e0   : > { %v3758_v46 = vmax.f32 %v3726_v14, 0.0 }
 0x4e1   : > { %v8648_v25 = vld [vmem:[#allocation3 + $0x150] sm:$0xff] }
 0x4e2   : > { %3790 = vst.msk [vmem:[#allocation3 + $0x159] sm:$0xff] %vm169_vm0, %v3758_v46  ;;  %v4189_v22 = vrot.slane %v8648_v25, 2  ;;  %v3991_v57 = vrot.slane %v8648_v25, 1  ;;  %v4238_v9 = vpop.permute.xlu2 %4237  ;;  %v3568_v46 = vpop.f32.mrf.mxu3 }
 0x4e3   : > { %v4034_v19 = vpop.permute.xlu1 %4033 }
 0x4e4   : > { %v4328_v42 = vsel %vm169_vm0, %v8334_v53, %v4034_v19  ;;  %5347 = vmatmul.msk.f32.gmra.mxu1 %vm974_vm6, %v4361_v52 }
 0x4e5   : > { %v4364_v11 = vsel %vm937_vm5, %v4328_v42, %v4232_v1  ;;  %5381 = vmatmul.msk.f32.gmra.mxu2 %vm974_vm6, %v4361_v52  ;;  %v4329_v52 = vsel %vm169_vm0, %v8365_v60, %v4036_v55  ;;  %v4236_v43 = vpop.permute.xlu0 %4235  ;;  %v3569_v55 = vadd.f32 %v3568_v46, %v3449_v2 }
 0x4e6   : > { %5412 = vmatmul.msk.f32.gmra.mxu3 %vm974_vm6, %v4364_v11  ;;  %v4366_v49 = vsel %vm937_vm5, %v4330_v10, %v4236_v43 }
 0x4e9   : > { %v8650_v7 = vld [vmem:[#allocation3 + $0x158] sm:$0xff]  ;;  %v3857_v35 = vld [vmem:[#allocation3 + $0x160] sm:$0x3] }
 0x4ea   : > { %v4190_v61 = vrot.slane %v8650_v7, 2  ;;  %v3992_v53 = vrot.slane %v8650_v7, 1  ;;  %v3994_v48 = vrot.slane %v3857_v35, 1  ;;  %v4192_v60 = vrot.slane %v3857_v35, 2 }
 0x4eb   : > { %v4234_v26 = vpop.permute.xlu1 %4233 }
 0x4ec   : > { %v4365_v50 = vsel %vm937_vm5, %v4329_v52, %v4234_v26  ;;  %v4191_v17 = vsel %vm702_vm4, %v4189_v22, %v4190_v61  ;;  %v3995_v56 = vsel %vm503_vm3, %v3992_v53, %v3994_v48  ;;  %v3993_v30 = vsel %vm503_vm3, %v3991_v57, %v3992_v53  ;;  %5348 = vmatmul.msk.f32.gmra.mxu1 %vm974_vm6, %v4362_v59  ;;  %v3571_v53 = vpop.f32.mrf.mxu3 }
 0x4ed   : > { %4265 = vrot.lane.b32.xlu0 %v4191_v17, %s5555_s30  ;;  %4069 = vrot.lane.b32.xlu1 %v3995_v56, %s5554_s29  ;;  %v4193_v18 = vsel %vm702_vm4, %v4190_v61, %v4192_v60  ;;  %v4042_v45 = vpop.permute.xlu0 %4041 }
 0x4ee   : > { %4067 = vrot.lane.b32.xlu2 %v3993_v30, %s5554_s29  ;;  %5382 = vmatmul.msk.f32.gmra.mxu2 %vm974_vm6, %v4362_v59 }
 0x4ef   : > { %5413 = vmatmul.msk.f32.gmra.mxu3 %vm974_vm6, %v4365_v50 }
 0x4f3   : > { %v4040_v59 = vpop.permute.xlu1 %4039 }
 0x4f4   : > { %5349 = vmatmul.msk.f32.gmra.mxu1 %vm974_vm6, %v4363_v47  ;;  %v4331_v54 = vsel %vm169_vm0, %v8408_v13, %v4040_v59  ;;  %v4044_v13 = vpop.permute.xlu2 %4043  ;;  %v8703_v30 = vpop.f32.mrf.mxu3 }
 0x4f5   : > { %v4367_v5 = vsel %vm937_vm5, %v4331_v54, %v4238_v9  ;;  %v4242_v19 = vpop.permute.xlu0 %4241  ;;  %v4333_v1 = vsel %vm169_vm0, %v8411_v12, %v4044_v13 }
 0x4f6   : > { %4267 = vrot.lane.b32.xlu2 %v4193_v18, %s5555_s30  ;;  %5383 = vmatmul.msk.f32.gmra.mxu2 %vm974_vm6, %v4363_v47  ;;  %v4332_v47 = vsel %vm169_vm0, %v8390_v21, %v4042_v45  ;;  %v4369_v42 = vsel %vm937_vm5, %v4333_v1, %v4242_v19  ;;  %v3452_v21 = vpop.f32.mrf.mxu2 }
 0x4f7   : > { %5414 = vmatmul.msk.f32.gmra.mxu3 %vm974_vm6, %v4366_v49  ;;  %v3572_v26 = vadd.f32 %v3571_v53, %v3452_v21 }
 0x4fb   : > { %v4240_v51 = vpop.permute.xlu1 %4239 }
 0x4fc   : > { %5350 = vmatmul.msk.f32.gmra.mxu1 %vm974_vm6, %v4364_v11  ;;  %v4368_v14 = vsel %vm937_vm5, %v4332_v47, %v4240_v51  ;;  %v4244_v48 = vpop.permute.xlu2 %4243  ;;  %v8723_v51 = vpop.f32.mrf.mxu3 }
 0x4fe   : > { %5384 = vmatmul.msk.f32.gmra.mxu2 %vm974_vm6, %v4364_v11 }
 0x4ff   : > { %5415 = vmatmul.msk.f32.gmra.mxu3 %vm974_vm6, %v4367_v5 }
 0x503   : > { %v4046_v11 = vpop.permute.xlu1 %4045 }
 0x504   : > { %5351 = vmatmul.msk.f32.gmra.mxu1 %vm974_vm6, %v4365_v50  ;;  %v4334_v35 = vsel %vm169_vm0, %v8406_v0, %v4046_v11  ;;  %v4050_v18 = vpop.permute.xlu2 %4049 }
 0x505   : > { %v4370_v12 = vsel %vm937_vm5, %v4334_v35, %v4244_v48 }
 0x506   : > { %5385 = vmatmul.msk.f32.gmra.mxu2 %vm974_vm6, %v4365_v50  ;;  %v4048_v50 = vpop.permute.xlu0 %4047 }
 0x507   : > { %5416 = vmatmul.msk.f32.gmra.mxu3 %vm974_vm6, %v4368_v14  ;;  %v4335_v60 = vsel %vm169_vm0, %v8429_v6, %v4048_v50  ;;  %v4336_v6 = vsel %vm169_vm0, %v8426_v28, %v4050_v18 }
 0x50b   : > { %v4246_v0 = vpop.permute.xlu1 %4245 }
 0x50c   : > { %5352 = vmatmul.msk.f32.gmra.mxu1 %vm974_vm6, %v4366_v49  ;;  %v4371_v43 = vsel %vm937_vm5, %v4335_v60, %v4246_v0  ;;  %v4250_v11 = vpop.permute.xlu2 %4249 }
 0x50e   : > { %5386 = vmatmul.msk.f32.gmra.mxu2 %vm974_vm6, %v4366_v49  ;;  %v4248_v49 = vpop.permute.xlu0 %4247 }
 0x50f   : > { %5417 = vmatmul.msk.f32.gmra.mxu3 %vm974_vm6, %v4369_v42  ;;  %v4372_v54 = vsel %vm937_vm5, %v4336_v6, %v4248_v49 }
 0x512   : > { %v3687_v22 = vpop.f32.mrf.mxu0 }
 0x513   : > { %v3727_v61 = vadd.f32 %v3687_v22, %v3569_v55  ;;  %v4052_v13 = vpop.permute.xlu1 %4051 }
 0x514   : > { %5353 = vmatmul.msk.f32.gmra.mxu1 %vm974_vm6, %v4367_v5  ;;  %v4056_v60 = vpop.permute.xlu2 %4055 }
 0x515   : > { %v3759_v57 = vmax.f32 %v3727_v61, 0.0  ;;  %v4339_v49 = vsel %vm169_vm0, %v8504_v58, %v4056_v60 }
 0x516   : > { %5387 = vmatmul.msk.f32.gmra.mxu2 %vm974_vm6, %v4367_v5 }
 0x517   : > { %3791 = vst.msk [vmem:[#allocation3 + $0x169] sm:$0xff] %vm169_vm0, %v3759_v57  ;;  %5418 = vmatmul.msk.f32.gmra.mxu3 %vm974_vm6, %v4370_v12 }
 0x518   : > { %v8701_v52 = vpop.f32.mrf.mxu2 }
 0x51a   : > { %v3690_v17 = vpop.f32.mrf.mxu0 }
 0x51b   : > { %v3728_v56 = vadd.f32 %v3690_v17, %v3572_v26  ;;  %v4252_v50 = vpop.permute.xlu1 %4251 }
 0x51c   : > { %5354 = vmatmul.msk.f32.gmra.mxu1 %vm974_vm6, %v4368_v14 }
 0x51d   : > { %v3760_v41 = vmax.f32 %v3728_v56, 0.0 }
 0x51e   : > { %5388 = vmatmul.msk.f32.gmra.mxu2 %vm974_vm6, %v4368_v14  ;;  %v8714_v59 = vld [vmem:[#allocation3 + $0x168] sm:$0xff] }
 0x51f   : > { %3792 = vst.msk [vmem:[#allocation3 + $0x171] sm:$0xff] %vm169_vm0, %v3760_v41  ;;  %5419 = vmatmul.msk.f32.gmra.mxu3 %vm974_vm6, %v4371_v43  ;;  %v4194_v5 = vrot.slane %v8714_v59, 2  ;;  %v3996_v14 = vrot.slane %v8714_v59, 1 }
 0x520   : > { %v8712_v10 = vpop.f32.mrf.mxu2 }
 0x521   : > { %v4502_v55 = vpop.f32.mrf.mxu1  ;;  %v3578_v60 = vadd.f32 %v8723_v51, %v8712_v10 }
 0x524   : > { %5355 = vmatmul.msk.f32.gmra.mxu1 %vm974_vm6, %v4369_v42 }
 0x526   : > { %v8720_v9 = vld [vmem:[#allocation3 + $0x170] sm:$0xff]  ;;  %v3860_v45 = vld [vmem:[#allocation3 + $0x178] sm:$0x3]  ;;  %5389 = vmatmul.msk.f32.gmra.mxu2 %vm974_vm6, %v4369_v42  ;;  %v4337_v42 = vsel %vm169_vm0, %v8500_v8, %v4052_v13  ;;  %v4054_v8 = vpop.permute.xlu0 %4053 }
 0x527   : > { %5420 = vmatmul.msk.f32.gmra.mxu3 %vm974_vm6, %v4372_v54  ;;  %v4195_v47 = vrot.slane %v8720_v9, 2  ;;  %v3997_v28 = vrot.slane %v8720_v9, 1  ;;  %v3999_v2 = vrot.slane %v3860_v45, 1  ;;  %v4373_v22 = vsel %vm937_vm5, %v4337_v42, %v4250_v11 }
 0x528   : > { %v4621_v46 = vpop.f32.mrf.mxu2  ;;  %v4197_v35 = vrot.slane %v3860_v45, 2  ;;  %v4338_v0 = vsel %vm169_vm0, %v8474_v23, %v4054_v8  ;;  %v4058_v45 = vpop.permute.xlu1 %4057 }
 0x529   : > { %v4196_v19 = vsel %vm702_vm4, %v4194_v5, %v4195_v47  ;;  %v4000_v1 = vsel %vm503_vm3, %v3997_v28, %v3999_v2  ;;  %v3998_v21 = vsel %vm503_vm3, %v3996_v14, %v3997_v28  ;;  %v4622_v61 = vadd.f32 %v4621_v46, %v4502_v55 }
 0x52a   : > { %4269 = vrot.lane.b32.xlu1 %v4196_v19, %s5555_s30  ;;  %4073 = vrot.lane.b32.xlu2 %v4000_v1, %s5554_s29  ;;  %v4198_v26 = vsel %vm702_vm4, %v4195_v47, %v4197_v35  ;;  %v4340_v46 = vsel %vm169_vm0, %v8510_v37, %v4058_v45 }
 0x52b   : > { %4071 = vrot.lane.b32.xlu0 %v3998_v21, %s5554_s29 }
 0x52c   : > { %5356 = vmatmul.msk.f32.gmra.mxu1 %vm974_vm6, %v4370_v12 }
 0x52e   : > { %5390 = vmatmul.msk.f32.gmra.mxu2 %vm974_vm6, %v4370_v12  ;;  %v4374_v12 = vsel %vm937_vm5, %v4338_v0, %v4252_v50  ;;  %v4254_v18 = vpop.permute.xlu0 %4253 }
 0x52f   : > { %5421 = vmatmul.msk.f32.gmra.mxu3 %vm974_vm6, %v4373_v22  ;;  %v4375_v5 = vsel %vm937_vm5, %v4339_v49, %v4254_v18 }
 0x530   : > { %v4624_v53 = vpop.f32.mrf.mxu2  ;;  %v4740_v48 = vpop.f32.mrf.mxu3 }
 0x531   : > { %v4836_v57 = vadd.f32 %v4740_v48, %v4622_v61  ;;  %v4258_v55 = vpop.permute.xlu1 %4257 }
 0x533   : > { %v4868_v17 = vadd.f32 %v4836_v57, %v5648_v3  ;;  %4271 = vrot.lane.b32.xlu0 %v4198_v26, %s5555_s30 }
 0x534   : > { %5357 = vmatmul.msk.f32.gmra.mxu1 %vm974_vm6, %v4371_v43 }
 0x535   : > { %4900 = vst.msk [vmem:[%s8750_s8] sm:$0xff] %vm169_vm0, %v4868_v17 }
 0x536   : > { %5391 = vmatmul.msk.f32.gmra.mxu2 %vm974_vm6, %v4371_v43  ;;  %v3575_v43 = vadd.f32 %v8703_v30, %v8701_v52  ;;  %v4256_v30 = vpop.permute.xlu2 %4255  ;;  %v4060_v42 = vpop.permute.xlu0 %4059 }
 0x537   : > { %5422 = vmatmul.msk.f32.gmra.mxu3 %vm974_vm6, %v4374_v12  ;;  %v4341_v61 = vsel %vm169_vm0, %v8550_v24, %v4060_v42  ;;  %v8833_v42 = vld [vmem:[#allocation3 + $0x198] sm:$0xff] }
 0x538   : > { %v4627_v56 = vpop.f32.mrf.mxu2  ;;  %v4743_v3 = vpop.f32.mrf.mxu3  ;;  %v4377_v48 = vsel %vm937_vm5, %v4341_v61, %v4258_v55 }
 0x539   : > { %v4505_v41 = vpop.f32.mrf.mxu1 }
 0x53a   : > { %v4625_v23 = vadd.f32 %v4624_v53, %v4505_v41 }
 0x53c   : > { %v4837_v6 = vadd.f32 %v4743_v3, %v4625_v23  ;;  %5358 = vmatmul.msk.f32.gmra.mxu1 %vm974_vm6, %v4372_v54 }
 0x53e   : > { %v4869_v47 = vadd.f32 %v4837_v6, %v5651_v4  ;;  %5392 = vmatmul.msk.f32.gmra.mxu2 %vm974_vm6, %v4372_v54  ;;  %v4376_v54 = vsel %vm937_vm5, %v4340_v46, %v4256_v30  ;;  %v4062_v57 = vpop.permute.xlu2 %4061  ;;  %v4260_v50 = vpop.permute.xlu0 %4259 }
 0x53f   : > { %5423 = vmatmul.msk.f32.gmra.mxu3 %vm974_vm6, %v4375_v5  ;;  %v4342_v17 = vsel %vm169_vm0, %v8555_v44, %v4062_v57 }
 0x540   : > { %v4630_v28 = vpop.f32.mrf.mxu2  ;;  %v3693_v2 = vpop.f32.mrf.mxu0  ;;  %4901 = vst.msk [vmem:[%s8750_s8 + $0x8] sm:$0xff] %vm169_vm0, %v4869_v47 }
 0x541   : > { %v4746_v58 = vpop.f32.mrf.mxu3  ;;  %v3729_v14 = vadd.f32 %v3693_v2, %v3575_v43  ;;  %v4508_v13 = vpop.f32.mrf.mxu1 }
 0x542   : > { %v4628_v52 = vadd.f32 %v4627_v56, %v4508_v13  ;;  %v8791_v56 = vsel %vm937_vm5, %v4342_v17, %v4260_v50 }
 0x543   : > { %v3761_v19 = vmax.f32 %v3729_v14, 0.0 }
 0x544   : > { %v4838_v4 = vadd.f32 %v4746_v58, %v4628_v52  ;;  %5359 = vmatmul.msk.f32.gmra.mxu1 %vm974_vm6, %v4373_v22 }
 0x545   : > { %3793 = vst.msk [vmem:[#allocation3 + $0x181] sm:$0xff] %vm169_vm0, %v3761_v19 }
 0x546   : > { %v4870_v1 = vadd.f32 %v4838_v4, %v5900_v32  ;;  %5393 = vmatmul.msk.f32.gmra.mxu2 %vm974_vm6, %v4373_v22  ;;  %v4262_v6 = vpop.permute.xlu2 %4261  ;;  %v4066_v47 = vpop.permute.xlu0 %4065 }
 0x547   : > { %5424 = vmatmul.msk.f32.gmra.mxu3 %vm974_vm6, %v4376_v54  ;;  %v4344_v13 = vsel %vm169_vm0, %v8594_v27, %v4066_v47 }
 0x548   : > { %v4633_v21 = vpop.f32.mrf.mxu2  ;;  %4902 = vst.msk [vmem:[%s8750_s8 + $0x10] sm:$0xff] %vm169_vm0, %v4870_v1 }
 0x549   : > { %v4749_v37 = vpop.f32.mrf.mxu3  ;;  %v4511_v11 = vpop.f32.mrf.mxu1 }
 0x54a   : > { %v4631_v35 = vadd.f32 %v4630_v28, %v4511_v11 }
 0x54c   : > { %v4839_v53 = vadd.f32 %v4749_v37, %v4631_v35  ;;  %5360 = vmatmul.msk.f32.gmra.mxu1 %vm974_vm6, %v4374_v12  ;;  %v8815_v14 = vld [vmem:[#allocation3 + $0x180] sm:$0xff] }
 0x54d   : > { %v4199_v52 = vrot.slane %v8815_v14, 2  ;;  %v4001_v4 = vrot.slane %v8815_v14, 1  ;;  %v8835_v37 = vld [vmem:[#allocation3 + $0x1a0] sm:$0xff] }
 0x54e   : > { %v4871_v32 = vadd.f32 %v4839_v53, %v5906_v34  ;;  %5394 = vmatmul.msk.f32.gmra.mxu2 %vm974_vm6, %v4374_v12  ;;  %v4064_v12 = vpop.permute.xlu1 %4063  ;;  %v4068_v53 = vpop.permute.xlu2 %4067 }
 0x54f   : > { %5425 = vmatmul.msk.f32.gmra.mxu3 %vm974_vm6, %v4377_v48  ;;  %v4343_v23 = vsel %vm169_vm0, %v8583_v20, %v4064_v12 }
 0x550   : > { %v4636_v22 = vpop.f32.mrf.mxu2  ;;  %4903 = vst.msk [vmem:[%s8750_s8 + $0x18] sm:$0xff] %vm169_vm0, %v4871_v32  ;;  %v8806_v45 = vsel %vm937_vm5, %v4343_v23, %v4262_v6 }
 0x551   : > { %v4752_v8 = vpop.f32.mrf.mxu3  ;;  %v4514_v26 = vpop.f32.mrf.mxu1 }
 0x552   : > { %v4634_v24 = vadd.f32 %v4633_v21, %v4514_v26  ;;  %v4345_v26 = vsel %vm169_vm0, %v8648_v25, %v4068_v53 }
 0x554   : > { %v4840_v0 = vadd.f32 %v4752_v8, %v4634_v24  ;;  %5361 = vmatmul.msk.f32.gmra.mxu1 %vm974_vm6, %v4375_v5  ;;  %v4205_v8 = vrot.slane %v8835_v37, 2 }
 0x556   : > { %v4872_v34 = vadd.f32 %v4840_v0, %v5912_v36  ;;  %5395 = vmatmul.msk.f32.gmra.mxu2 %vm974_vm6, %v4375_v5  ;;  %v4264_v2 = vpop.permute.xlu1 %4263  ;;  %v4268_v6 = vpop.permute.xlu2 %4267 }
 0x557   : > { %5426 = vmatmul.msk.f32.gmra.mxu3 %vm974_vm6, %v8791_v56  ;;  %v8820_v46 = vsel %vm937_vm5, %v4344_v13, %v4264_v2 }
 0x558   : > { %v4639_v3 = vpop.f32.mrf.mxu2  ;;  %4904 = vst.msk [vmem:[%s8750_s8 + $0x20] sm:$0xff] %vm169_vm0, %v4872_v34 }
 0x559   : > { %v4755_v44 = vpop.f32.mrf.mxu3  ;;  %v4517_v18 = vpop.f32.mrf.mxu1 }
 0x55a   : > { %v3696_v41 = vpop.f32.mrf.mxu0  ;;  %v4637_v49 = vadd.f32 %v4636_v22, %v4517_v18  ;;  %v4204_v22 = vrot.slane %v8833_v42, 2 }
 0x55b   : > { %v3730_v36 = vadd.f32 %v3696_v41, %v3578_v60  ;;  %v4007_v41 = vrot.slane %v8835_v37, 1 }
 0x55c   : > { %v4841_v43 = vadd.f32 %v4755_v44, %v4637_v49  ;;  %5362 = vmatmul.msk.f32.gmra.mxu1 %vm974_vm6, %v4376_v54  ;;  %v4206_v0 = vsel %vm702_vm4, %v4204_v22, %v4205_v8 }
 0x55d   : > { %v3762_v5 = vmax.f32 %v3730_v36, 0.0 }
 0x55e   : > { %v4873_v10 = vadd.f32 %v4841_v43, %v5918_v38  ;;  %5396 = vmatmul.msk.f32.gmra.mxu2 %vm974_vm6, %v4376_v54 }
 0x55f   : > { %3794 = vst.msk [vmem:[#allocation3 + $0x189] sm:$0xff] %vm169_vm0, %v3762_v5  ;;  %5427 = vmatmul.msk.f32.gmra.mxu3 %vm974_vm6, %v8806_v45  ;;  %v4070_v34 = vpop.permute.xlu1 %4069 }
 0x560   : > { %4905 = vst.msk [vmem:[%s8750_s8 + $0x28] sm:$0xff] %vm169_vm0, %v4873_v10  ;;  %v4642_v20 = vpop.f32.mrf.mxu2  ;;  %v4346_v18 = vsel %vm169_vm0, %v8650_v7, %v4070_v34 }
 0x561   : > { %v4758_v51 = vpop.f32.mrf.mxu3  ;;  %v4520_v28 = vpop.f32.mrf.mxu1  ;;  %v4382_v43 = vsel %vm937_vm5, %v4346_v18, %v4268_v6 }
 0x562   : > { %v4640_v58 = vadd.f32 %v4639_v3, %v4520_v28  ;;  %v3866_v3 = vld [vmem:[#allocation3 + $0x1a8] sm:$0x3] }
 0x563   : > { %v4009_v36 = vrot.slane %v3866_v3, 1  ;;  %v4207_v28 = vrot.slane %v3866_v3, 2 }
 0x564   : > { %v4842_v38 = vadd.f32 %v4758_v51, %v4640_v58  ;;  %5363 = vmatmul.msk.f32.gmra.mxu1 %vm974_vm6, %v4377_v48 }
 0x565   : > { %v4010_v10 = vsel %vm503_vm3, %v4007_v41, %v4009_v36  ;;  %v4208_v58 = vsel %vm702_vm4, %v4205_v8, %v4207_v28 }
 0x566   : > { %v8823_v19 = vld [vmem:[#allocation3 + $0x188] sm:$0xff]  ;;  %v3863_v30 = vld [vmem:[#allocation3 + $0x190] sm:$0x3]  ;;  %v4874_v54 = vadd.f32 %v4842_v38, %v5923_v39  ;;  %5397 = vmatmul.msk.f32.gmra.mxu2 %vm974_vm6, %v4377_v48  ;;  %v4266_v48 = vpop.permute.xlu0 %4265 }
 0x567   : > { %5428 = vmatmul.msk.f32.gmra.mxu3 %vm974_vm6, %v8820_v46  ;;  %v4200_v27 = vrot.slane %v8823_v19, 2  ;;  %v4002_v1 = vrot.slane %v8823_v19, 1  ;;  %v4004_v21 = vrot.slane %v3863_v30, 1  ;;  %v4381_v50 = vsel %vm937_vm5, %v4345_v26, %v4266_v48 }
 0x568   : > { %4906 = vst.msk [vmem:[%s8750_s8 + $0x30] sm:$0xff] %vm169_vm0, %v4874_v54  ;;  %v4645_v11 = vpop.f32.mrf.mxu2  ;;  %v4202_v17 = vrot.slane %v3863_v30, 2 }
 0x569   : > { %v4761_v55 = vpop.f32.mrf.mxu3  ;;  %v4201_v39 = vsel %vm702_vm4, %v4199_v52, %v4200_v27  ;;  %v4005_v35 = vsel %vm503_vm3, %v4002_v1, %v4004_v21  ;;  %v4003_v61 = vsel %vm503_vm3, %v4001_v4, %v4002_v1  ;;  %v4523_v32 = vpop.f32.mrf.mxu1 }
 0x56a   : > { %4273 = vrot.lane.b32.xlu2 %v4201_v39, %s5555_s30  ;;  %4077 = vrot.lane.b32.xlu0 %v4005_v35, %s5554_s29  ;;  %v4643_v57 = vadd.f32 %v4642_v20, %v4523_v32  ;;  %v4203_v44 = vsel %vm702_vm4, %v4200_v27, %v4202_v17 }
 0x56b   : > { %4075 = vrot.lane.b32.xlu1 %v4003_v61, %s5554_s29 }
 0x56c   : > { %v4843_v24 = vadd.f32 %v4761_v55, %v4643_v57  ;;  %5364 = vmatmul.msk.f32.gmra.mxu1 %vm974_vm6, %v8791_v56 }
 0x56e   : > { %5398 = vmatmul.msk.f32.gmra.mxu2 %vm974_vm6, %v8791_v56  ;;  %v4875_v12 = vadd.f32 %v4843_v24, %v5928_v40  ;;  %v4006_v56 = vrot.slane %v8833_v42, 1 }
 0x56f   : > { %5429 = vmatmul.msk.f32.gmra.mxu3 %vm974_vm6, %v4381_v50 }
 0x570   : > { %4907 = vst.msk [vmem:[%s8750_s8 + $0x38] sm:$0xff] %vm169_vm0, %v4875_v12  ;;  %v4008_v49 = vsel %vm503_vm3, %v4006_v56, %v4007_v41 }
 0x571   : > { %v4648_v25 = vpop.f32.mrf.mxu2  ;;  %v4526_v40 = vpop.f32.mrf.mxu1 }
 0x572   : > { %v4764_v60 = vpop.f32.mrf.mxu3  ;;  %4277 = vrot.lane.b32.xlu0 %v4206_v0, %s5555_s30  ;;  %v4646_v23 = vadd.f32 %v4645_v11, %v4526_v40  ;;  %4079 = vrot.lane.b32.xlu2 %v4008_v49, %s5554_s29 }
 0x573   : > { %4275 = vrot.lane.b32.xlu1 %v4203_v44, %s5555_s30 }
 0x574   : > { %v4844_v5 = vadd.f32 %v4764_v60, %v4646_v23  ;;  %5365 = vmatmul.msk.f32.gmra.mxu1 %vm974_vm6, %v8806_v45  ;;  %v9074_v23 = vld [vmem:[#allocation7_spill] sm:$0xff] }
 0x576   : > { %5399 = vmatmul.msk.f32.gmra.mxu2 %vm974_vm6, %v8806_v45  ;;  %v4876_v7 = vadd.f32 %v4844_v5, %v5965_v62 }
 0x577   : > { %5430 = vmatmul.msk.f32.gmra.mxu3 %vm974_vm6, %v4382_v43 }
 0x578   : > { %4908 = vst.msk [vmem:[%s8750_s8 + $0x40] sm:$0xff] %vm169_vm0, %v4876_v7  ;;  %v9075_v7 = vld [vmem:[#allocation8_spill] sm:$0xff] }
 0x579   : > { %v4651_v20 = vpop.f32.mrf.mxu2  ;;  %v4529_v47 = vpop.f32.mrf.mxu1 }
 0x57a   : > { %v4767_v51 = vpop.f32.mrf.mxu3  ;;  %v4649_v2 = vadd.f32 %v4648_v25, %v4529_v47  ;;  %4279 = vrot.lane.b32.xlu2 %v4208_v58, %s5555_s30  ;;  %v9076_v58 = vld [vmem:[#allocation9_spill] sm:$0xff] }
 0x57b   : > { %4081 = vrot.lane.b32.xlu1 %v4010_v10, %s5554_s29  ;;  %s5443_s29 = sshll.u32 %s5599_s16, 8  ;;  %s4933_s16 = scalar_lea.sflag [#allocation5], %s161_s6 }
 0x57c   : > { %v4845_v45 = vadd.f32 %v4767_v51, %v4649_v2  ;;  %5366 = vmatmul.msk.f32.gmra.mxu1 %vm974_vm6, %v8820_v46  ;;  %s4944_s10 = scalar_lea.hbm %s9025_s3, %s5443_s29 }
 0x57d   : > { %s4947_s17 = sshll.u32 %s4944_s10, 4  ;;  %s4948_s17 = int_to_ptr.hbm [resolvable:$true] %s4947_s17 }
 0x57e   : > { %5400 = vmatmul.msk.f32.gmra.mxu2 %vm974_vm6, %v8820_v46  ;;  %v4877_v62 = vadd.f32 %v4845_v45, %v5968_v63  ;;  %s5503_s19 = sshra.s32 %s4948_s17, 4  ;;  %s5504_s19 = int_to_ptr.hbm [resolvable:$true] %s5503_s19 }
 0x57f   : > { %s5505_s20 = scalar_lea.hbm %s5504_s19, 256  ;;  %p5510_p0 = scmp.lt.s32.totalorder %s5504_s19, %s9025_s3 }
 0x580   : > { %4909 = vst.msk [vmem:[%s8750_s8 + $0x48] sm:$0xff] %vm169_vm0, %v4877_v62  ;;  %p5506_p11 = scmp.ne.s32.totalorder %s5504_s19, %s5505_s20  ;;  %p5511_p1 = scmp.lt.s32.totalorder %s5509_s26, %s5505_s20 }
 0x581   : > { %v4654_v13 = vpop.f32.mrf.mxu2  ;;  %v4532_v52 = vpop.f32.mrf.mxu1 }
 0x582   : > { %v4770_v38 = vpop.f32.mrf.mxu3  ;;  %v4652_v30 = vadd.f32 %v4651_v20, %v4532_v52  ;;  %p5507_p12 = pnand %p5506_p11, %p5616_p5  ;;  %p5512_p2 = por %p5511_p1, %p5510_p0 }
 0x584   : > { %v4846_v4 = vadd.f32 %v4770_v38, %v4652_v30  ;;  %5367 = vmatmul.msk.f32.gmra.mxu1 %vm974_vm6, %v4381_v50  ;;  %p5508_p13 = pneg %p5507_p12 }
 0x586   : > { %5401 = vmatmul.msk.f32.gmra.mxu2 %vm974_vm6, %v4381_v50  ;;  %v4878_v54 = vadd.f32 %v4846_v4, %v5986_v15  ;;  %v9077_v4 = vld [vmem:[#allocation10_spill] sm:$0xff]  ;;  %p5513_p3 = pnand %p5512_p2, %p5508_p13 }
 0x588   : > { %4910 = vst.msk [vmem:[%s8750_s8 + $0x50] sm:$0xff] %vm169_vm0, %v4878_v54 }
 0x589   : > { %v4657_v46 = vpop.f32.mrf.mxu2  ;;  %v4535_v63 = vpop.f32.mrf.mxu1 }
 0x58a   : > { %v4773_v27 = vpop.f32.mrf.mxu3  ;;  %v4655_v1 = vadd.f32 %v4654_v13, %v4535_v63 }
 0x58c   : > { %v4847_v21 = vadd.f32 %v4773_v27, %v4655_v1  ;;  %5368 = vmatmul.msk.f32.gmra.mxu1 %vm974_vm6, %v4382_v43 }
 0x58e   : > { %5402 = vmatmul.msk.f32.gmra.mxu2 %vm974_vm6, %v4382_v43  ;;  %v4879_v11 = vadd.f32 %v4847_v21, %v5989_v16 }
 0x590   : > { %4911 = vst.msk [vmem:[%s8750_s8 + $0x58] sm:$0xff] %vm169_vm0, %v4879_v11  ;;  %v9078_v11 = vld [vmem:[#allocation11_spill] sm:$0xff] }
 0x591   : > { %v4660_v55 = vpop.f32.mrf.mxu2  ;;  %v4538_v35 = vpop.f32.mrf.mxu1 }
 0x592   : > { %v4776_v39 = vpop.f32.mrf.mxu3  ;;  %v4658_v15 = vadd.f32 %v4657_v46, %v4538_v35 }
 0x594   : > { %v4848_v61 = vadd.f32 %v4776_v39, %v4658_v15 }
 0x596   : > { %v4880_v53 = vadd.f32 %v4848_v61, %v6008_v31  ;;  %v4074_v31 = vpop.permute.xlu2 %4073 }
 0x598   : > { %4912 = vst.msk [vmem:[%s8750_s8 + $0x60] sm:$0xff] %vm169_vm0, %v4880_v53 }
 0x599   : > { %v4663_v48 = vpop.f32.mrf.mxu2  ;;  %v4541_v22 = vpop.f32.mrf.mxu1 }
 0x59a   : > { %v4779_v32 = vpop.f32.mrf.mxu3  ;;  %v4661_v8 = vadd.f32 %v4660_v55, %v4541_v22 }
 0x59c   : > { %v4270_v57 = vpop.permute.xlu1 %4269  ;;  %v4849_v50 = vadd.f32 %v4779_v32, %v4661_v8 }
 0x59d   : > { %v4072_v26 = vpop.permute.xlu0 %4071 }
 0x59e   : > { %v4347_v16 = vsel %vm169_vm0, %v8714_v59, %v4072_v26  ;;  %v4881_v17 = vadd.f32 %v4849_v50, %v6011_v33  ;;  %v4348_v59 = vsel %vm169_vm0, %v8720_v9, %v4074_v31 }
 0x59f   : > { %v4383_v24 = vsel %vm937_vm5, %v4347_v16, %v4270_v57 }
 0x5a0   : > { %5369 = vmatmul.msk.f32.gmra.mxu1 %vm974_vm6, %v4383_v24  ;;  %5403 = vmatmul.msk.f32.gmra.mxu2 %vm974_vm6, %v4383_v24  ;;  %4913 = vst.msk [vmem:[%s8750_s8 + $0x68] sm:$0xff] %vm169_vm0, %v4881_v17 }
 0x5a1   : > { %5431 = vmatmul.msk.f32.gmra.mxu3 %vm974_vm6, %v4383_v24  ;;  %v4666_v0 = vpop.f32.mrf.mxu2  ;;  %v4544_v12 = vpop.f32.mrf.mxu1 }
 0x5a2   : > { %v4782_v34 = vpop.f32.mrf.mxu3  ;;  %v4664_v3 = vadd.f32 %v4663_v48, %v4544_v12  ;;  %v9079_v48 = vld [vmem:[#allocation12_spill] sm:$0xff] }
 0x5a4   : > { %v4850_v33 = vadd.f32 %v4782_v34, %v4664_v3 }
 0x5a5   : > { %v4272_v25 = vpop.permute.xlu0 %4271 }
 0x5a6   : > { %v4384_v60 = vsel %vm937_vm5, %v4348_v59, %v4272_v25  ;;  %v4882_v44 = vadd.f32 %v4850_v33, %v6073_v29 }
 0x5a8   : > { %5370 = vmatmul.msk.f32.gmra.mxu1 %vm974_vm6, %v4384_v60  ;;  %5404 = vmatmul.msk.f32.gmra.mxu2 %vm974_vm6, %v4384_v60  ;;  %4914 = vst.msk [vmem:[%s8750_s8 + $0x70] sm:$0xff] %vm169_vm0, %v4882_v44 }
 0x5a9   : > { %5432 = vmatmul.msk.f32.gmra.mxu3 %vm974_vm6, %v4384_v60  ;;  %v4669_v41 = vpop.f32.mrf.mxu2  ;;  %v4547_v18 = vpop.f32.mrf.mxu1 }
 0x5aa   : > { %v4785_v56 = vpop.f32.mrf.mxu3  ;;  %v4667_v40 = vadd.f32 %v4666_v0, %v4547_v18  ;;  %v9080_v0 = vld [vmem:[#allocation13_spill] sm:$0xff]  ;;  %v9081_v18 = vld [vmem:[#allocation14_spill] sm:$0xff] }
 0x5ac   : > { %v4851_v9 = vadd.f32 %v4785_v56, %v4667_v40 }
 0x5ae   : > { %v4883_v36 = vadd.f32 %v4851_v9, %v9074_v23 }
 0x5b0   : > { %4915 = vst.msk [vmem:[%s8750_s8 + $0x78] sm:$0xff] %vm169_vm0, %v4883_v36 }
 0x5b1   : > { %v4672_v29 = vpop.f32.mrf.mxu2  ;;  %v4550_v6 = vpop.f32.mrf.mxu1 }
 0x5b2   : > { %v4788_v49 = vpop.f32.mrf.mxu3  ;;  %v4670_v5 = vadd.f32 %v4669_v41, %v4550_v6 }
 0x5b4   : > { %v4852_v43 = vadd.f32 %v4788_v49, %v4670_v5 }
 0x5b6   : > { %v4884_v10 = vadd.f32 %v4852_v43, %v9075_v7  ;;  %v9082_v43 = vld [vmem:[#allocation15_spill] sm:$0xff] }
 0x5b8   : > { %4916 = vst.msk [vmem:[%s8750_s8 + $0x80] sm:$0xff] %vm169_vm0, %v4884_v10 }
 0x5b9   : > { %v4675_v20 = vpop.f32.mrf.mxu2  ;;  %v4553_v47 = vpop.f32.mrf.mxu1 }
 0x5ba   : > { %v4791_v51 = vpop.f32.mrf.mxu3  ;;  %v4673_v28 = vadd.f32 %v4672_v29, %v4553_v47 }
 0x5bc   : > { %v4853_v2 = vadd.f32 %v4791_v51, %v4673_v28 }
 0x5be   : > { %v4885_v45 = vadd.f32 %v4853_v2, %v9076_v58 }
 0x5c0   : > { %4917 = vst.msk [vmem:[%s8750_s8 + $0x88] sm:$0xff] %vm169_vm0, %v4885_v45  ;;  %v9083_v45 = vld [vmem:[#allocation16_spill] sm:$0xff] }
 0x5c1   : > { %v4678_v62 = vpop.f32.mrf.mxu2  ;;  %v4556_v38 = vpop.f32.mrf.mxu1 }
 0x5c2   : > { %v4794_v13 = vpop.f32.mrf.mxu3  ;;  %v4676_v52 = vadd.f32 %v4675_v20, %v4556_v38 }
 0x5c4   : > { %v4854_v30 = vadd.f32 %v4794_v13, %v4676_v52  ;;  %v4274_v16 = vpop.permute.xlu2 %4273 }
 0x5c6   : > { %v4886_v54 = vadd.f32 %v4854_v30, %v9077_v4  ;;  %v9084_v4 = vld [vmem:[#allocation17_spill] sm:$0xff] }
 0x5c8   : > { %4918 = vst.msk [vmem:[%s8750_s8 + $0x90] sm:$0xff] %vm169_vm0, %v4886_v54 }
 0x5c9   : > { %v4681_v46 = vpop.f32.mrf.mxu2  ;;  %v4559_v63 = vpop.f32.mrf.mxu1 }
 0x5ca   : > { %v4797_v27 = vpop.f32.mrf.mxu3  ;;  %v4679_v1 = vadd.f32 %v4678_v62, %v4559_v63 }
 0x5cc   : > { %v4855_v21 = vadd.f32 %v4797_v27, %v4679_v1  ;;  %v4080_v56 = vpop.permute.xlu2 %4079 }
 0x5cd   : > { %v4351_v23 = vsel %vm169_vm0, %v8833_v42, %v4080_v56 }
 0x5ce   : > { %v4887_v55 = vadd.f32 %v4855_v21, %v9078_v11  ;;  %v9085_v11 = vld [vmem:[#allocation18_spill] sm:$0xff] }
 0x5d0   : > { %4919 = vst.msk [vmem:[%s8750_s8 + $0x98] sm:$0xff] %vm169_vm0, %v4887_v55 }
 0x5d1   : > { %v4684_v35 = vpop.f32.mrf.mxu2  ;;  %v4562_v15 = vpop.f32.mrf.mxu1 }
 0x5d2   : > { %v4800_v39 = vpop.f32.mrf.mxu3  ;;  %v4682_v61 = vadd.f32 %v4681_v46, %v4562_v15 }
 0x5d4   : > { %v4856_v53 = vadd.f32 %v4800_v39, %v4682_v61  ;;  %v4280_v42 = vpop.permute.xlu2 %4279 }
 0x5d6   : > { %v4888_v32 = vadd.f32 %v4856_v53, %v9079_v48  ;;  %v9086_v48 = vld [vmem:[#allocation19_spill] sm:$0xff] }
 0x5d8   : > { %4920 = vst.msk [vmem:[%s8750_s8 + $0xa0] sm:$0xff] %vm169_vm0, %v4888_v32 }
 0x5d9   : > { %v4565_v8 = vpop.f32.mrf.mxu1  ;;  %v4687_v26 = vpop.f32.mrf.mxu2 }
 0x5da   : > { %v4803_v22 = vpop.f32.mrf.mxu3  ;;  %v4685_v57 = vadd.f32 %v4684_v35, %v4565_v8 }
 0x5dc   : > { %v4857_v24 = vadd.f32 %v4803_v22, %v4685_v57  ;;  %v4078_v12 = vpop.permute.xlu0 %4077 }
 0x5dd   : > { %v4076_v50 = vpop.permute.xlu1 %4075  ;;  %v4350_v33 = vsel %vm169_vm0, %v8823_v19, %v4078_v12 }
 0x5de   : > { %v4349_v17 = vsel %vm169_vm0, %v8815_v14, %v4076_v50  ;;  %v4889_v34 = vadd.f32 %v4857_v24, %v9080_v0  ;;  %v9087_v24 = vld [vmem:[#allocation20_spill] sm:$0xff] }
 0x5df   : > { %v4385_v31 = vsel %vm937_vm5, %v4349_v17, %v4274_v16 }
 0x5e0   : > { %5371 = vmatmul.msk.f32.gmra.mxu1 %vm974_vm6, %v4385_v31  ;;  %5433 = vmatmul.msk.f32.gmra.mxu3 %vm974_vm6, %v4385_v31  ;;  %4921 = vst.msk [vmem:[%s8750_s8 + $0xa8] sm:$0xff] %vm169_vm0, %v4889_v34 }
 0x5e1   : > { %v4568_v59 = vpop.f32.mrf.mxu1  ;;  %v4690_v41 = vpop.f32.mrf.mxu2 }
 0x5e2   : > { %v4806_v3 = vpop.f32.mrf.mxu3  ;;  %v4688_v25 = vadd.f32 %v4687_v26, %v4568_v59  ;;  %v9088_v59 = vld [vmem:[#allocation21_spill] sm:$0xff] }
 0x5e4   : > { %v4858_v14 = vadd.f32 %v4806_v3, %v4688_v25  ;;  %v4278_v19 = vpop.permute.xlu0 %4277 }
 0x5e5   : > { %v4276_v60 = vpop.permute.xlu1 %4275  ;;  %v4387_v49 = vsel %vm937_vm5, %v4351_v23, %v4278_v19 }
 0x5e6   : > { %v4386_v44 = vsel %vm937_vm5, %v4350_v33, %v4276_v60  ;;  %v4890_v40 = vadd.f32 %v4858_v14, %v9081_v18 }
 0x5e8   : > { %5372 = vmatmul.msk.f32.gmra.mxu1 %vm974_vm6, %v4386_v44  ;;  %5434 = vmatmul.msk.f32.gmra.mxu3 %vm974_vm6, %v4386_v44  ;;  %4922 = vst.msk [vmem:[%s8750_s8 + $0xb0] sm:$0xff] %vm169_vm0, %v4890_v40 }
 0x5e9   : > { %v4571_v36 = vpop.f32.mrf.mxu1  ;;  %v4693_v10 = vpop.f32.mrf.mxu2 }
 0x5ea   : > { %v4809_v9 = vpop.f32.mrf.mxu3  ;;  %v4691_v29 = vadd.f32 %v4690_v41, %v4571_v36  ;;  %v9089_v41 = vld [vmem:[#allocation22_spill] sm:$0xff]  ;;  %v9090_v36 = vld [vmem:[#allocation23_spill] sm:$0xff] }
 0x5ec   : > { %v4859_v6 = vadd.f32 %v4809_v9, %v4691_v29 }
 0x5ed   : > { %v4082_v5 = vpop.permute.xlu1 %4081 }
 0x5ee   : > { %v4891_v7 = vadd.f32 %v4859_v6, %v9082_v43  ;;  %v4352_v20 = vsel %vm169_vm0, %v8835_v37, %v4082_v5 }
 0x5ef   : > { %v4388_v2 = vsel %vm937_vm5, %v4352_v20, %v4280_v42 }
 0x5f0   : > { %5435 = vmatmul.msk.f32.gmra.mxu3 %vm974_vm6, %v4387_v49  ;;  %4923 = vst.msk [vmem:[%s8750_s8 + $0xb8] sm:$0xff] %vm169_vm0, %v4891_v7 }
 0x5f1   : > { %v4574_v47 = vpop.f32.mrf.mxu1  ;;  %v4696_v13 = vpop.f32.mrf.mxu2 }
 0x5f2   : > { %v4812_v51 = vpop.f32.mrf.mxu3  ;;  %v4694_v28 = vadd.f32 %v4693_v10, %v4574_v47 }
 0x5f4   : > { %v4860_v58 = vadd.f32 %v4812_v51, %v4694_v28 }
 0x5f6   : > { %v4892_v62 = vadd.f32 %v4860_v58, %v9083_v45 }
 0x5f8   : > { %5436 = vmatmul.msk.f32.gmra.mxu3 %vm974_vm6, %v4388_v2  ;;  %4924 = vst.msk [vmem:[%s8750_s8 + $0xc0] sm:$0xff] %vm169_vm0, %v4892_v62 }
 0x5f9   : > { %v4577_v38 = vpop.f32.mrf.mxu1  ;;  %v4699_v27 = vpop.f32.mrf.mxu2 }
 0x5fa   : > { %v4697_v52 = vadd.f32 %v4696_v13, %v4577_v38  ;;  %v4815_v30 = vpop.f32.mrf.mxu3 }
 0x5fc   : > { %v4861_v37 = vadd.f32 %v4815_v30, %v4697_v52 }
 0x5fe   : > { %v4893_v54 = vadd.f32 %v4861_v37, %v9084_v4 }
 0x600   : > { %4925 = vst.msk [vmem:[%s8750_s8 + $0xc8] sm:$0xff] %vm169_vm0, %v4893_v54 }
 0x601   : > { %v4580_v46 = vpop.f32.mrf.mxu1  ;;  %v4702_v35 = vpop.f32.mrf.mxu2 }
 0x602   : > { %v4700_v63 = vadd.f32 %v4699_v27, %v4580_v46 }
 0x609   : > { %v4583_v39 = vpop.f32.mrf.mxu1  ;;  %v4705_v8 = vpop.f32.mrf.mxu2 }
 0x60a   : > { %v4703_v15 = vadd.f32 %v4702_v35, %v4583_v39 }
 0x611   : > { %v4708_v31 = vpop.f32.mrf.mxu2 }
 0x61d   : > { %v4586_v22 = vpop.f32.mrf.mxu1 }
 0x61e   : > { %v4706_v57 = vadd.f32 %v4705_v8, %v4586_v22 }
 0x623   : > { %v4711_v33 = vpop.f32.mrf.mxu2 }
 0x624   : > { %v4818_v1 = vpop.f32.mrf.mxu3 }
 0x625   : > { %v4862_v21 = vadd.f32 %v4818_v1, %v4700_v63  ;;  %v4589_v16 = vpop.f32.mrf.mxu1 }
 0x626   : > { %v4709_v0 = vadd.f32 %v4708_v31, %v4589_v16 }
 0x627   : > { %v4894_v55 = vadd.f32 %v4862_v21, %v9085_v11 }
 0x629   : > { %4926 = vst.msk [vmem:[%s8750_s8 + $0xd0] sm:$0xff] %vm169_vm0, %v4894_v55 }
 0x62b   : > { %v4714_v40 = vpop.f32.mrf.mxu2 }
 0x62c   : > { %v4821_v61 = vpop.f32.mrf.mxu3 }
 0x62d   : > { %v4863_v53 = vadd.f32 %v4821_v61, %v4703_v15 }
 0x62f   : > { %v4895_v32 = vadd.f32 %v4863_v53, %v9086_v48 }
 0x631   : > { %4927 = vst.msk [vmem:[%s8750_s8 + $0xd8] sm:$0xff] %vm169_vm0, %v4895_v32 }
 0x65d   : > { %v4592_v3 = vpop.f32.mrf.mxu1 }
 0x65e   : > { %v4712_v60 = vadd.f32 %v4711_v33, %v4592_v3 }
 0x663   : > { %v4824_v26 = vpop.f32.mrf.mxu3 }
 0x664   : > { %v4864_v50 = vadd.f32 %v4824_v26, %v4706_v57 }
 0x665   : > { %v4595_v18 = vpop.f32.mrf.mxu1 }
 0x666   : > { %v4896_v17 = vadd.f32 %v4864_v50, %v9087_v24  ;;  %v4715_v9 = vadd.f32 %v4714_v40, %v4595_v18 }
 0x668   : > { %4928 = vst.msk [vmem:[%s8750_s8 + $0xe0] sm:$0xff] %vm169_vm0, %v4896_v17 }
 0x66b   : > { %v4827_v34 = vpop.f32.mrf.mxu3 }
 0x66c   : > { %v4865_v12 = vadd.f32 %v4827_v34, %v4709_v0 }
 0x66e   : > { %v4897_v25 = vadd.f32 %v4865_v12, %v9088_v59 }
 0x670   : > { %4929 = vst.msk [vmem:[%s8750_s8 + $0xe8] sm:$0xff] %vm169_vm0, %v4897_v25 }
 0x673   : > { %v4830_v14 = vpop.f32.mrf.mxu3 }
 0x674   : > { %v4866_v44 = vadd.f32 %v4830_v14, %v4712_v60 }
 0x676   : > { %v4898_v56 = vadd.f32 %v4866_v44, %v9089_v41 }
 0x678   : > { %4930 = vst.msk [vmem:[%s8750_s8 + $0xf0] sm:$0xff] %vm169_vm0, %v4898_v56 }
 0x67b   : > { %v4833_v23 = vpop.f32.mrf.mxu3 }
 0x67c   : > { %v4867_v19 = vadd.f32 %v4833_v23, %v4715_v9 }
 0x67e   : > { %v4899_v29 = vadd.f32 %v4867_v19, %v9090_v36 }
 0x680   : > { %4931 = vst.msk [vmem:[%s8750_s8 + $0xf8] sm:$0xff] %vm169_vm0, %v4899_v29 }
 0x681   : > { %5516 = shalt.err (!%p5513_p3)
}
 0x682   : > { %s5556_s4 = smov 128   ;;  %s5557_s5 = smov 8  }
 0x683   : > { %5444 = dma.vmem_to_hbm [thread:$0]  (%p5616_p5), %s4946_s11, 4096, %s4948_s17, %s4933_s16, %s5556_s4, %s5556_s4, %s5557_s5  }
 0x684 PF: > { %p5450_p4 = scmp.ge.s32.totalorder %s5551_s15, 2  ;;  %s4962_s6 = sand.u32 1, %s5539_s12  }
 0x685   : > { %s4963_s7 = scalar_lea.sflag [#allocation5], %s4962_s6 }
 0x686   : > { %p5447_p7 = pnand %p5450_p4, %p5620_p6 }
 0x688   : > { %p5448_p8 = pneg %p5447_p7 }
 0x68a   : > { %5534 = dma.done.wait (%p5448_p8), %s4963_s7, 4096  }
 0x68b   : > { %5536 = vsyncadd (%p5448_p8), %s4963_s7, 4294963200  ;;  %p13_p9 = scmp.ge.s32.totalorder %s5603_s18, 4   ;;  %s9091_s12 = smov %s5543_s13 }
 0x68c   : > { %s9092_s13 = smov %s5547_s14  ;;  %s9093_s14 = smov %s5614_s21 }
 0x68d   : > { %s9094_s15 = smov %s5603_s18  ;;  %15 = sbr.rel (!%p13_p9) target bundleno = 3 (0x3), region = 71 }
 0x692   :  { %4969 = vsyncpa [#allocation5], 1 }
 0x693   :  { %4971 = vsyncpa [#allocation5 + $0x1], 1 }

</bundles_post_ra>
